<compile_context>
chip_gen: v6e
topology: v6e:2x2x1
jax: 0.10.0
libtpu: 0.0.40
codegen_flags: <defaults>
</compile_context>

<pallas_src>
import functools

import jax
import jax.numpy as jnp
import numpy as np
from jax.experimental import pallas as pl
from jax.experimental.pallas import tpu as pltpu

NEG_SLOPE = 0.2
BN_EPS = 1e-5
TARGET_SIZE = (16, 16)   # small stand-in for (224, 224)


# ----------------------------- Pallas kernels -----------------------------

def _fused_conv_kernel(*refs, post):
    """conv-as-matmul + bias, then the ops listed in `post` (applied in order).

    refs layout: x (K, M), w (Cout, K), b (Cout, 1),
                 [gamma (Cout, 1), beta (Cout, 1)]  if "bn"  in post,
                 [res (Cout, M)]                    if "res" in post,
                 out (Cout, M).
    M = N*Ho*Wo sits on the lane axis -> lane-dense loads/stores.
    """
    x_ref, w_ref, b_ref = refs[0], refs[1], refs[2]
    i = 3
    g_ref = be_ref = r_ref = None
    if "bn" in post:
        g_ref, be_ref = refs[i], refs[i + 1]
        i += 2
    if "res" in post:
        r_ref = refs[i]
        i += 1
    o_ref = refs[i]

    # Single MXU matmul over the whole contraction K = KH*KW*Cin.
    y = jnp.dot(w_ref[...], x_ref[...], preferred_element_type=jnp.float32)
    y = y + b_ref[...]
    for op in post:
        if op == "bn":
            # training-mode batch statistics over (N, H, W), biased variance.
            mean = jnp.mean(y, axis=1, keepdims=True)
            var = jnp.mean(jnp.square(y - mean), axis=1, keepdims=True)
            y = (y - mean) * jax.lax.rsqrt(var + BN_EPS) * g_ref[...] + be_ref[...]
        elif op == "leaky":
            y = jnp.where(y > 0, y, NEG_SLOPE * y)
        elif op == "res":
            y = y + r_ref[...]
    o_ref[...] = y


def _resize_kernel(x_ref, rwT_ref, rhbd_ref, o_ref):
    # x: (P*Hin, Win), rwT: (Win, Wout), rhbd: (P*Hout, P*Hin) block-diag of Rh.
    t = jnp.dot(x_ref[...], rwT_ref[...], preferred_element_type=jnp.float32)
    o_ref[...] = jnp.dot(rhbd_ref[...], t, preferred_element_type=jnp.float32)


# ------------------------------ wrappers -----------------------------------

def _full_spec(arr):
    nd = arr.ndim
    return pl.BlockSpec(arr.shape, lambda i, nd=nd: (0,) * nd)


def fused_conv_layer(x, w, b, *, padding, post=(), gamma=None, beta=None,
                     residual=None):
    """x: (Cin, N, H, W) channel-major; w: (Cout, Cin, KH, KW); b: (Cout,).

    Returns (Cout, N, Ho, Wo) channel-major.
    """
    Cin, N, H, W = x.shape
    Cout, _, KH, KW = w.shape
    Ho = H + 2 * padding - KH + 1
    Wo = W + 2 * padding - KW + 1
    M = N * Ho * Wo
    K = KH * KW * Cin

    xp = jnp.pad(x, ((0, 0), (0, 0), (padding, padding), (padding, padding)))
    # im2col in the wrapper; rows ordered (kh, kw, cin) to match the weight reshape.
    taps = [xp[:, :, kh:kh + Ho, kw:kw + Wo].reshape(Cin, M)
            for kh in range(KH) for kw in range(KW)]
    X = jnp.concatenate(taps, axis=0)                       # (K, M)
    W2 = jnp.transpose(w, (0, 2, 3, 1)).reshape(Cout, K)    # (Cout, K)
    B2 = b.reshape(Cout, 1)

    operands = [X, W2, B2]
    if "bn" in post:
        operands += [gamma.reshape(Cout, 1), beta.reshape(Cout, 1)]
    if "res" in post:
        operands.append(residual.reshape(Cout, M))

    out = pl.pallas_call(
        functools.partial(_fused_conv_kernel, post=post),
        out_shape=jax.ShapeDtypeStruct((Cout, M), jnp.float32),
        grid=(1,),
        in_specs=[_full_spec(a) for a in operands],
        out_specs=pl.BlockSpec((Cout, M), lambda i: (0, 0)),
        compiler_params=pltpu.CompilerParams(
            dimension_semantics=("arbitrary",)),
    )(*operands)
    return out.reshape(Cout, N, Ho, Wo)


def bilinear_matrix(in_size, out_size):
    # PyTorch F.interpolate(mode='bilinear', align_corners=False) weights.
    scale = in_size / out_size
    i = jnp.arange(out_size, dtype=jnp.float32)
    src = jnp.maximum((i + 0.5) * scale - 0.5, 0.0)
    i0 = jnp.minimum(jnp.floor(src).astype(jnp.int32), in_size - 1)
    i1 = jnp.minimum(i0 + 1, in_size - 1)
    lam = src - i0.astype(jnp.float32)
    R = jnp.zeros((out_size, in_size), jnp.float32)
    R = R.at[jnp.arange(out_size), i0].add(1.0 - lam)
    R = R.at[jnp.arange(out_size), i1].add(lam)
    return R


def resize_cnhw(x, target):
    """Bilinear resize (align_corners=False) of a channel-major (C, N, H, W) tensor."""
    C, N, H, W = x.shape
    Ho, Wo = target
    P = C * N
    RwT = bilinear_matrix(W, Wo).T                              # (W, Wo)
    RhBD = jnp.kron(jnp.eye(P, dtype=jnp.float32),
                    bilinear_matrix(H, Ho))                     # (P*Ho, P*H), const under jit
    X2 = x.reshape(P * H, W)
    out = pl.pallas_call(
        _resize_kernel,
        out_shape=jax.ShapeDtypeStruct((P * Ho, Wo), jnp.float32),
        grid=(1,),
        in_specs=[_full_spec(X2), _full_spec(RwT), _full_spec(RhBD)],
        out_specs=pl.BlockSpec((P * Ho, Wo), lambda i: (0, 0)),
        compiler_params=pltpu.CompilerParams(
            dimension_semantics=("arbitrary",)),
    )(X2, RwT, RhBD)
    return out.reshape(C, N, Ho, Wo)


# ----------------------------- model forward -------------------------------

def learn_to_resize(params, img, num_res_blocks=1, target_size=TARGET_SIZE):
    """img: (N, 3, H, W) NCHW, matching the PyTorch module."""
    x = jnp.transpose(img, (1, 0, 2, 3))                        # channel-major (3, N, H, W)

    out = fused_conv_layer(x, params["c1_w"], params["c1_b"],
                           padding=0, post=("leaky",))
    out = fused_conv_layer(out, params["c2_w"], params["c2_b"],
                           padding=0, post=("leaky", "bn"),
                           gamma=params["bn1_g"], beta=params["bn1_b"])
    out_hold = resize_cnhw(out, target_size)                    # (16, N, Ho, Wo)

    out = out_hold
    for i in range(num_res_blocks):
        r = fused_conv_layer(out, params[f"rb{i}_c1_w"], params[f"rb{i}_c1_b"],
                             padding=1, post=("bn", "leaky"),
                             gamma=params[f"rb{i}_bn1_g"], beta=params[f"rb{i}_bn1_b"])
        out = fused_conv_layer(r, params[f"rb{i}_c2_w"], params[f"rb{i}_c2_b"],
                               padding=1, post=("bn", "res"),
                               gamma=params[f"rb{i}_bn2_g"], beta=params[f"rb{i}_bn2_b"],
                               residual=out)

    # conv_3 + batch_norm_2, with the "+ out_hold" feeding conv_4 fused in.
    out = fused_conv_layer(out, params["c3_w"], params["c3_b"],
                           padding=1, post=("bn", "res"),
                           gamma=params["bn2_g"], beta=params["bn2_b"],
                           residual=out_hold)
    parallel = resize_cnhw(x, target_size)                      # (3, N, Ho, Wo)
    out = fused_conv_layer(out, params["c4_w"], params["c4_b"],
                           padding=3, post=("res",), residual=parallel)
    return jnp.transpose(out, (1, 0, 2, 3))                     # back to NCHW


# ------------------------- pure-JAX reference -------------------------------

def _ref_conv(x, w, b, pad):
    y = jax.lax.conv_general_dilated(
        x, w, window_strides=(1, 1), padding=[(pad, pad), (pad, pad)],
        dimension_numbers=("NCHW", "OIHW", "NCHW"))
    return y + b[None, :, None, None]


def _ref_bn(x, g, be):
    mean = x.mean(axis=(0, 2, 3), keepdims=True)
    var = jnp.square(x - mean).mean(axis=(0, 2, 3), keepdims=True)
    return (x - mean) * jax.lax.rsqrt(var + BN_EPS) * g[None, :, None, None] \
        + be[None, :, None, None]


def _ref_leaky(x):
    return jnp.where(x > 0, x, NEG_SLOPE * x)


def _ref_resize(x, target):
    Rh = bilinear_matrix(x.shape[2], target[0])
    Rw = bilinear_matrix(x.shape[3], target[1])
    return jnp.einsum("oh,nchw,pw->ncop", Rh, x, Rw)


def _ref_forward(params, img, num_res_blocks=1, target_size=TARGET_SIZE):
    out = _ref_leaky(_ref_conv(img, params["c1_w"], params["c1_b"], 0))
    out = _ref_leaky(_ref_conv(out, params["c2_w"], params["c2_b"], 0))
    out = _ref_bn(out, params["bn1_g"], params["bn1_b"])
    out_hold = _ref_resize(out, target_size)
    out = out_hold
    for i in range(num_res_blocks):
        r = _ref_conv(out, params[f"rb{i}_c1_w"], params[f"rb{i}_c1_b"], 1)
        r = _ref_leaky(_ref_bn(r, params[f"rb{i}_bn1_g"], params[f"rb{i}_bn1_b"]))
        r = _ref_conv(r, params[f"rb{i}_c2_w"], params[f"rb{i}_c2_b"], 1)
        r = _ref_bn(r, params[f"rb{i}_bn2_g"], params[f"rb{i}_bn2_b"])
        out = r + out
    out = _ref_conv(out, params["c3_w"], params["c3_b"], 1)
    out = _ref_bn(out, params["bn2_g"], params["bn2_b"])
    out = _ref_conv(out + out_hold, params["c4_w"], params["c4_b"], 3)
    return out + _ref_resize(img, target_size)


# ------------------------------- params ------------------------------------

def init_params(key, num_res_blocks=1):
    p = {}

    def conv_init(k, cout, cin, ksz):
        k1, k2 = jax.random.split(k)
        return (jax.random.normal(k1, (cout, cin, ksz, ksz), jnp.float32) * 0.05,
                jax.random.normal(k2, (cout,), jnp.float32) * 0.05)

    def bn_init(k, c):
        k1, k2 = jax.random.split(k)
        return (1.0 + 0.1 * jax.random.normal(k1, (c,), jnp.float32),
                0.1 * jax.random.normal(k2, (c,), jnp.float32))

    keys = jax.random.split(key, 6 + 4 * num_res_blocks)
    p["c1_w"], p["c1_b"] = conv_init(keys[0], 16, 3, 7)
    p["c2_w"], p["c2_b"] = conv_init(keys[1], 16, 16, 3)
    p["c3_w"], p["c3_b"] = conv_init(keys[2], 16, 16, 3)
    p["c4_w"], p["c4_b"] = conv_init(keys[3], 3, 16, 7)
    p["bn1_g"], p["bn1_b"] = bn_init(keys[4], 16)
    p["bn2_g"], p["bn2_b"] = bn_init(keys[5], 16)
    for i in range(num_res_blocks):
        kk = jax.random.split(keys[6 + 4 * i], 4)
        p[f"rb{i}_c1_w"], p[f"rb{i}_c1_b"] = conv_init(kk[0], 16, 16, 3)
        p[f"rb{i}_c2_w"], p[f"rb{i}_c2_b"] = conv_init(kk[1], 16, 16, 3)
        p[f"rb{i}_bn1_g"], p[f"rb{i}_bn1_b"] = bn_init(kk[2], 16)
        p[f"rb{i}_bn2_g"], p[f"rb{i}_bn2_b"] = bn_init(kk[3], 16)
    return p


if __name__ == "__main__":
    key = jax.random.PRNGKey(0)
    k_params, k_img = jax.random.split(key)
    params = init_params(k_params, num_res_blocks=1)
    img = jax.random.normal(k_img, (2, 3, 20, 20), jnp.float32)  # small NCHW input

    fwd = jax.jit(learn_to_resize)
    out = jax.block_until_ready(fwd(params, img))

    ref = jax.block_until_ready(jax.jit(_ref_forward)(params, img))

    assert out.shape == (2, 3, TARGET_SIZE[0], TARGET_SIZE[1]), out.shape
    out_np = np.asarray(out)
    ref_np = np.asarray(ref)
    assert np.all(np.isfinite(out_np))
    max_err = float(np.max(np.abs(out_np - ref_np)))
    scale = float(np.max(np.abs(ref_np)))
    # default-precision (bf16 MXU pass) matmuls on both sides -> relative tolerance.
    assert max_err <= 1e-2 * scale + 1e-2, \
        f"mismatch vs reference: {max_err} (ref scale {scale})"

    print("KERNEL_OK")
</pallas_src>

<mosaic_0001>
module attributes {stable_mosaic.version = 11 : i64} {
  func.func private @main(%arg0: i32) attributes {dimension_semantics = [#tpu.dimension_semantics<core_parallel>], iteration_bounds = array<i64: 2>, tpu.core_type = #tpu.core_type<sc_scalar_subcore>, window_params = []} {
    return
  }
}

module attributes {stable_mosaic.version = 11 : i64} {
  func.func private @main(%arg0: i32) attributes {dimension_semantics = [#tpu.dimension_semantics<core_parallel>], iteration_bounds = array<i64: 2>, tpu.core_type = #tpu.core_type<sc_scalar_subcore>, window_params = []} {
    return
  }
}

module attributes {stable_mosaic.version = 11 : i64} {
  func.func @_fused_conv_kernel(%arg0: i32, %arg1: memref<147x392xf32, #tpu.memory_space<vmem>>, %arg2: memref<16x147xf32, #tpu.memory_space<vmem>>, %arg3: memref<16x1xf32, #tpu.memory_space<vmem>>, %arg4: memref<16x392xf32, #tpu.memory_space<vmem>>) attributes {dimension_semantics = [#tpu.dimension_semantics<arbitrary>], iteration_bounds = array<i64: 1>, scalar_prefetch = 0 : i64, scratch_operands = 0 : i64, tpu.core_type = #tpu.core_type<tc>, window_params = [{pipeline_mode = #tpu.pipeline_mode<synchronous>, transform_indices = @transform_0, window_bounds = array<i64: 147, 392>}, {pipeline_mode = #tpu.pipeline_mode<synchronous>, transform_indices = @transform_1, window_bounds = array<i64: 16, 147>}, {pipeline_mode = #tpu.pipeline_mode<synchronous>, transform_indices = @transform_2, window_bounds = array<i64: 16, 1>}, {pipeline_mode = #tpu.pipeline_mode<synchronous>, transform_indices = @transform_3, window_bounds = array<i64: 16, 392>}]} {
    %c0 = arith.constant 0 : index
    %c0_0 = arith.constant 0 : index
    %0 = vector.load %arg2[%c0, %c0_0] : memref<16x147xf32, #tpu.memory_space<vmem>>, vector<16x147xf32>
    %c0_1 = arith.constant 0 : index
    %c0_2 = arith.constant 0 : index
    %1 = vector.load %arg1[%c0_1, %c0_2] : memref<147x392xf32, #tpu.memory_space<vmem>>, vector<147x392xf32>
    %cst = arith.constant dense<0.000000e+00> : vector<16x392xf32>
    %2 = tpu.matmul %0, %1, %cst {dimension_numbers = #tpu.dot_dimension_numbers<[1], [0], [0], [1], [0, 0, 1, 1], [], []>} : vector<16x147xf32>, vector<147x392xf32>, vector<16x392xf32> -> vector<16x392xf32>
    %c0_3 = arith.constant 0 : index
    %c0_4 = arith.constant 0 : index
    %3 = vector.load %arg3[%c0_3, %c0_4] : memref<16x1xf32, #tpu.memory_space<vmem>>, vector<16x1xf32>
    %4 = vector.broadcast %3 : vector<16x1xf32> to vector<16x392xf32>
    %5 = arith.addf %2, %4 : vector<16x392xf32>
    %cst_5 = arith.constant 0.000000e+00 : f32
    %6 = vector.broadcast %cst_5 : f32 to vector<16x392xf32>
    %7 = arith.cmpf ogt, %5, %6 : vector<16x392xf32>
    %cst_6 = arith.constant 2.000000e-01 : f32
    %8 = vector.broadcast %cst_6 : f32 to vector<16x392xf32>
    %9 = arith.mulf %8, %5 : vector<16x392xf32>
    %10 = arith.select %7, %5, %9 : vector<16x392xi1>, vector<16x392xf32>
    %c0_7 = arith.constant 0 : index
    %c0_8 = arith.constant 0 : index
    %11 = vector.load %arg4[%c0_7, %c0_8] : memref<16x392xf32, #tpu.memory_space<vmem>>, vector<16x392xf32>
    tpu.vector_store %arg4[%c0_7, %c0_8], %10 {strides = array<i32>} : memref<16x392xf32, #tpu.memory_space<vmem>>, vector<16x392xf32>,
    return
  }
  func.func @transform_0(%arg0: i32) -> (i32, i32) {
    %c0_i32 = arith.constant 0 : i32
    %c0_i32_0 = arith.constant 0 : i32
    %c0_i32_1 = arith.constant 0 : i32
    return %c0_i32, %c0_i32_0 : i32, i32
  }
  func.func @transform_1(%arg0: i32) -> (i32, i32) {
    %c0_i32 = arith.constant 0 : i32
    %c0_i32_0 = arith.constant 0 : i32
    %c0_i32_1 = arith.constant 0 : i32
    return %c0_i32, %c0_i32_0 : i32, i32
  }
  func.func @transform_2(%arg0: i32) -> (i32, i32) {
    %c0_i32 = arith.constant 0 : i32
    %c0_i32_0 = arith.constant 0 : i32
    %c0_i32_1 = arith.constant 0 : i32
    return %c0_i32, %c0_i32_0 : i32, i32
  }
  func.func @transform_3(%arg0: i32) -> (i32, i32) {
    %c0_i32 = arith.constant 0 : i32
    %c0_i32_0 = arith.constant 0 : i32
    %c0_i32_1 = arith.constant 0 : i32
    return %c0_i32, %c0_i32_0 : i32, i32
  }
}

module attributes {stable_mosaic.version = 11 : i64} {
  func.func @_fused_conv_kernel(%arg0: i32, %arg1: memref<144x288xf32, #tpu.memory_space<vmem>>, %arg2: memref<16x144xf32, #tpu.memory_space<vmem>>, %arg3: memref<16x1xf32, #tpu.memory_space<vmem>>, %arg4: memref<16x1xf32, #tpu.memory_space<vmem>>, %arg5: memref<16x1xf32, #tpu.memory_space<vmem>>, %arg6: memref<16x288xf32, #tpu.memory_space<vmem>>) attributes {dimension_semantics = [#tpu.dimension_semantics<arbitrary>], iteration_bounds = array<i64: 1>, scalar_prefetch = 0 : i64, scratch_operands = 0 : i64, tpu.core_type = #tpu.core_type<tc>, window_params = [{pipeline_mode = #tpu.pipeline_mode<synchronous>, transform_indices = @transform_0, window_bounds = array<i64: 144, 288>}, {pipeline_mode = #tpu.pipeline_mode<synchronous>, transform_indices = @transform_1, window_bounds = array<i64: 16, 144>}, {pipeline_mode = #tpu.pipeline_mode<synchronous>, transform_indices = @transform_2, window_bounds = array<i64: 16, 1>}, {pipeline_mode = #tpu.pipeline_mode<synchronous>, transform_indices = @transform_3, window_bounds = array<i64: 16, 1>}, {pipeline_mode = #tpu.pipeline_mode<synchronous>, transform_indices = @transform_4, window_bounds = array<i64: 16, 1>}, {pipeline_mode = #tpu.pipeline_mode<synchronous>, transform_indices = @transform_5, window_bounds = array<i64: 16, 288>}]} {
    %c0 = arith.constant 0 : index
    %c0_0 = arith.constant 0 : index
    %0 = vector.load %arg2[%c0, %c0_0] : memref<16x144xf32, #tpu.memory_space<vmem>>, vector<16x144xf32>
    %c0_1 = arith.constant 0 : index
    %c0_2 = arith.constant 0 : index
    %1 = vector.load %arg1[%c0_1, %c0_2] : memref<144x288xf32, #tpu.memory_space<vmem>>, vector<144x288xf32>
    %cst = arith.constant dense<0.000000e+00> : vector<16x288xf32>
    %2 = tpu.matmul %0, %1, %cst {dimension_numbers = #tpu.dot_dimension_numbers<[1], [0], [0], [1], [0, 0, 1, 1], [], []>} : vector<16x144xf32>, vector<144x288xf32>, vector<16x288xf32> -> vector<16x288xf32>
    %c0_3 = arith.constant 0 : index
    %c0_4 = arith.constant 0 : index
    %3 = vector.load %arg3[%c0_3, %c0_4] : memref<16x1xf32, #tpu.memory_space<vmem>>, vector<16x1xf32>
    %4 = vector.broadcast %3 : vector<16x1xf32> to vector<16x288xf32>
    %5 = arith.addf %2, %4 : vector<16x288xf32>
    %cst_5 = arith.constant 0.000000e+00 : f32
    %6 = vector.broadcast %cst_5 : f32 to vector<16x288xf32>
    %7 = arith.cmpf ogt, %5, %6 : vector<16x288xf32>
    %cst_6 = arith.constant 2.000000e-01 : f32
    %8 = vector.broadcast %cst_6 : f32 to vector<16x288xf32>
    %9 = arith.mulf %8, %5 : vector<16x288xf32>
    %10 = arith.select %7, %5, %9 : vector<16x288xi1>, vector<16x288xf32>
    %cst_7 = arith.constant dense<0.000000e+00> : vector<16xf32>
    %11 = vector.multi_reduction <add>, %10, %cst_7 [1] : vector<16x288xf32> to vector<16xf32>
    %12 = vector.shape_cast %11 : vector<16xf32> to vector<16x1xf32>
    %cst_8 = arith.constant 2.880000e+02 : f32
    %13 = vector.broadcast %cst_8 : f32 to vector<16x1xf32>
    %14 = arith.divf %12, %13 : vector<16x1xf32>
    %15 = vector.broadcast %14 : vector<16x1xf32> to vector<16x288xf32>
    %16 = arith.subf %10, %15 : vector<16x288xf32>
    %17 = arith.mulf %16, %16 : vector<16x288xf32>
    %cst_9 = arith.constant dense<0.000000e+00> : vector<16xf32>
    %18 = vector.multi_reduction <add>, %17, %cst_9 [1] : vector<16x288xf32> to vector<16xf32>
    %19 = vector.shape_cast %18 : vector<16xf32> to vector<16x1xf32>
    %cst_10 = arith.constant 2.880000e+02 : f32
    %20 = vector.broadcast %cst_10 : f32 to vector<16x1xf32>
    %21 = arith.divf %19, %20 : vector<16x1xf32>
    %22 = vector.broadcast %14 : vector<16x1xf32> to vector<16x288xf32>
    %23 = arith.subf %10, %22 : vector<16x288xf32>
    %cst_11 = arith.constant 9.99999974E-6 : f32
    %24 = vector.broadcast %cst_11 : f32 to vector<16x1xf32>
    %25 = arith.addf %21, %24 : vector<16x1xf32>
    %26 = math.rsqrt %25 : vector<16x1xf32>
    %27 = vector.broadcast %26 : vector<16x1xf32> to vector<16x288xf32>
    %28 = arith.mulf %23, %27 : vector<16x288xf32>
    %c0_12 = arith.constant 0 : index
    %c0_13 = arith.constant 0 : index
    %29 = vector.load %arg4[%c0_12, %c0_13] : memref<16x1xf32, #tpu.memory_space<vmem>>, vector<16x1xf32>
    %30 = vector.broadcast %29 : vector<16x1xf32> to vector<16x288xf32>
    %31 = arith.mulf %28, %30 : vector<16x288xf32>
    %c0_14 = arith.constant 0 : index
    %c0_15 = arith.constant 0 : index
    %32 = vector.load %arg5[%c0_14, %c0_15] : memref<16x1xf32, #tpu.memory_space<vmem>>, vector<16x1xf32>
    %33 = vector.broadcast %32 : vector<16x1xf32> to vector<16x288xf32>
    %34 = arith.addf %31, %33 : vector<16x288xf32>
    %c0_16 = arith.constant 0 : index
    %c0_17 = arith.constant 0 : index
    %35 = vector.load %arg6[%c0_16, %c0_17] : memref<16x288xf32, #tpu.memory_space<vmem>>, vector<16x288xf32>
    tpu.vector_store %arg6[%c0_16, %c0_17], %34 {strides = array<i32>} : memref<16x288xf32, #tpu.memory_space<vmem>>, vector<16x288xf32>,
    return
  }
  func.func @transform_0(%arg0: i32) -> (i32, i32) {
    %c0_i32 = arith.constant 0 : i32
    %c0_i32_0 = arith.constant 0 : i32
    %c0_i32_1 = arith.constant 0 : i32
    return %c0_i32, %c0_i32_0 : i32, i32
  }
  func.func @transform_1(%arg0: i32) -> (i32, i32) {
    %c0_i32 = arith.constant 0 : i32
    %c0_i32_0 = arith.constant 0 : i32
    %c0_i32_1 = arith.constant 0 : i32
    return %c0_i32, %c0_i32_0 : i32, i32
  }
  func.func @transform_2(%arg0: i32) -> (i32, i32) {
    %c0_i32 = arith.constant 0 : i32
    %c0_i32_0 = arith.constant 0 : i32
    %c0_i32_1 = arith.constant 0 : i32
    return %c0_i32, %c0_i32_0 : i32, i32
  }
  func.func @transform_3(%arg0: i32) -> (i32, i32) {
    %c0_i32 = arith.constant 0 : i32
    %c0_i32_0 = arith.constant 0 : i32
    %c0_i32_1 = arith.constant 0 : i32
    return %c0_i32, %c0_i32_0 : i32, i32
  }
  func.func @transform_4(%arg0: i32) -> (i32, i32) {
    %c0_i32 = arith.constant 0 : i32
    %c0_i32_0 = arith.constant 0 : i32
    %c0_i32_1 = arith.constant 0 : i32
    return %c0_i32, %c0_i32_0 : i32, i32
  }
  func.func @transform_5(%arg0: i32) -> (i32, i32) {
    %c0_i32 = arith.constant 0 : i32
    %c0_i32_0 = arith.constant 0 : i32
    %c0_i32_1 = arith.constant 0 : i32
    return %c0_i32, %c0_i32_0 : i32, i32
  }
}

module attributes {stable_mosaic.version = 11 : i64} {
  func.func @_resize_kernel(%arg0: i32, %arg1: memref<384x12xf32, #tpu.memory_space<vmem>>, %arg2: memref<12x16xf32, #tpu.memory_space<vmem>>, %arg3: memref<512x384xf32, #tpu.memory_space<vmem>>, %arg4: memref<512x16xf32, #tpu.memory_space<vmem>>) attributes {dimension_semantics = [#tpu.dimension_semantics<arbitrary>], iteration_bounds = array<i64: 1>, scalar_prefetch = 0 : i64, scratch_operands = 0 : i64, tpu.core_type = #tpu.core_type<tc>, window_params = [{pipeline_mode = #tpu.pipeline_mode<synchronous>, transform_indices = @transform_0, window_bounds = array<i64: 384, 12>}, {pipeline_mode = #tpu.pipeline_mode<synchronous>, transform_indices = @transform_1, window_bounds = array<i64: 12, 16>}, {pipeline_mode = #tpu.pipeline_mode<synchronous>, transform_indices = @transform_2, window_bounds = array<i64: 512, 384>}, {pipeline_mode = #tpu.pipeline_mode<synchronous>, transform_indices = @transform_3, window_bounds = array<i64: 512, 16>}]} {
    %c0 = arith.constant 0 : index
    %c0_0 = arith.constant 0 : index
    %0 = vector.load %arg1[%c0, %c0_0] : memref<384x12xf32, #tpu.memory_space<vmem>>, vector<384x12xf32>
    %c0_1 = arith.constant 0 : index
    %c0_2 = arith.constant 0 : index
    %1 = vector.load %arg2[%c0_1, %c0_2] : memref<12x16xf32, #tpu.memory_space<vmem>>, vector<12x16xf32>
    %cst = arith.constant dense<0.000000e+00> : vector<384x16xf32>
    %2 = tpu.matmul %0, %1, %cst {dimension_numbers = #tpu.dot_dimension_numbers<[1], [0], [0], [1], [0, 0, 1, 1], [], []>} : vector<384x12xf32>, vector<12x16xf32>, vector<384x16xf32> -> vector<384x16xf32>
    %c0_3 = arith.constant 0 : index
    %c0_4 = arith.constant 0 : index
    %3 = vector.load %arg3[%c0_3, %c0_4] : memref<512x384xf32, #tpu.memory_space<vmem>>, vector<512x384xf32>
    %cst_5 = arith.constant dense<0.000000e+00> : vector<512x16xf32>
    %4 = tpu.matmul %3, %2, %cst_5 {dimension_numbers = #tpu.dot_dimension_numbers<[1], [0], [0], [1], [0, 0, 1, 1], [], []>} : vector<512x384xf32>, vector<384x16xf32>, vector<512x16xf32> -> vector<512x16xf32>
    %c0_6 = arith.constant 0 : index
    %c0_7 = arith.constant 0 : index
    %5 = vector.load %arg4[%c0_6, %c0_7] : memref<512x16xf32, #tpu.memory_space<vmem>>, vector<512x16xf32>
    tpu.vector_store %arg4[%c0_6, %c0_7], %4 {strides = array<i32>} : memref<512x16xf32, #tpu.memory_space<vmem>>, vector<512x16xf32>,
    return
  }
  func.func @transform_0(%arg0: i32) -> (i32, i32) {
    %c0_i32 = arith.constant 0 : i32
    %c0_i32_0 = arith.constant 0 : i32
    %c0_i32_1 = arith.constant 0 : i32
    return %c0_i32, %c0_i32_0 : i32, i32
  }
  func.func @transform_1(%arg0: i32) -> (i32, i32) {
    %c0_i32 = arith.constant 0 : i32
    %c0_i32_0 = arith.constant 0 : i32
    %c0_i32_1 = arith.constant 0 : i32
    return %c0_i32, %c0_i32_0 : i32, i32
  }
  func.func @transform_2(%arg0: i32) -> (i32, i32) {
    %c0_i32 = arith.constant 0 : i32
    %c0_i32_0 = arith.constant 0 : i32
    %c0_i32_1 = arith.constant 0 : i32
    return %c0_i32, %c0_i32_0 : i32, i32
  }
  func.func @transform_3(%arg0: i32) -> (i32, i32) {
    %c0_i32 = arith.constant 0 : i32
    %c0_i32_0 = arith.constant 0 : i32
    %c0_i32_1 = arith.constant 0 : i32
    return %c0_i32, %c0_i32_0 : i32, i32
  }
}

module attributes {stable_mosaic.version = 11 : i64} {
  func.func @_fused_conv_kernel(%arg0: i32, %arg1: memref<144x512xf32, #tpu.memory_space<vmem>>, %arg2: memref<16x144xf32, #tpu.memory_space<vmem>>, %arg3: memref<16x1xf32, #tpu.memory_space<vmem>>, %arg4: memref<16x1xf32, #tpu.memory_space<vmem>>, %arg5: memref<16x1xf32, #tpu.memory_space<vmem>>, %arg6: memref<16x512xf32, #tpu.memory_space<vmem>>) attributes {dimension_semantics = [#tpu.dimension_semantics<arbitrary>], iteration_bounds = array<i64: 1>, scalar_prefetch = 0 : i64, scratch_operands = 0 : i64, tpu.core_type = #tpu.core_type<tc>, window_params = [{pipeline_mode = #tpu.pipeline_mode<synchronous>, transform_indices = @transform_0, window_bounds = array<i64: 144, 512>}, {pipeline_mode = #tpu.pipeline_mode<synchronous>, transform_indices = @transform_1, window_bounds = array<i64: 16, 144>}, {pipeline_mode = #tpu.pipeline_mode<synchronous>, transform_indices = @transform_2, window_bounds = array<i64: 16, 1>}, {pipeline_mode = #tpu.pipeline_mode<synchronous>, transform_indices = @transform_3, window_bounds = array<i64: 16, 1>}, {pipeline_mode = #tpu.pipeline_mode<synchronous>, transform_indices = @transform_4, window_bounds = array<i64: 16, 1>}, {pipeline_mode = #tpu.pipeline_mode<synchronous>, transform_indices = @transform_5, window_bounds = array<i64: 16, 512>}]} {
    %c0 = arith.constant 0 : index
    %c0_0 = arith.constant 0 : index
    %0 = vector.load %arg2[%c0, %c0_0] : memref<16x144xf32, #tpu.memory_space<vmem>>, vector<16x144xf32>
    %c0_1 = arith.constant 0 : index
    %c0_2 = arith.constant 0 : index
    %1 = vector.load %arg1[%c0_1, %c0_2] : memref<144x512xf32, #tpu.memory_space<vmem>>, vector<144x512xf32>
    %cst = arith.constant dense<0.000000e+00> : vector<16x512xf32>
    %2 = tpu.matmul %0, %1, %cst {dimension_numbers = #tpu.dot_dimension_numbers<[1], [0], [0], [1], [0, 0, 1, 1], [], []>} : vector<16x144xf32>, vector<144x512xf32>, vector<16x512xf32> -> vector<16x512xf32>
    %c0_3 = arith.constant 0 : index
    %c0_4 = arith.constant 0 : index
    %3 = vector.load %arg3[%c0_3, %c0_4] : memref<16x1xf32, #tpu.memory_space<vmem>>, vector<16x1xf32>
    %4 = vector.broadcast %3 : vector<16x1xf32> to vector<16x512xf32>
    %5 = arith.addf %2, %4 : vector<16x512xf32>
    %cst_5 = arith.constant dense<0.000000e+00> : vector<16xf32>
    %6 = vector.multi_reduction <add>, %5, %cst_5 [1] : vector<16x512xf32> to vector<16xf32>
    %7 = vector.shape_cast %6 : vector<16xf32> to vector<16x1xf32>
    %cst_6 = arith.constant 5.120000e+02 : f32
    %8 = vector.broadcast %cst_6 : f32 to vector<16x1xf32>
    %9 = arith.divf %7, %8 : vector<16x1xf32>
    %10 = vector.broadcast %9 : vector<16x1xf32> to vector<16x512xf32>
    %11 = arith.subf %5, %10 : vector<16x512xf32>
    %12 = arith.mulf %11, %11 : vector<16x512xf32>
    %cst_7 = arith.constant dense<0.000000e+00> : vector<16xf32>
    %13 = vector.multi_reduction <add>, %12, %cst_7 [1] : vector<16x512xf32> to vector<16xf32>
    %14 = vector.shape_cast %13 : vector<16xf32> to vector<16x1xf32>
    %cst_8 = arith.constant 5.120000e+02 : f32
    %15 = vector.broadcast %cst_8 : f32 to vector<16x1xf32>
    %16 = arith.divf %14, %15 : vector<16x1xf32>
    %17 = vector.broadcast %9 : vector<16x1xf32> to vector<16x512xf32>
    %18 = arith.subf %5, %17 : vector<16x512xf32>
    %cst_9 = arith.constant 9.99999974E-6 : f32
    %19 = vector.broadcast %cst_9 : f32 to vector<16x1xf32>
    %20 = arith.addf %16, %19 : vector<16x1xf32>
    %21 = math.rsqrt %20 : vector<16x1xf32>
    %22 = vector.broadcast %21 : vector<16x1xf32> to vector<16x512xf32>
    %23 = arith.mulf %18, %22 : vector<16x512xf32>
    %c0_10 = arith.constant 0 : index
    %c0_11 = arith.constant 0 : index
    %24 = vector.load %arg4[%c0_10, %c0_11] : memref<16x1xf32, #tpu.memory_space<vmem>>, vector<16x1xf32>
    %25 = vector.broadcast %24 : vector<16x1xf32> to vector<16x512xf32>
    %26 = arith.mulf %23, %25 : vector<16x512xf32>
    %c0_12 = arith.constant 0 : index
    %c0_13 = arith.constant 0 : index
    %27 = vector.load %arg5[%c0_12, %c0_13] : memref<16x1xf32, #tpu.memory_space<vmem>>, vector<16x1xf32>
    %28 = vector.broadcast %27 : vector<16x1xf32> to vector<16x512xf32>
    %29 = arith.addf %26, %28 : vector<16x512xf32>
    %cst_14 = arith.constant 0.000000e+00 : f32
    %30 = vector.broadcast %cst_14 : f32 to vector<16x512xf32>
    %31 = arith.cmpf ogt, %29, %30 : vector<16x512xf32>
    %cst_15 = arith.constant 2.000000e-01 : f32
    %32 = vector.broadcast %cst_15 : f32 to vector<16x512xf32>
    %33 = arith.mulf %32, %29 : vector<16x512xf32>
    %34 = arith.select %31, %29, %33 : vector<16x512xi1>, vector<16x512xf32>
    %c0_16 = arith.constant 0 : index
    %c0_17 = arith.constant 0 : index
    %35 = vector.load %arg6[%c0_16, %c0_17] : memref<16x512xf32, #tpu.memory_space<vmem>>, vector<16x512xf32>
    tpu.vector_store %arg6[%c0_16, %c0_17], %34 {strides = array<i32>} : memref<16x512xf32, #tpu.memory_space<vmem>>, vector<16x512xf32>,
    return
  }
  func.func @transform_0(%arg0: i32) -> (i32, i32) {
    %c0_i32 = arith.constant 0 : i32
    %c0_i32_0 = arith.constant 0 : i32
    %c0_i32_1 = arith.constant 0 : i32
    return %c0_i32, %c0_i32_0 : i32, i32
  }
  func.func @transform_1(%arg0: i32) -> (i32, i32) {
    %c0_i32 = arith.constant 0 : i32
    %c0_i32_0 = arith.constant 0 : i32
    %c0_i32_1 = arith.constant 0 : i32
    return %c0_i32, %c0_i32_0 : i32, i32
  }
  func.func @transform_2(%arg0: i32) -> (i32, i32) {
    %c0_i32 = arith.constant 0 : i32
    %c0_i32_0 = arith.constant 0 : i32
    %c0_i32_1 = arith.constant 0 : i32
    return %c0_i32, %c0_i32_0 : i32, i32
  }
  func.func @transform_3(%arg0: i32) -> (i32, i32) {
    %c0_i32 = arith.constant 0 : i32
    %c0_i32_0 = arith.constant 0 : i32
    %c0_i32_1 = arith.constant 0 : i32
    return %c0_i32, %c0_i32_0 : i32, i32
  }
  func.func @transform_4(%arg0: i32) -> (i32, i32) {
    %c0_i32 = arith.constant 0 : i32
    %c0_i32_0 = arith.constant 0 : i32
    %c0_i32_1 = arith.constant 0 : i32
    return %c0_i32, %c0_i32_0 : i32, i32
  }
  func.func @transform_5(%arg0: i32) -> (i32, i32) {
    %c0_i32 = arith.constant 0 : i32
    %c0_i32_0 = arith.constant 0 : i32
    %c0_i32_1 = arith.constant 0 : i32
    return %c0_i32, %c0_i32_0 : i32, i32
  }
}

module attributes {stable_mosaic.version = 11 : i64} {
  func.func @_fused_conv_kernel(%arg0: i32, %arg1: memref<144x512xf32, #tpu.memory_space<vmem>>, %arg2: memref<16x144xf32, #tpu.memory_space<vmem>>, %arg3: memref<16x1xf32, #tpu.memory_space<vmem>>, %arg4: memref<16x1xf32, #tpu.memory_space<vmem>>, %arg5: memref<16x1xf32, #tpu.memory_space<vmem>>, %arg6: memref<16x512xf32, #tpu.memory_space<vmem>>, %arg7: memref<16x512xf32, #tpu.memory_space<vmem>>) attributes {dimension_semantics = [#tpu.dimension_semantics<arbitrary>], iteration_bounds = array<i64: 1>, scalar_prefetch = 0 : i64, scratch_operands = 0 : i64, tpu.core_type = #tpu.core_type<tc>, window_params = [{pipeline_mode = #tpu.pipeline_mode<synchronous>, transform_indices = @transform_0, window_bounds = array<i64: 144, 512>}, {pipeline_mode = #tpu.pipeline_mode<synchronous>, transform_indices = @transform_1, window_bounds = array<i64: 16, 144>}, {pipeline_mode = #tpu.pipeline_mode<synchronous>, transform_indices = @transform_2, window_bounds = array<i64: 16, 1>}, {pipeline_mode = #tpu.pipeline_mode<synchronous>, transform_indices = @transform_3, window_bounds = array<i64: 16, 1>}, {pipeline_mode = #tpu.pipeline_mode<synchronous>, transform_indices = @transform_4, window_bounds = array<i64: 16, 1>}, {pipeline_mode = #tpu.pipeline_mode<synchronous>, transform_indices = @transform_5, window_bounds = array<i64: 16, 512>}, {pipeline_mode = #tpu.pipeline_mode<synchronous>, transform_indices = @transform_6, window_bounds = array<i64: 16, 512>}]} {
    %c0 = arith.constant 0 : index
    %c0_0 = arith.constant 0 : index
    %0 = vector.load %arg2[%c0, %c0_0] : memref<16x144xf32, #tpu.memory_space<vmem>>, vector<16x144xf32>
    %c0_1 = arith.constant 0 : index
    %c0_2 = arith.constant 0 : index
    %1 = vector.load %arg1[%c0_1, %c0_2] : memref<144x512xf32, #tpu.memory_space<vmem>>, vector<144x512xf32>
    %cst = arith.constant dense<0.000000e+00> : vector<16x512xf32>
    %2 = tpu.matmul %0, %1, %cst {dimension_numbers = #tpu.dot_dimension_numbers<[1], [0], [0], [1], [0, 0, 1, 1], [], []>} : vector<16x144xf32>, vector<144x512xf32>, vector<16x512xf32> -> vector<16x512xf32>
    %c0_3 = arith.constant 0 : index
    %c0_4 = arith.constant 0 : index
    %3 = vector.load %arg3[%c0_3, %c0_4] : memref<16x1xf32, #tpu.memory_space<vmem>>, vector<16x1xf32>
    %4 = vector.broadcast %3 : vector<16x1xf32> to vector<16x512xf32>
    %5 = arith.addf %2, %4 : vector<16x512xf32>
    %cst_5 = arith.constant dense<0.000000e+00> : vector<16xf32>
    %6 = vector.multi_reduction <add>, %5, %cst_5 [1] : vector<16x512xf32> to vector<16xf32>
    %7 = vector.shape_cast %6 : vector<16xf32> to vector<16x1xf32>
    %cst_6 = arith.constant 5.120000e+02 : f32
    %8 = vector.broadcast %cst_6 : f32 to vector<16x1xf32>
    %9 = arith.divf %7, %8 : vector<16x1xf32>
    %10 = vector.broadcast %9 : vector<16x1xf32> to vector<16x512xf32>
    %11 = arith.subf %5, %10 : vector<16x512xf32>
    %12 = arith.mulf %11, %11 : vector<16x512xf32>
    %cst_7 = arith.constant dense<0.000000e+00> : vector<16xf32>
    %13 = vector.multi_reduction <add>, %12, %cst_7 [1] : vector<16x512xf32> to vector<16xf32>
    %14 = vector.shape_cast %13 : vector<16xf32> to vector<16x1xf32>
    %cst_8 = arith.constant 5.120000e+02 : f32
    %15 = vector.broadcast %cst_8 : f32 to vector<16x1xf32>
    %16 = arith.divf %14, %15 : vector<16x1xf32>
    %17 = vector.broadcast %9 : vector<16x1xf32> to vector<16x512xf32>
    %18 = arith.subf %5, %17 : vector<16x512xf32>
    %cst_9 = arith.constant 9.99999974E-6 : f32
    %19 = vector.broadcast %cst_9 : f32 to vector<16x1xf32>
    %20 = arith.addf %16, %19 : vector<16x1xf32>
    %21 = math.rsqrt %20 : vector<16x1xf32>
    %22 = vector.broadcast %21 : vector<16x1xf32> to vector<16x512xf32>
    %23 = arith.mulf %18, %22 : vector<16x512xf32>
    %c0_10 = arith.constant 0 : index
    %c0_11 = arith.constant 0 : index
    %24 = vector.load %arg4[%c0_10, %c0_11] : memref<16x1xf32, #tpu.memory_space<vmem>>, vector<16x1xf32>
    %25 = vector.broadcast %24 : vector<16x1xf32> to vector<16x512xf32>
    %26 = arith.mulf %23, %25 : vector<16x512xf32>
    %c0_12 = arith.constant 0 : index
    %c0_13 = arith.constant 0 : index
    %27 = vector.load %arg5[%c0_12, %c0_13] : memref<16x1xf32, #tpu.memory_space<vmem>>, vector<16x1xf32>
    %28 = vector.broadcast %27 : vector<16x1xf32> to vector<16x512xf32>
    %29 = arith.addf %26, %28 : vector<16x512xf32>
    %c0_14 = arith.constant 0 : index
    %c0_15 = arith.constant 0 : index
    %30 = vector.load %arg6[%c0_14, %c0_15] : memref<16x512xf32, #tpu.memory_space<vmem>>, vector<16x512xf32>
    %31 = arith.addf %29, %30 : vector<16x512xf32>
    %c0_16 = arith.constant 0 : index
    %c0_17 = arith.constant 0 : index
    %32 = vector.load %arg7[%c0_16, %c0_17] : memref<16x512xf32, #tpu.memory_space<vmem>>, vector<16x512xf32>
    tpu.vector_store %arg7[%c0_16, %c0_17], %31 {strides = array<i32>} : memref<16x512xf32, #tpu.memory_space<vmem>>, vector<16x512xf32>,
    return
  }
  func.func @transform_0(%arg0: i32) -> (i32, i32) {
    %c0_i32 = arith.constant 0 : i32
    %c0_i32_0 = arith.constant 0 : i32
    %c0_i32_1 = arith.constant 0 : i32
    return %c0_i32, %c0_i32_0 : i32, i32
  }
  func.func @transform_1(%arg0: i32) -> (i32, i32) {
    %c0_i32 = arith.constant 0 : i32
    %c0_i32_0 = arith.constant 0 : i32
    %c0_i32_1 = arith.constant 0 : i32
    return %c0_i32, %c0_i32_0 : i32, i32
  }
  func.func @transform_2(%arg0: i32) -> (i32, i32) {
    %c0_i32 = arith.constant 0 : i32
    %c0_i32_0 = arith.constant 0 : i32
    %c0_i32_1 = arith.constant 0 : i32
    return %c0_i32, %c0_i32_0 : i32, i32
  }
  func.func @transform_3(%arg0: i32) -> (i32, i32) {
    %c0_i32 = arith.constant 0 : i32
    %c0_i32_0 = arith.constant 0 : i32
    %c0_i32_1 = arith.constant 0 : i32
    return %c0_i32, %c0_i32_0 : i32, i32
  }
  func.func @transform_4(%arg0: i32) -> (i32, i32) {
    %c0_i32 = arith.constant 0 : i32
    %c0_i32_0 = arith.constant 0 : i32
    %c0_i32_1 = arith.constant 0 : i32
    return %c0_i32, %c0_i32_0 : i32, i32
  }
  func.func @transform_5(%arg0: i32) -> (i32, i32) {
    %c0_i32 = arith.constant 0 : i32
    %c0_i32_0 = arith.constant 0 : i32
    %c0_i32_1 = arith.constant 0 : i32
    return %c0_i32, %c0_i32_0 : i32, i32
  }
  func.func @transform_6(%arg0: i32) -> (i32, i32) {
    %c0_i32 = arith.constant 0 : i32
    %c0_i32_0 = arith.constant 0 : i32
    %c0_i32_1 = arith.constant 0 : i32
    return %c0_i32, %c0_i32_0 : i32, i32
  }
}

module attributes {stable_mosaic.version = 11 : i64} {
  func.func @_resize_kernel(%arg0: i32, %arg1: memref<120x20xf32, #tpu.memory_space<vmem>>, %arg2: memref<20x16xf32, #tpu.memory_space<vmem>>, %arg3: memref<96x120xf32, #tpu.memory_space<vmem>>, %arg4: memref<96x16xf32, #tpu.memory_space<vmem>>) attributes {dimension_semantics = [#tpu.dimension_semantics<arbitrary>], iteration_bounds = array<i64: 1>, scalar_prefetch = 0 : i64, scratch_operands = 0 : i64, tpu.core_type = #tpu.core_type<tc>, window_params = [{pipeline_mode = #tpu.pipeline_mode<synchronous>, transform_indices = @transform_0, window_bounds = array<i64: 120, 20>}, {pipeline_mode = #tpu.pipeline_mode<synchronous>, transform_indices = @transform_1, window_bounds = array<i64: 20, 16>}, {pipeline_mode = #tpu.pipeline_mode<synchronous>, transform_indices = @transform_2, window_bounds = array<i64: 96, 120>}, {pipeline_mode = #tpu.pipeline_mode<synchronous>, transform_indices = @transform_3, window_bounds = array<i64: 96, 16>}]} {
    %c0 = arith.constant 0 : index
    %c0_0 = arith.constant 0 : index
    %0 = vector.load %arg1[%c0, %c0_0] : memref<120x20xf32, #tpu.memory_space<vmem>>, vector<120x20xf32>
    %c0_1 = arith.constant 0 : index
    %c0_2 = arith.constant 0 : index
    %1 = vector.load %arg2[%c0_1, %c0_2] : memref<20x16xf32, #tpu.memory_space<vmem>>, vector<20x16xf32>
    %cst = arith.constant dense<0.000000e+00> : vector<120x16xf32>
    %2 = tpu.matmul %0, %1, %cst {dimension_numbers = #tpu.dot_dimension_numbers<[1], [0], [0], [1], [0, 0, 1, 1], [], []>} : vector<120x20xf32>, vector<20x16xf32>, vector<120x16xf32> -> vector<120x16xf32>
    %c0_3 = arith.constant 0 : index
    %c0_4 = arith.constant 0 : index
    %3 = vector.load %arg3[%c0_3, %c0_4] : memref<96x120xf32, #tpu.memory_space<vmem>>, vector<96x120xf32>
    %cst_5 = arith.constant dense<0.000000e+00> : vector<96x16xf32>
    %4 = tpu.matmul %3, %2, %cst_5 {dimension_numbers = #tpu.dot_dimension_numbers<[1], [0], [0], [1], [0, 0, 1, 1], [], []>} : vector<96x120xf32>, vector<120x16xf32>, vector<96x16xf32> -> vector<96x16xf32>
    %c0_6 = arith.constant 0 : index
    %c0_7 = arith.constant 0 : index
    %5 = vector.load %arg4[%c0_6, %c0_7] : memref<96x16xf32, #tpu.memory_space<vmem>>, vector<96x16xf32>
    tpu.vector_store %arg4[%c0_6, %c0_7], %4 {strides = array<i32>} : memref<96x16xf32, #tpu.memory_space<vmem>>, vector<96x16xf32>,
    return
  }
  func.func @transform_0(%arg0: i32) -> (i32, i32) {
    %c0_i32 = arith.constant 0 : i32
    %c0_i32_0 = arith.constant 0 : i32
    %c0_i32_1 = arith.constant 0 : i32
    return %c0_i32, %c0_i32_0 : i32, i32
  }
  func.func @transform_1(%arg0: i32) -> (i32, i32) {
    %c0_i32 = arith.constant 0 : i32
    %c0_i32_0 = arith.constant 0 : i32
    %c0_i32_1 = arith.constant 0 : i32
    return %c0_i32, %c0_i32_0 : i32, i32
  }
  func.func @transform_2(%arg0: i32) -> (i32, i32) {
    %c0_i32 = arith.constant 0 : i32
    %c0_i32_0 = arith.constant 0 : i32
    %c0_i32_1 = arith.constant 0 : i32
    return %c0_i32, %c0_i32_0 : i32, i32
  }
  func.func @transform_3(%arg0: i32) -> (i32, i32) {
    %c0_i32 = arith.constant 0 : i32
    %c0_i32_0 = arith.constant 0 : i32
    %c0_i32_1 = arith.constant 0 : i32
    return %c0_i32, %c0_i32_0 : i32, i32
  }
}

module attributes {stable_mosaic.version = 11 : i64} {
  func.func @_fused_conv_kernel(%arg0: i32, %arg1: memref<784x512xf32, #tpu.memory_space<vmem>>, %arg2: memref<3x784xf32, #tpu.memory_space<vmem>>, %arg3: memref<3x1xf32, #tpu.memory_space<vmem>>, %arg4: memref<3x512xf32, #tpu.memory_space<vmem>>, %arg5: memref<3x512xf32, #tpu.memory_space<vmem>>) attributes {dimension_semantics = [#tpu.dimension_semantics<arbitrary>], iteration_bounds = array<i64: 1>, scalar_prefetch = 0 : i64, scratch_operands = 0 : i64, tpu.core_type = #tpu.core_type<tc>, window_params = [{pipeline_mode = #tpu.pipeline_mode<synchronous>, transform_indices = @transform_0, window_bounds = array<i64: 784, 512>}, {pipeline_mode = #tpu.pipeline_mode<synchronous>, transform_indices = @transform_1, window_bounds = array<i64: 3, 784>}, {pipeline_mode = #tpu.pipeline_mode<synchronous>, transform_indices = @transform_2, window_bounds = array<i64: 3, 1>}, {pipeline_mode = #tpu.pipeline_mode<synchronous>, transform_indices = @transform_3, window_bounds = array<i64: 3, 512>}, {pipeline_mode = #tpu.pipeline_mode<synchronous>, transform_indices = @transform_4, window_bounds = array<i64: 3, 512>}]} {
    %c0 = arith.constant 0 : index
    %c0_0 = arith.constant 0 : index
    %0 = vector.load %arg2[%c0, %c0_0] : memref<3x784xf32, #tpu.memory_space<vmem>>, vector<3x784xf32>
    %c0_1 = arith.constant 0 : index
    %c0_2 = arith.constant 0 : index
    %1 = vector.load %arg1[%c0_1, %c0_2] : memref<784x512xf32, #tpu.memory_space<vmem>>, vector<784x512xf32>
    %cst = arith.constant dense<0.000000e+00> : vector<3x512xf32>
    %2 = tpu.matmul %0, %1, %cst {dimension_numbers = #tpu.dot_dimension_numbers<[1], [0], [0], [1], [0, 0, 1, 1], [], []>} : vector<3x784xf32>, vector<784x512xf32>, vector<3x512xf32> -> vector<3x512xf32>
    %c0_3 = arith.constant 0 : index
    %c0_4 = arith.constant 0 : index
    %3 = vector.load %arg3[%c0_3, %c0_4] : memref<3x1xf32, #tpu.memory_space<vmem>>, vector<3x1xf32>
    %4 = vector.broadcast %3 : vector<3x1xf32> to vector<3x512xf32>
    %5 = arith.addf %2, %4 : vector<3x512xf32>
    %c0_5 = arith.constant 0 : index
    %c0_6 = arith.constant 0 : index
    %6 = vector.load %arg4[%c0_5, %c0_6] : memref<3x512xf32, #tpu.memory_space<vmem>>, vector<3x512xf32>
    %7 = arith.addf %5, %6 : vector<3x512xf32>
    %c0_7 = arith.constant 0 : index
    %c0_8 = arith.constant 0 : index
    %8 = vector.load %arg5[%c0_7, %c0_8] : memref<3x512xf32, #tpu.memory_space<vmem>>, vector<3x512xf32>
    tpu.vector_store %arg5[%c0_7, %c0_8], %7 {strides = array<i32>} : memref<3x512xf32, #tpu.memory_space<vmem>>, vector<3x512xf32>,
    return
  }
  func.func @transform_0(%arg0: i32) -> (i32, i32) {
    %c0_i32 = arith.constant 0 : i32
    %c0_i32_0 = arith.constant 0 : i32
    %c0_i32_1 = arith.constant 0 : i32
    return %c0_i32, %c0_i32_0 : i32, i32
  }
  func.func @transform_1(%arg0: i32) -> (i32, i32) {
    %c0_i32 = arith.constant 0 : i32
    %c0_i32_0 = arith.constant 0 : i32
    %c0_i32_1 = arith.constant 0 : i32
    return %c0_i32, %c0_i32_0 : i32, i32
  }
  func.func @transform_2(%arg0: i32) -> (i32, i32) {
    %c0_i32 = arith.constant 0 : i32
    %c0_i32_0 = arith.constant 0 : i32
    %c0_i32_1 = arith.constant 0 : i32
    return %c0_i32, %c0_i32_0 : i32, i32
  }
  func.func @transform_3(%arg0: i32) -> (i32, i32) {
    %c0_i32 = arith.constant 0 : i32
    %c0_i32_0 = arith.constant 0 : i32
    %c0_i32_1 = arith.constant 0 : i32
    return %c0_i32, %c0_i32_0 : i32, i32
  }
  func.func @transform_4(%arg0: i32) -> (i32, i32) {
    %c0_i32 = arith.constant 0 : i32
    %c0_i32_0 = arith.constant 0 : i32
    %c0_i32_1 = arith.constant 0 : i32
    return %c0_i32, %c0_i32_0 : i32, i32
  }
}

</mosaic_0001>

<bundles_post_ra>
// kernel: learn_to_resize.8
= control target key start
LH: loop header
LB: loop body
LE: loop exit
PB: predicated region body
PF: predicated region fallthrough
CT: control target
= control target key end

     0   :  { %v327_v3 = vmov 0   ;;  %vm113_vm0 = vcmask 1042432   ;;  %vm106_vm1 = vcmask 154624   ;;  %vm307_vm4 = vcmask 64512   ;;  %s628_s0 = inlined_call_operand.vmem [shape: f32[147,392], index: 0, kind: input, shape index: {}]   ;;  %s629_s1 = inlined_call_operand.vmem [shape: f32[16,147], index: 1, kind: input, shape index: {}]   ;;  %s630_s2 = inlined_call_operand.vmem [shape: f32[16,1], index: 2, kind: input, shape index: {}]   ;;  %s631_s3 = inlined_call_operand.vmem [shape: f32[16,392], index: 3, kind: output, shape index: {}]  }
   0x1   :  { %v79_v0 = vld [vmem:[%s628_s0 + $0x1e8] sm:$0xff]  ;;  %v81_v1 = vld [vmem:[%s628_s0 + $0x1f8] sm:$0xff]  ;;  %v78_v2 = vld [vmem:[%s628_s0 + $0x1e0] sm:$0xff]  ;;  %326 = vset.pattern.permute.xlu0 %v327_v3 }
   0x2   :  { %126 = vmatprep.subr.mxu0 %v79_v0  ;;  %203 = vmatprep.subr.mxu1 %v81_v1  ;;  %v80_v4 = vld [vmem:[%s628_s0 + $0x1f0] sm:$0xff]  ;;  %v75_v5 = vld [vmem:[%s628_s0 + $0x1c8] sm:$0xff]  ;;  %v77_v6 = vld [vmem:[%s628_s0 + $0x1d8] sm:$0xff] }
   0x3   :  { %127 = vmatpush1.msra.mxu0 %v78_v2  ;;  %204 = vmatpush1.msra.mxu1 %v80_v4  ;;  %v74_v7 = vld [vmem:[%s628_s0 + $0x1c0] sm:$0xff]  ;;  %v76_v8 = vld [vmem:[%s628_s0 + $0x1d0] sm:$0xff]  ;;  %v71_v9 = vld [vmem:[%s628_s0 + $0x1a8] sm:$0xff] }
   0x4   :  { %128 = vmatprep.subr.mxu0 %v75_v5  ;;  %205 = vmatprep.subr.mxu1 %v77_v6  ;;  %v73_v10 = vld [vmem:[%s628_s0 + $0x1b8] sm:$0xff]  ;;  %v70_v11 = vld [vmem:[%s628_s0 + $0x1a0] sm:$0xff]  ;;  %v72_v12 = vld [vmem:[%s628_s0 + $0x1b0] sm:$0xff] }
   0x5   :  { %129 = vmatpush1.msra.mxu0 %v74_v7  ;;  %206 = vmatpush1.msra.mxu1 %v76_v8  ;;  %v67_v13 = vld [vmem:[%s628_s0 + $0x188] sm:$0xff]  ;;  %v69_v14 = vld [vmem:[%s628_s0 + $0x198] sm:$0xff]  ;;  %v66_v15 = vld [vmem:[%s628_s0 + $0x180] sm:$0xff] }
   0x6   :  { %130 = vmatprep.subr.mxu0 %v71_v9  ;;  %207 = vmatprep.subr.mxu1 %v73_v10  ;;  %v68_v16 = vld [vmem:[%s628_s0 + $0x190] sm:$0xff]  ;;  %v63_v17 = vld [vmem:[%s628_s0 + $0x168] sm:$0xff]  ;;  %v65_v18 = vld [vmem:[%s628_s0 + $0x178] sm:$0xff] }
   0x7   :  { %131 = vmatpush1.msra.mxu0 %v70_v11  ;;  %208 = vmatpush1.msra.mxu1 %v72_v12  ;;  %v62_v19 = vld [vmem:[%s628_s0 + $0x160] sm:$0xff]  ;;  %v64_v20 = vld [vmem:[%s628_s0 + $0x170] sm:$0xff]  ;;  %v59_v21 = vld [vmem:[%s628_s0 + $0x148] sm:$0xff] }
   0x8   :  { %132 = vmatprep.subr.mxu0 %v67_v13  ;;  %209 = vmatprep.subr.mxu1 %v69_v14  ;;  %v61_v22 = vld [vmem:[%s628_s0 + $0x158] sm:$0xff]  ;;  %v58_v23 = vld [vmem:[%s628_s0 + $0x140] sm:$0xff]  ;;  %v60_v24 = vld [vmem:[%s628_s0 + $0x150] sm:$0xff] }
   0x9   :  { %133 = vmatpush1.msra.mxu0 %v66_v15  ;;  %210 = vmatpush1.msra.mxu1 %v68_v16  ;;  %v55_v25 = vld [vmem:[%s628_s0 + $0x128] sm:$0xff]  ;;  %v57_v26 = vld [vmem:[%s628_s0 + $0x138] sm:$0xff]  ;;  %v54_v27 = vld [vmem:[%s628_s0 + $0x120] sm:$0xff] }
   0xa   :  { %134 = vmatprep.subr.mxu0 %v63_v17  ;;  %211 = vmatprep.subr.mxu1 %v65_v18  ;;  %v56_v28 = vld [vmem:[%s628_s0 + $0x130] sm:$0xff]  ;;  %v51_v29 = vld [vmem:[%s628_s0 + $0x108] sm:$0xff]  ;;  %v53_v30 = vld [vmem:[%s628_s0 + $0x118] sm:$0xff] }
   0xb   :  { %135 = vmatpush1.msra.mxu0 %v62_v19  ;;  %212 = vmatpush1.msra.mxu1 %v64_v20  ;;  %v50_v31 = vld [vmem:[%s628_s0 + $0x100] sm:$0xff]  ;;  %v52_v32 = vld [vmem:[%s628_s0 + $0x110] sm:$0xff]  ;;  %v47_v33 = vld [vmem:[%s628_s0 + $0xe8] sm:$0xff] }
   0xc   :  { %136 = vmatprep.subr.mxu0 %v59_v21  ;;  %213 = vmatprep.subr.mxu1 %v61_v22  ;;  %v49_v34 = vld [vmem:[%s628_s0 + $0xf8] sm:$0xff]  ;;  %v46_v35 = vld [vmem:[%s628_s0 + $0xe0] sm:$0xff]  ;;  %v48_v36 = vld [vmem:[%s628_s0 + $0xf0] sm:$0xff] }
   0xd   :  { %137 = vmatpush1.msra.mxu0 %v58_v23  ;;  %214 = vmatpush1.msra.mxu1 %v60_v24  ;;  %v43_v37 = vld [vmem:[%s628_s0 + $0xc8] sm:$0xff]  ;;  %v45_v38 = vld [vmem:[%s628_s0 + $0xd8] sm:$0xff]  ;;  %v42_v39 = vld [vmem:[%s628_s0 + $0xc0] sm:$0xff] }
   0xe   :  { %138 = vmatprep.subr.mxu0 %v55_v25  ;;  %215 = vmatprep.subr.mxu1 %v57_v26  ;;  %v44_v40 = vld [vmem:[%s628_s0 + $0xd0] sm:$0xff]  ;;  %v39_v41 = vld [vmem:[%s628_s0 + $0xa8] sm:$0xff]  ;;  %v41_v42 = vld [vmem:[%s628_s0 + $0xb8] sm:$0xff] }
   0xf   :  { %139 = vmatpush1.msra.mxu0 %v54_v27  ;;  %216 = vmatpush1.msra.mxu1 %v56_v28  ;;  %v38_v43 = vld [vmem:[%s628_s0 + $0xa0] sm:$0xff]  ;;  %v40_v44 = vld [vmem:[%s628_s0 + $0xb0] sm:$0xff]  ;;  %v35_v45 = vld [vmem:[%s628_s0 + $0x88] sm:$0xff] }
  0x10   :  { %140 = vmatprep.subr.mxu0 %v51_v29  ;;  %217 = vmatprep.subr.mxu1 %v53_v30  ;;  %v37_v46 = vld [vmem:[%s628_s0 + $0x98] sm:$0xff]  ;;  %v34_v47 = vld [vmem:[%s628_s0 + $0x80] sm:$0xff]  ;;  %v36_v48 = vld [vmem:[%s628_s0 + $0x90] sm:$0xff] }
  0x11   :  { %141 = vmatpush1.msra.mxu0 %v50_v31  ;;  %218 = vmatpush1.msra.mxu1 %v52_v32  ;;  %v31_v49 = vld [vmem:[%s628_s0 + $0x68] sm:$0xff]  ;;  %v33_v50 = vld [vmem:[%s628_s0 + $0x78] sm:$0xff]  ;;  %v30_v51 = vld [vmem:[%s628_s0 + $0x60] sm:$0xff] }
  0x12   :  { %142 = vmatprep.subr.mxu0 %v47_v33  ;;  %219 = vmatprep.subr.mxu1 %v49_v34  ;;  %v32_v52 = vld [vmem:[%s628_s0 + $0x70] sm:$0xff]  ;;  %v27_v53 = vld [vmem:[%s628_s0 + $0x48] sm:$0xff]  ;;  %v29_v54 = vld [vmem:[%s628_s0 + $0x58] sm:$0xff] }
  0x13   :  { %143 = vmatpush1.msra.mxu0 %v46_v35  ;;  %220 = vmatpush1.msra.mxu1 %v48_v36  ;;  %v26_v55 = vld [vmem:[%s628_s0 + $0x40] sm:$0xff]  ;;  %v28_v56 = vld [vmem:[%s628_s0 + $0x50] sm:$0xff]  ;;  %v23_v57 = vld [vmem:[%s628_s0 + $0x28] sm:$0xff] }
  0x14   :  { %144 = vmatprep.subr.mxu0 %v43_v37  ;;  %221 = vmatprep.subr.mxu1 %v45_v38  ;;  %v25_v58 = vld [vmem:[%s628_s0 + $0x38] sm:$0xff]  ;;  %v22_v59 = vld [vmem:[%s628_s0 + $0x20] sm:$0xff]  ;;  %v24_v60 = vld [vmem:[%s628_s0 + $0x30] sm:$0xff] }
  0x15   :  { %145 = vmatpush1.msra.mxu0 %v42_v39  ;;  %222 = vmatpush1.msra.mxu1 %v44_v40  ;;  %v19_v61 = vld [vmem:[%s628_s0 + $0x8] sm:$0xff]  ;;  %v21_v62 = vld [vmem:[%s628_s0 + $0x18] sm:$0xff]  ;;  %v18_v63 = vld [vmem:[%s628_s0] sm:$0xff] }
  0x16   :  { %146 = vmatprep.subr.mxu0 %v39_v41  ;;  %223 = vmatprep.subr.mxu1 %v41_v42  ;;  %v20_v0 = vld [vmem:[%s628_s0 + $0x10] sm:$0xff]  ;;  %v91_v1 = vld [vmem:[%s628_s0 + $0x248] sm:$0x7]  ;;  %v93_v2 = vld [vmem:[%s628_s0 + $0x258] sm:$0x7] }
  0x17   :  { %147 = vmatpush1.msra.mxu0 %v38_v43  ;;  %224 = vmatpush1.msra.mxu1 %v40_v44  ;;  %v90_v3 = vld [vmem:[%s628_s0 + $0x240] sm:$0x7]  ;;  %v92_v4 = vld [vmem:[%s628_s0 + $0x250] sm:$0x7]  ;;  %v87_v5 = vld [vmem:[%s628_s0 + $0x228] sm:$0xff] }
  0x18   :  { %148 = vmatprep.subr.mxu0 %v35_v45  ;;  %225 = vmatprep.subr.mxu1 %v37_v46  ;;  %v89_v6 = vld [vmem:[%s628_s0 + $0x238] sm:$0xff]  ;;  %v86_v7 = vld [vmem:[%s628_s0 + $0x220] sm:$0xff]  ;;  %v88_v8 = vld [vmem:[%s628_s0 + $0x230] sm:$0xff] }
  0x19   :  { %149 = vmatpush1.msra.mxu0 %v34_v47  ;;  %226 = vmatpush1.msra.mxu1 %v36_v48  ;;  %v83_v9 = vld [vmem:[%s628_s0 + $0x208] sm:$0xff]  ;;  %v85_v10 = vld [vmem:[%s628_s0 + $0x218] sm:$0xff]  ;;  %v82_v11 = vld [vmem:[%s628_s0 + $0x200] sm:$0xff] }
  0x1a   :  { %150 = vmatprep.subr.mxu0 %v31_v49  ;;  %227 = vmatprep.subr.mxu1 %v33_v50  ;;  %v15_v12 = vld [vmem:[%s629_s1 + $0x8] sm:$0xff]  ;;  %v84_v13 = vld [vmem:[%s628_s0 + $0x210] sm:$0xff]  ;;  %v14_v14 = vld [vmem:[%s629_s1] sm:$0xff] }
  0x1b   :  { %151 = vmatpush1.msra.mxu0 %v30_v51  ;;  %228 = vmatpush1.msra.mxu1 %v32_v52  ;;  %v17_v15 = vld [vmem:[%s629_s1 + $0x18] sm:$0xff]  ;;  %v94_v16 = vld [vmem:[%s630_s2] sm:$0xff]  ;;  %v16_v17 = vld [vmem:[%s629_s1 + $0x10] sm:$0xff] }
  0x1c   :  { %152 = vmatprep.subr.mxu0 %v27_v53  ;;  %229 = vmatprep.subr.mxu1 %v29_v54  ;;  %v95_v18 = vld [vmem:[%s630_s2 + $0x8] sm:$0xff] }
  0x1d   :  { %153 = vmatpush1.msra.mxu0 %v26_v55  ;;  %230 = vmatpush1.msra.mxu1 %v28_v56 }
  0x1e   :  { %154 = vmatprep.subr.mxu0 %v23_v57  ;;  %231 = vmatprep.subr.mxu1 %v25_v58 }
  0x1f   :  { %155 = vmatpush1.msra.mxu0 %v22_v59  ;;  %232 = vmatpush1.msra.mxu1 %v24_v60 }
  0x20   :  { %156 = vmatprep.subr.mxu0 %v19_v61  ;;  %233 = vmatprep.subr.mxu1 %v21_v62 }
  0x21   :  { %157 = vmatpush1.msra.mxu0 %v18_v63  ;;  %234 = vmatpush1.msra.mxu1 %v20_v0 }
  0x22   :  { %317 = vmatprep.subr.msk.mxu0 %vm113_vm0, %v91_v1  ;;  %321 = vmatprep.subr.msk.mxu1 %vm113_vm0, %v93_v2 }
  0x23   :  { %318 = vmatpush2.msk.msra.mxu0 %vm113_vm0, %v90_v3  ;;  %322 = vmatpush2.msk.msra.mxu1 %vm113_vm0, %v92_v4 }
  0x24   :  { %186 = vmatprep.subr.mxu0 %v87_v5  ;;  %263 = vmatprep.subr.mxu1 %v89_v6 }
  0x25   :  { %187 = vmatpush2.msra.mxu0 %v86_v7  ;;  %264 = vmatpush2.msra.mxu1 %v88_v8 }
  0x26   :  { %188 = vmatprep.subr.mxu0 %v83_v9  ;;  %265 = vmatprep.subr.mxu1 %v85_v10 }
  0x27   :  { %189 = vmatpush2.msra.mxu0 %v82_v11  ;;  %319 = vmatprep.mubr.msk.f32.mxu0 %vm106_vm1, %v15_v12 }
  0x28   :  { %266 = vmatpush2.msra.mxu1 %v84_v13  ;;  %323 = vmatprep.mubr.msk.f32.mxu1 %vm106_vm1, %v15_v12 }
  0x29   :  { %191 = vmatmul.mubr.f32.vlgmr.msra.gmra.mxu0 %v14_v14  ;;  %268 = vmatmul.mubr.f32.vlgmr.msra.gmra.mxu1 %v14_v14 }
  0x2a   :  { %320 = vmatprep.mubr.msk.f32.mxu0 %vm106_vm1, %v17_v15  ;;  %324 = vmatprep.mubr.msk.f32.mxu1 %vm106_vm1, %v17_v15 }
  0x2b   :  { %98 = vperm.xlu0 %326, %v94_v16  }
  0x2d   :  { %197 = vmatmul.mubr.f32.gmra.mxu0 %v16_v17  ;;  %274 = vmatmul.mubr.f32.gmra.mxu1 %v16_v17 }
  0x2f   :  { %103 = vperm.xlu0 %326, %v95_v18  }
  0xa6   :  { %v99_v19 = vpop.permute.xlu0 %98 }
  0xaa   :  { %v104_v28 = vpop.permute.xlu0 %103 }
  0xe9   :  { %v192_v20 = vpop.f32.mrf.mxu0  ;;  %v269_v21 = vpop.f32.mrf.mxu1 }
  0xea   :  { %v193_v22 = vadd.f32 %v192_v20, %v99_v19  ;;  %v270_v23 = vadd.f32 %v269_v21, %v99_v19 }
  0xeb   :  { %v194_v24 = vpop.f32.mrf.mxu0  ;;  %v271_v25 = vpop.f32.mrf.mxu1 }
  0xec   :  { %vm280_vm2 = vcmp.gt.f32.partialorder %v193_v22, 0.0  ;;  %v288_v26 = vmul.f32 0.2, %v193_v22  ;;  %vm282_vm3 = vcmp.gt.f32.partialorder %v270_v23, 0.0  ;;  %v290_v27 = vmul.f32 0.2, %v270_v23 }
  0xed   :  { %v195_v29 = vadd.f32 %v194_v24, %v99_v19  ;;  %v272_v30 = vadd.f32 %v271_v25, %v99_v19  ;;  %v198_v31 = vpop.f32.mrf.mxu0  ;;  %v275_v32 = vpop.f32.mrf.mxu1 }
  0xee   :  { %v296_v33 = vsel %vm280_vm2, %v193_v22, %v288_v26  ;;  %v298_v34 = vsel %vm282_vm3, %v270_v23, %v290_v27  ;;  %v199_v35 = vadd.f32 %v198_v31, %v104_v28  ;;  %v276_v36 = vadd.f32 %v275_v32, %v104_v28 }
  0xef   :  { %304 = vst [vmem:[%s631_s3] sm:$0xff] %v296_v33  ;;  %306 = vst [vmem:[%s631_s3 + $0x10] sm:$0xff] %v298_v34  ;;  %vm281_vm5 = vcmp.gt.f32.partialorder %v195_v29, 0.0  ;;  %v289_v37 = vmul.f32 0.2, %v195_v29  ;;  %vm283_vm6 = vcmp.gt.f32.partialorder %v272_v30, 0.0  ;;  %v200_v39 = vpop.f32.mrf.mxu0  ;;  %v277_v40 = vpop.f32.mrf.mxu1 }
  0xf0   :  { %v291_v38 = vmul.f32 0.2, %v272_v30  ;;  %vm284_vm7 = vcmp.gt.f32.partialorder %v199_v35, 0.0  ;;  %v292_v41 = vmul.f32 0.2, %v199_v35  ;;  %vm286_vm8 = vcmp.gt.f32.partialorder %v276_v36, 0.0 }
  0xf1   :  { %v294_v42 = vmul.f32 0.2, %v276_v36  ;;  %v297_v43 = vsel %vm281_vm5, %v195_v29, %v289_v37  ;;  %v201_v45 = vadd.f32 %v200_v39, %v104_v28  ;;  %v278_v46 = vadd.f32 %v277_v40, %v104_v28 }
  0xf2   :  { %v299_v44 = vsel %vm283_vm6, %v272_v30, %v291_v38  ;;  %305 = vst [vmem:[%s631_s3 + $0x8] sm:$0xff] %v297_v43  ;;  %v300_v47 = vsel %vm284_vm7, %v199_v35, %v292_v41 }
  0xf3   :  { %308 = vst.msk [vmem:[%s631_s3 + $0x18] sm:$0xff] %vm307_vm4, %v299_v44  ;;  %v302_v48 = vsel %vm286_vm8, %v276_v36, %v294_v42  ;;  %309 = vst [vmem:[%s631_s3 + $0x20] sm:$0xff] %v300_v47  ;;  %vm285_vm9 = vcmp.gt.f32.partialorder %v201_v45, 0.0  ;;  %v293_v49 = vmul.f32 0.2, %v201_v45  ;;  %vm287_vm10 = vcmp.gt.f32.partialorder %v278_v46, 0.0 }
  0xf4   :  { %311 = vst [vmem:[%s631_s3 + $0x30] sm:$0xff] %v302_v48  ;;  %v295_v50 = vmul.f32 0.2, %v278_v46 }
  0xf5   :  { %v301_v51 = vsel %vm285_vm9, %v201_v45, %v293_v49 }
  0xf6   :  { %v303_v52 = vsel %vm287_vm10, %v278_v46, %v295_v50  ;;  %310 = vst [vmem:[%s631_s3 + $0x28] sm:$0xff] %v301_v51 }
  0xf7   :  { %312 = vst.msk [vmem:[%s631_s3 + $0x38] sm:$0xff] %vm307_vm4, %v303_v52 }

// kernel: learn_to_resize.9
= control target key start
LH: loop header
LB: loop body
LE: loop exit
PB: predicated region body
PF: predicated region fallthrough
CT: control target
= control target key end

     0   :  { %v373_v0 = vmov 0.0   ;;  %v374_v4 = vmov 0   ;;  %vm90_vm0 = vcmask 130048   ;;  %vm268_vm4 = vcmask 261120   ;;  %s645_s0 = inlined_call_operand.vmem [shape: f32[144,288], index: 0, kind: input, shape index: {}]   ;;  %s646_s1 = inlined_call_operand.vmem [shape: f32[16,144], index: 1, kind: input, shape index: {}]   ;;  %s647_s2 = inlined_call_operand.vmem [shape: f32[16,1], index: 2, kind: input, shape index: {}]   ;;  %s648_s3 = inlined_call_operand.vmem [shape: f32[16,1], index: 3, kind: input, shape index: {}]   ;;  %s649_s4 = inlined_call_operand.vmem [shape: f32[16,1], index: 4, kind: input, shape index: {}]   ;;  %s650_s5 = inlined_call_operand.vmem [shape: f32[16,288], index: 5, kind: output, shape index: {}]  }
   0x1   :  { %174 = vmatprep.subr.mxu1 %v373_v0  ;;  %v70_v1 = vld [vmem:[%s645_s0 + $0x170] sm:$0xff]  ;;  %v71_v2 = vld [vmem:[%s645_s0 + $0x178] sm:$0xff]  ;;  %v69_v3 = vld [vmem:[%s645_s0 + $0x168] sm:$0xff]  ;;  %367 = vset.pattern.permute.xlu0 %v374_v4 }
   0x2   :  { %97 = vmatprep.subr.mxu0 %v70_v1  ;;  %175 = vmatpush1.msra.mxu1 %v71_v2  ;;  %v67_v5 = vld [vmem:[%s645_s0 + $0x158] sm:$0xff]  ;;  %v68_v6 = vld [vmem:[%s645_s0 + $0x160] sm:$0xff]  ;;  %v66_v7 = vld [vmem:[%s645_s0 + $0x150] sm:$0xff] }
   0x3   :  { %98 = vmatpush1.msra.mxu0 %v69_v3  ;;  %176 = vmatprep.subr.mxu1 %v373_v0  ;;  %v64_v8 = vld [vmem:[%s645_s0 + $0x140] sm:$0xff]  ;;  %v65_v9 = vld [vmem:[%s645_s0 + $0x148] sm:$0xff]  ;;  %v63_v10 = vld [vmem:[%s645_s0 + $0x138] sm:$0xff] }
   0x4   :  { %99 = vmatprep.subr.mxu0 %v67_v5  ;;  %177 = vmatpush1.msra.mxu1 %v68_v6  ;;  %v61_v11 = vld [vmem:[%s645_s0 + $0x128] sm:$0xff]  ;;  %v62_v12 = vld [vmem:[%s645_s0 + $0x130] sm:$0xff]  ;;  %v60_v13 = vld [vmem:[%s645_s0 + $0x120] sm:$0xff] }
   0x5   :  { %100 = vmatpush1.msra.mxu0 %v66_v7  ;;  %178 = vmatprep.subr.mxu1 %v373_v0  ;;  %v58_v14 = vld [vmem:[%s645_s0 + $0x110] sm:$0xff]  ;;  %v59_v15 = vld [vmem:[%s645_s0 + $0x118] sm:$0xff]  ;;  %v57_v16 = vld [vmem:[%s645_s0 + $0x108] sm:$0xff] }
   0x6   :  { %101 = vmatprep.subr.mxu0 %v64_v8  ;;  %179 = vmatpush1.msra.mxu1 %v65_v9  ;;  %v55_v17 = vld [vmem:[%s645_s0 + $0xf8] sm:$0xff]  ;;  %v56_v18 = vld [vmem:[%s645_s0 + $0x100] sm:$0xff]  ;;  %v54_v19 = vld [vmem:[%s645_s0 + $0xf0] sm:$0xff] }
   0x7   :  { %102 = vmatpush1.msra.mxu0 %v63_v10  ;;  %180 = vmatprep.subr.mxu1 %v373_v0  ;;  %v52_v20 = vld [vmem:[%s645_s0 + $0xe0] sm:$0xff]  ;;  %v53_v21 = vld [vmem:[%s645_s0 + $0xe8] sm:$0xff]  ;;  %v51_v22 = vld [vmem:[%s645_s0 + $0xd8] sm:$0xff] }
   0x8   :  { %103 = vmatprep.subr.mxu0 %v61_v11  ;;  %181 = vmatpush1.msra.mxu1 %v62_v12  ;;  %v49_v23 = vld [vmem:[%s645_s0 + $0xc8] sm:$0xff]  ;;  %v50_v24 = vld [vmem:[%s645_s0 + $0xd0] sm:$0xff]  ;;  %v48_v25 = vld [vmem:[%s645_s0 + $0xc0] sm:$0xff] }
   0x9   :  { %104 = vmatpush1.msra.mxu0 %v60_v13  ;;  %182 = vmatprep.subr.mxu1 %v373_v0  ;;  %v46_v26 = vld [vmem:[%s645_s0 + $0xb0] sm:$0xff]  ;;  %v47_v27 = vld [vmem:[%s645_s0 + $0xb8] sm:$0xff]  ;;  %v45_v28 = vld [vmem:[%s645_s0 + $0xa8] sm:$0xff] }
   0xa   :  { %105 = vmatprep.subr.mxu0 %v58_v14  ;;  %183 = vmatpush1.msra.mxu1 %v59_v15  ;;  %v43_v29 = vld [vmem:[%s645_s0 + $0x98] sm:$0xff]  ;;  %v44_v30 = vld [vmem:[%s645_s0 + $0xa0] sm:$0xff]  ;;  %v42_v31 = vld [vmem:[%s645_s0 + $0x90] sm:$0xff] }
   0xb   :  { %106 = vmatpush1.msra.mxu0 %v57_v16  ;;  %184 = vmatprep.subr.mxu1 %v373_v0  ;;  %v40_v32 = vld [vmem:[%s645_s0 + $0x80] sm:$0xff]  ;;  %v41_v33 = vld [vmem:[%s645_s0 + $0x88] sm:$0xff]  ;;  %v39_v34 = vld [vmem:[%s645_s0 + $0x78] sm:$0xff] }
   0xc   :  { %107 = vmatprep.subr.mxu0 %v55_v17  ;;  %185 = vmatpush1.msra.mxu1 %v56_v18  ;;  %v37_v35 = vld [vmem:[%s645_s0 + $0x68] sm:$0xff]  ;;  %v38_v36 = vld [vmem:[%s645_s0 + $0x70] sm:$0xff]  ;;  %v36_v37 = vld [vmem:[%s645_s0 + $0x60] sm:$0xff] }
   0xd   :  { %108 = vmatpush1.msra.mxu0 %v54_v19  ;;  %186 = vmatprep.subr.mxu1 %v373_v0  ;;  %v34_v38 = vld [vmem:[%s645_s0 + $0x50] sm:$0xff]  ;;  %v35_v39 = vld [vmem:[%s645_s0 + $0x58] sm:$0xff]  ;;  %v33_v40 = vld [vmem:[%s645_s0 + $0x48] sm:$0xff] }
   0xe   :  { %109 = vmatprep.subr.mxu0 %v52_v20  ;;  %187 = vmatpush1.msra.mxu1 %v53_v21  ;;  %v31_v41 = vld [vmem:[%s645_s0 + $0x38] sm:$0xff]  ;;  %v32_v42 = vld [vmem:[%s645_s0 + $0x40] sm:$0xff]  ;;  %v30_v43 = vld [vmem:[%s645_s0 + $0x30] sm:$0xff] }
   0xf   :  { %110 = vmatpush1.msra.mxu0 %v51_v22  ;;  %188 = vmatprep.subr.mxu1 %v373_v0  ;;  %v28_v44 = vld [vmem:[%s645_s0 + $0x20] sm:$0xff]  ;;  %v29_v45 = vld [vmem:[%s645_s0 + $0x28] sm:$0xff]  ;;  %v27_v46 = vld [vmem:[%s645_s0 + $0x18] sm:$0xff] }
  0x10   :  { %111 = vmatprep.subr.mxu0 %v49_v23  ;;  %189 = vmatpush1.msra.mxu1 %v50_v24  ;;  %v25_v47 = vld [vmem:[%s645_s0 + $0x8] sm:$0xff]  ;;  %v26_v48 = vld [vmem:[%s645_s0 + $0x10] sm:$0xff]  ;;  %v24_v49 = vld [vmem:[%s645_s0] sm:$0xff] }
  0x11   :  { %112 = vmatpush1.msra.mxu0 %v48_v25  ;;  %190 = vmatprep.subr.mxu1 %v373_v0  ;;  %v76_v50 = vld [vmem:[%s645_s0 + $0x1a0] sm:$0xff]  ;;  %v77_v51 = vld [vmem:[%s645_s0 + $0x1a8] sm:$0xff]  ;;  %v75_v52 = vld [vmem:[%s645_s0 + $0x198] sm:$0xff] }
  0x12   :  { %113 = vmatprep.subr.mxu0 %v46_v26  ;;  %191 = vmatpush1.msra.mxu1 %v47_v27  ;;  %v73_v53 = vld [vmem:[%s645_s0 + $0x188] sm:$0xff]  ;;  %v74_v54 = vld [vmem:[%s645_s0 + $0x190] sm:$0xff]  ;;  %v72_v56 = vld [vmem:[%s645_s0 + $0x180] sm:$0xff] }
  0x13   :  { %114 = vmatpush1.msra.mxu0 %v45_v28  ;;  %192 = vmatprep.subr.mxu1 %v373_v0  ;;  %v21_v55 = vld [vmem:[%s646_s1 + $0x8] sm:$0xff]  ;;  %v20_v57 = vld [vmem:[%s646_s1] sm:$0xff]  ;;  %v23_v58 = vld [vmem:[%s646_s1 + $0x18] sm:$0xff] }
  0x14   :  { %115 = vmatprep.subr.mxu0 %v43_v29  ;;  %193 = vmatpush1.msra.mxu1 %v44_v30  ;;  %v78_v59 = vld [vmem:[%s647_s2] sm:$0xff]  ;;  %v22_v60 = vld [vmem:[%s646_s1 + $0x10] sm:$0xff]  ;;  %v79_v61 = vld [vmem:[%s647_s2 + $0x8] sm:$0xff] }
  0x15   :  { %116 = vmatpush1.msra.mxu0 %v42_v31  ;;  %194 = vmatprep.subr.mxu1 %v373_v0 }
  0x16   :  { %117 = vmatprep.subr.mxu0 %v40_v32  ;;  %195 = vmatpush1.msra.mxu1 %v41_v33  ;;  %v315_v32 = vld [vmem:[%s648_s3] sm:$0xff]  ;;  %v316_v33 = vld [vmem:[%s648_s3 + $0x8] sm:$0xff] }
  0x17   :  { %118 = vmatpush1.msra.mxu0 %v39_v34  ;;  %196 = vmatprep.subr.mxu1 %v373_v0  ;;  %v333_v34 = vld [vmem:[%s649_s4] sm:$0xff] }
  0x18   :  { %119 = vmatprep.subr.mxu0 %v37_v35  ;;  %197 = vmatpush1.msra.mxu1 %v38_v36 }
  0x19   :  { %120 = vmatpush1.msra.mxu0 %v36_v37  ;;  %198 = vmatprep.subr.mxu1 %v373_v0 }
  0x1a   :  { %121 = vmatprep.subr.mxu0 %v34_v38  ;;  %199 = vmatpush1.msra.mxu1 %v35_v39 }
  0x1b   :  { %122 = vmatpush1.msra.mxu0 %v33_v40  ;;  %200 = vmatprep.subr.mxu1 %v373_v0 }
  0x1c   :  { %123 = vmatprep.subr.mxu0 %v31_v41  ;;  %201 = vmatpush1.msra.mxu1 %v32_v42 }
  0x1d   :  { %124 = vmatpush1.msra.mxu0 %v30_v43  ;;  %202 = vmatprep.subr.mxu1 %v373_v0 }
  0x1e   :  { %125 = vmatprep.subr.mxu0 %v28_v44  ;;  %203 = vmatpush1.msra.mxu1 %v29_v45 }
  0x1f   :  { %126 = vmatpush1.msra.mxu0 %v27_v46  ;;  %204 = vmatprep.subr.mxu1 %v373_v0 }
  0x20   :  { %127 = vmatprep.subr.mxu0 %v25_v47  ;;  %205 = vmatpush1.msra.mxu1 %v26_v48 }
  0x21   :  { %128 = vmatpush1.msra.mxu0 %v24_v49  ;;  %234 = vmatprep.subr.mxu1 %v373_v0 }
  0x22   :  { %157 = vmatprep.subr.mxu0 %v76_v50  ;;  %235 = vmatpush2.msra.mxu1 %v77_v51 }
  0x23   :  { %158 = vmatpush2.msra.mxu0 %v75_v52  ;;  %236 = vmatprep.subr.mxu1 %v373_v0 }
  0x24   :  { %159 = vmatprep.subr.mxu0 %v73_v53  ;;  %237 = vmatpush2.msra.mxu1 %v74_v54 }
  0x25   :  { %363 = vmatprep.mubr.msk.f32.mxu1 %vm90_vm0, %v21_v55  ;;  %160 = vmatpush2.msra.mxu0 %v72_v56 }
  0x26   :  { %361 = vmatprep.mubr.msk.f32.mxu0 %vm90_vm0, %v21_v55  ;;  %239 = vmatmul.mubr.f32.vlgmr.msra.gmra.mxu1 %v20_v57 }
  0x27   :  { %162 = vmatmul.mubr.f32.vlgmr.msra.gmra.mxu0 %v20_v57  ;;  %364 = vmatprep.mubr.msk.f32.mxu1 %vm90_vm0, %v23_v58  ;;  %v334_v57 = vld [vmem:[%s649_s4 + $0x8] sm:$0xff] }
  0x28   :  { %362 = vmatprep.mubr.msk.f32.mxu0 %vm90_vm0, %v23_v58  ;;  %82 = vperm.xlu0 %367, %v78_v59  }
  0x29   :  { %368 = vset.pattern.permute.xlu1 %v374_v4 }
  0x2a   :  { %244 = vmatmul.mubr.f32.gmra.mxu1 %v22_v60 }
  0x2b   :  { %168 = vmatmul.mubr.f32.gmra.mxu0 %v22_v60 }
  0x2c   :  { %87 = vperm.xlu0 %367, %v79_v61  }
  0xa3   :  { %v83_v62 = vpop.permute.xlu0 %82 }
  0xa7   :  { %v88_v5 = vpop.permute.xlu0 %87 }
  0xe6   :  { %v240_v63 = vpop.f32.mrf.mxu1 }
  0xe7   :  { %v241_v0 = vadd.f32 %v240_v63, %v83_v62  ;;  %v163_v1 = vpop.f32.mrf.mxu0 }
  0xe8   :  { %v164_v2 = vadd.f32 %v163_v1, %v83_v62  ;;  %v242_v3 = vpop.f32.mrf.mxu1 }
  0xe9   :  { %v257_v6 = vmul.f32 0.2, %v241_v0  ;;  %v165_v7 = vpop.f32.mrf.mxu0  ;;  %vm251_vm2 = vcmp.gt.f32.partialorder %v241_v0, 0.0 }
  0xea   :  { %vm249_vm1 = vcmp.gt.f32.partialorder %v164_v2, 0.0  ;;  %v255_v8 = vmul.f32 0.2, %v164_v2  ;;  %v166_v9 = vadd.f32 %v165_v7, %v83_v62  ;;  %v245_v10 = vpop.f32.mrf.mxu1 }
  0xeb   :  { %v246_v11 = vadd.f32 %v245_v10, %v88_v5  ;;  %v169_v12 = vpop.f32.mrf.mxu0  ;;  %v263_v18 = vsel %vm251_vm2, %v241_v0, %v257_v6 }
  0xec   :  { %vm250_vm3 = vcmp.gt.f32.partialorder %v166_v9, 0.0  ;;  %v256_v4 = vmul.f32 0.2, %v166_v9  ;;  %v170_v13 = vadd.f32 %v169_v12, %v88_v5  ;;  %v247_v14 = vpop.f32.mrf.mxu1  ;;  %v261_v17 = vsel %vm249_vm1, %v164_v2, %v255_v8 }
  0xed   :  { %v260_v15 = vmul.f32 0.2, %v246_v11  ;;  %v171_v16 = vpop.f32.mrf.mxu0  ;;  %vm254_vm5 = vcmp.gt.f32.partialorder %v246_v11, 0.0  ;;  %v269_v24 = vsel %vm268_vm4, %v263_v18, 0.0 }
  0xee   :  { %v258_v19 = vmul.f32 0.2, %v170_v13  ;;  %v172_v20 = vadd.f32 %v171_v16, %v88_v5  ;;  %v262_v21 = vsel %vm250_vm3, %v166_v9, %v256_v4  ;;  %vm252_vm6 = vcmp.gt.f32.partialorder %v170_v13, 0.0 }
  0xef   :  { %v267_v22 = vadd.f32 %v262_v21, %v261_v17  ;;  %v266_v26 = vsel %vm254_vm5, %v246_v11, %v260_v15 }
  0xf0   :  { %vm253_vm7 = vcmp.gt.f32.partialorder %v172_v20, 0.0  ;;  %v259_v23 = vmul.f32 0.2, %v172_v20  ;;  %v264_v27 = vsel %vm252_vm6, %v170_v13, %v258_v19  ;;  %v274_v30 = vsel %vm268_vm4, %v266_v26, 0.0 }
  0xf1   :  { %v270_v25 = vadd.f32 %v269_v24, %v267_v22 }
  0xf2   :  { %v265_v28 = vsel %vm253_vm7, %v172_v20, %v259_v23 }
  0xf3   :  { %271 = vadd.xlane.f32.xlu1 %v270_v25  ;;  %v273_v29 = vadd.f32 %v265_v28, %v264_v27 }
  0xf5   :  { %v275_v31 = vadd.f32 %v274_v30, %v273_v29 }
  0xf7   :  { %276 = vadd.xlane.f32.xlu1 %v275_v31 }
 0x108   :  { %319 = vperm.xlu1 %368, %v315_v32  }
 0x10c   :  { %324 = vperm.xlu1 %368, %v316_v33  }
 0x110   :  { %337 = vperm.xlu1 %368, %v333_v34  }
 0x17c   :  { %v272_v35 = vpop.xlane.xlu1 %271 }
 0x17d   :  { %v279_v36 = vmul.f32 0.0034722222, %v272_v35 }
 0x17f   :  { %v281_v37 = vsub.f32 %v261_v17, %v279_v36  ;;  %v282_v38 = vsub.f32 %v262_v21, %v279_v36  ;;  %v283_v39 = vsub.f32 %v263_v18, %v279_v36 }
 0x180   :  { %v277_v40 = vpop.xlane.xlu1 %276 }
 0x181   :  { %v280_v41 = vmul.f32 0.0034722222, %v277_v40  ;;  %v287_v42 = vmul.f32 %v281_v37, %v281_v37  ;;  %v288_v43 = vmul.f32 %v282_v38, %v282_v38  ;;  %v289_v44 = vmul.f32 %v283_v39, %v283_v39 }
 0x183   :  { %v284_v45 = vsub.f32 %v264_v27, %v280_v41  ;;  %v285_v46 = vsub.f32 %v265_v28, %v280_v41  ;;  %v286_v47 = vsub.f32 %v266_v26, %v280_v41  ;;  %v293_v48 = vadd.f32 %v288_v43, %v287_v42 }
 0x184   :  { %v294_v49 = vsel %vm268_vm4, %v289_v44, 0.0  ;;  %v320_v58 = vpop.permute.xlu1 %319 }
 0x185   :  { %v295_v50 = vadd.f32 %v294_v49, %v293_v48  ;;  %v290_v51 = vmul.f32 %v284_v45, %v284_v45  ;;  %v291_v52 = vmul.f32 %v285_v46, %v285_v46  ;;  %v292_v53 = vmul.f32 %v286_v47, %v286_v47 }
 0x187   :  { %296 = vadd.xlane.f32.xlu0 %v295_v50  ;;  %v298_v54 = vadd.f32 %v291_v52, %v290_v51  ;;  %v299_v55 = vsel %vm268_vm4, %v292_v53, 0.0 }
 0x188   :  { %v325_v59 = vpop.permute.xlu1 %324 }
 0x189   :  { %v300_v56 = vadd.f32 %v299_v55, %v298_v54 }
 0x18b   :  { %301 = vadd.xlane.f32.xlu1 %v300_v56 }
 0x18c   :  { %v338_v60 = vpop.permute.xlu1 %337 }
 0x19c   :  { %342 = vperm.xlu1 %368, %v334_v57  }
 0x210   :  { %v297_v61 = vpop.xlane.xlu0 %296 }
 0x211   :  { %v303_v62 = vmul.f32 0.0034722222, %v297_v61 }
 0x213   :  { %v305_v63 = vadd.f32 1e-05, %v303_v62 }
 0x214   :  { %v302_v0 = vpop.xlane.xlu1 %301 }
 0x215   :  { %369 = vrsqrt.f32 %v305_v63  ;;  %v304_v1 = vmul.f32 0.0034722222, %v302_v0 }
 0x217   :  { %v306_v2 = vadd.f32 1e-05, %v304_v1 }
 0x218   :  { %v343_v20 = vpop.permute.xlu1 %342 }
 0x219   :  { %371 = vrsqrt.f32 %v306_v2 }
 0x222   :  { %v370_v3 = vpop.eup %369 }
 0x223   :  { %v309_v5 = vmul.f32 %v370_v3, %v281_v37  ;;  %v310_v6 = vmul.f32 %v370_v3, %v282_v38  ;;  %v311_v7 = vmul.f32 %v370_v3, %v283_v39 }
 0x225   :  { %v327_v8 = vmul.f32 %v320_v58, %v309_v5  ;;  %v328_v9 = vmul.f32 %v320_v58, %v310_v6  ;;  %v329_v10 = vmul.f32 %v320_v58, %v311_v7 }
 0x226   :  { %v372_v11 = vpop.eup %371 }
 0x227   :  { %v312_v12 = vmul.f32 %v372_v11, %v284_v45  ;;  %v313_v4 = vmul.f32 %v372_v11, %v285_v46  ;;  %v314_v13 = vmul.f32 %v372_v11, %v286_v47  ;;  %v345_v14 = vadd.f32 %v338_v60, %v327_v8 }
 0x228   :  { %v346_v15 = vadd.f32 %v338_v60, %v328_v9  ;;  %v347_v16 = vadd.f32 %v338_v60, %v329_v10 }
 0x229   :  { %v330_v17 = vmul.f32 %v325_v59, %v312_v12  ;;  %v331_v18 = vmul.f32 %v325_v59, %v313_v4  ;;  %v332_v19 = vmul.f32 %v325_v59, %v314_v13  ;;  %351 = vst [vmem:[%s650_s5] sm:$0xff] %v345_v14 }
 0x22a   :  { %352 = vst [vmem:[%s650_s5 + $0x8] sm:$0xff] %v346_v15  ;;  %353 = vst.msk [vmem:[%s650_s5 + $0x10] sm:$0xff] %vm268_vm4, %v347_v16 }
 0x22b   :  { %v348_v21 = vadd.f32 %v343_v20, %v330_v17  ;;  %v349_v22 = vadd.f32 %v343_v20, %v331_v18  ;;  %v350_v23 = vadd.f32 %v343_v20, %v332_v19 }
 0x22d   :  { %354 = vst [vmem:[%s650_s5 + $0x18] sm:$0xff] %v348_v21  ;;  %355 = vst [vmem:[%s650_s5 + $0x20] sm:$0xff] %v349_v22 }
 0x22e   :  { %356 = vst.msk [vmem:[%s650_s5 + $0x28] sm:$0xff] %vm268_vm4, %v350_v23 }

// kernel: learn_to_resize.10
= control target key start
LH: loop header
LB: loop body
LE: loop exit
PB: predicated region body
PF: predicated region fallthrough
CT: control target
= control target key end

     0   :  { %vm209_vm0 = vcmask 1043456   ;;  %vm64_vm1 = vcmask 97280   ;;  %v1997_v50 = vmov 0.0   ;;  %vm1480_vm2 = vcmask 130048   ;;  %s3269_s1 = inlined_call_operand.vmem [shape: f32[12,16], index: 1, kind: input, shape index: {}]   ;;  %s3270_s0 = inlined_call_operand.vmem [shape: f32[384,12], index: 0, kind: input, shape index: {}]   ;;  %s3271_s2 = inlined_call_operand.vmem [shape: f32[512,384], index: 2, kind: input, shape index: {}]   ;;  %s3272_s3 = inlined_call_operand.vmem [shape: f32[512,16], index: 3, kind: output, shape index: {}]  }
   0x1   :  { %v63_v0 = vld [vmem:[%s3269_s1 + $0x8] sm:$0xf]  ;;  %v62_v1 = vld [vmem:[%s3269_s1] sm:$0xff]  ;;  %v16_v4 = vld [vmem:[%s3270_s0 + $0x10] sm:$0xff]  ;;  %1932 = vmatprep.subr.mxu1 %v1997_v50 }
   0x2   :  { %v14_v2 = vld [vmem:[%s3270_s0] sm:$0xff]  ;;  %1728 = vmatprep.subr.msk.mxu0 %vm209_vm0, %v63_v0  ;;  %v15_v3 = vld [vmem:[%s3270_s0 + $0x8] sm:$0xff]  ;;  %v17_v5 = vld [vmem:[%s3270_s0 + $0x18] sm:$0xff] }
   0x3   :  { %1732 = vmatprep.mubr.msk.f32.mxu0 %vm64_vm1, %v14_v2  ;;  %1729 = vmatpush3.msk.msra.mxu0 %vm209_vm0, %v63_v0  ;;  %v18_v6 = vld [vmem:[%s3270_s0 + $0x20] sm:$0xff]  ;;  %v19_v7 = vld [vmem:[%s3270_s0 + $0x28] sm:$0xff]  ;;  %v20_v8 = vld [vmem:[%s3270_s0 + $0x30] sm:$0xff] }
   0x4   :  { %1730 = vmatprep.subr.mxu0 %v62_v1  ;;  %v21_v9 = vld [vmem:[%s3270_s0 + $0x38] sm:$0xff]  ;;  %v22_v10 = vld [vmem:[%s3270_s0 + $0x40] sm:$0xff]  ;;  %v23_v11 = vld [vmem:[%s3270_s0 + $0x48] sm:$0xff] }
   0x5   :  { %1731 = vmatpush3.msra.mxu0 %v62_v1  ;;  %v24_v12 = vld [vmem:[%s3270_s0 + $0x50] sm:$0xff]  ;;  %v25_v13 = vld [vmem:[%s3270_s0 + $0x58] sm:$0xff]  ;;  %v26_v14 = vld [vmem:[%s3270_s0 + $0x60] sm:$0xff] }
   0x6   :  { %1733 = vmatmul.mubr.msk.f32.vlgmr.msra.gmra.mxu0 %vm64_vm1, %v15_v3  ;;  %v27_v15 = vld [vmem:[%s3270_s0 + $0x68] sm:$0xff]  ;;  %v28_v16 = vld [vmem:[%s3270_s0 + $0x70] sm:$0xff]  ;;  %v29_v17 = vld [vmem:[%s3270_s0 + $0x78] sm:$0xff]  ;;  %710 = vmatprep.subr.mxu0 %v1997_v50 }
   0x7   :  { %1735 = vmatprep.mubr.msk.f32.mxu0 %vm64_vm1, %v16_v4  ;;  %v30_v18 = vld [vmem:[%s3270_s0 + $0x80] sm:$0xff]  ;;  %v31_v19 = vld [vmem:[%s3270_s0 + $0x88] sm:$0xff]  ;;  %v32_v20 = vld [vmem:[%s3270_s0 + $0x90] sm:$0xff] }
   0x8   :  { %v33_v21 = vld [vmem:[%s3270_s0 + $0x98] sm:$0xff]  ;;  %v34_v22 = vld [vmem:[%s3270_s0 + $0xa0] sm:$0xff]  ;;  %v35_v23 = vld [vmem:[%s3270_s0 + $0xa8] sm:$0xff] }
   0x9   :  { %v36_v24 = vld [vmem:[%s3270_s0 + $0xb0] sm:$0xff]  ;;  %v37_v25 = vld [vmem:[%s3270_s0 + $0xb8] sm:$0xff]  ;;  %v38_v26 = vld [vmem:[%s3270_s0 + $0xc0] sm:$0xff] }
   0xa   :  { %1736 = vmatmul.mubr.msk.f32.gmra.mxu0 %vm64_vm1, %v17_v5  ;;  %v39_v27 = vld [vmem:[%s3270_s0 + $0xc8] sm:$0xff]  ;;  %v40_v28 = vld [vmem:[%s3270_s0 + $0xd0] sm:$0xff]  ;;  %v41_v29 = vld [vmem:[%s3270_s0 + $0xd8] sm:$0xff] }
   0xb   :  { %1738 = vmatprep.mubr.msk.f32.mxu0 %vm64_vm1, %v18_v6  ;;  %v42_v30 = vld [vmem:[%s3270_s0 + $0xe0] sm:$0xff]  ;;  %v43_v31 = vld [vmem:[%s3270_s0 + $0xe8] sm:$0xff]  ;;  %v44_v32 = vld [vmem:[%s3270_s0 + $0xf0] sm:$0xff] }
   0xc   :  { %v45_v33 = vld [vmem:[%s3270_s0 + $0xf8] sm:$0xff]  ;;  %v46_v34 = vld [vmem:[%s3270_s0 + $0x100] sm:$0xff]  ;;  %v47_v35 = vld [vmem:[%s3270_s0 + $0x108] sm:$0xff] }
   0xd   :  { %v48_v36 = vld [vmem:[%s3270_s0 + $0x110] sm:$0xff]  ;;  %v49_v37 = vld [vmem:[%s3270_s0 + $0x118] sm:$0xff]  ;;  %v50_v38 = vld [vmem:[%s3270_s0 + $0x120] sm:$0xff] }
   0xe   :  { %1739 = vmatmul.mubr.msk.f32.gmra.mxu0 %vm64_vm1, %v19_v7  ;;  %v51_v39 = vld [vmem:[%s3270_s0 + $0x128] sm:$0xff]  ;;  %v52_v40 = vld [vmem:[%s3270_s0 + $0x130] sm:$0xff]  ;;  %v53_v41 = vld [vmem:[%s3270_s0 + $0x138] sm:$0xff] }
   0xf   :  { %1741 = vmatprep.mubr.msk.f32.mxu0 %vm64_vm1, %v20_v8  ;;  %v54_v42 = vld [vmem:[%s3270_s0 + $0x140] sm:$0xff]  ;;  %v55_v43 = vld [vmem:[%s3270_s0 + $0x148] sm:$0xff]  ;;  %v56_v44 = vld [vmem:[%s3270_s0 + $0x150] sm:$0xff] }
  0x10   :  { %v57_v45 = vld [vmem:[%s3270_s0 + $0x158] sm:$0xff]  ;;  %v58_v46 = vld [vmem:[%s3270_s0 + $0x160] sm:$0xff]  ;;  %v59_v47 = vld [vmem:[%s3270_s0 + $0x168] sm:$0xff] }
  0x11   :  { %v60_v48 = vld [vmem:[%s3270_s0 + $0x170] sm:$0xff]  ;;  %v61_v49 = vld [vmem:[%s3270_s0 + $0x178] sm:$0xff]  ;;  %v519_v51 = vld [vmem:[%s3271_s2 + $0x8] sm:$0xff] }
  0x12   :  { %1742 = vmatmul.mubr.msk.f32.gmra.mxu0 %vm64_vm1, %v21_v9  ;;  %v552_v52 = vld [vmem:[%s3271_s2 + $0x110] sm:$0xff] }
  0x13   :  { %1744 = vmatprep.mubr.msk.f32.mxu0 %vm64_vm1, %v22_v10  ;;  %829 = vmatprep.mubr.f32.mxu1 %v552_v52  ;;  %v564_v52 = vld [vmem:[%s3271_s2 + $0x170] sm:$0xff] }
  0x16   :  { %1745 = vmatmul.mubr.msk.f32.gmra.mxu0 %vm64_vm1, %v23_v11 }
  0x17   :  { %1747 = vmatprep.mubr.msk.f32.mxu0 %vm64_vm1, %v24_v12 }
  0x1a   :  { %1748 = vmatmul.mubr.msk.f32.gmra.mxu0 %vm64_vm1, %v25_v13 }
  0x1b   :  { %1750 = vmatprep.mubr.msk.f32.mxu0 %vm64_vm1, %v26_v14 }
  0x1e   :  { %1751 = vmatmul.mubr.msk.f32.gmra.mxu0 %vm64_vm1, %v27_v15 }
  0x1f   :  { %1753 = vmatprep.mubr.msk.f32.mxu0 %vm64_vm1, %v28_v16 }
  0x22   :  { %1754 = vmatmul.mubr.msk.f32.gmra.mxu0 %vm64_vm1, %v29_v17 }
  0x23   :  { %1756 = vmatprep.mubr.msk.f32.mxu0 %vm64_vm1, %v30_v18 }
  0x26   :  { %1757 = vmatmul.mubr.msk.f32.gmra.mxu0 %vm64_vm1, %v31_v19 }
  0x27   :  { %1759 = vmatprep.mubr.msk.f32.mxu0 %vm64_vm1, %v32_v20 }
  0x2a   :  { %1760 = vmatmul.mubr.msk.f32.gmra.mxu0 %vm64_vm1, %v33_v21 }
  0x2b   :  { %1762 = vmatprep.mubr.msk.f32.mxu0 %vm64_vm1, %v34_v22 }
  0x2e   :  { %1763 = vmatmul.mubr.msk.f32.gmra.mxu0 %vm64_vm1, %v35_v23 }
  0x2f   :  { %1765 = vmatprep.mubr.msk.f32.mxu0 %vm64_vm1, %v36_v24 }
  0x32   :  { %1766 = vmatmul.mubr.msk.f32.gmra.mxu0 %vm64_vm1, %v37_v25 }
  0x33   :  { %1768 = vmatprep.mubr.msk.f32.mxu0 %vm64_vm1, %v38_v26 }
  0x36   :  { %1769 = vmatmul.mubr.msk.f32.gmra.mxu0 %vm64_vm1, %v39_v27 }
  0x37   :  { %1771 = vmatprep.mubr.msk.f32.mxu0 %vm64_vm1, %v40_v28 }
  0x3a   :  { %1772 = vmatmul.mubr.msk.f32.gmra.mxu0 %vm64_vm1, %v41_v29 }
  0x3b   :  { %1774 = vmatprep.mubr.msk.f32.mxu0 %vm64_vm1, %v42_v30 }
  0x3e   :  { %1775 = vmatmul.mubr.msk.f32.gmra.mxu0 %vm64_vm1, %v43_v31 }
  0x3f   :  { %1777 = vmatprep.mubr.msk.f32.mxu0 %vm64_vm1, %v44_v32 }
  0x42   :  { %1778 = vmatmul.mubr.msk.f32.gmra.mxu0 %vm64_vm1, %v45_v33 }
  0x43   :  { %1780 = vmatprep.mubr.msk.f32.mxu0 %vm64_vm1, %v46_v34  ;;  %v518_v34 = vld [vmem:[%s3271_s2] sm:$0xff] }
  0x46   :  { %1781 = vmatmul.mubr.msk.f32.gmra.mxu0 %vm64_vm1, %v47_v35  ;;  %v551_v35 = vld [vmem:[%s3271_s2 + $0x108] sm:$0xff] }
  0x47   :  { %1783 = vmatprep.mubr.msk.f32.mxu0 %vm64_vm1, %v48_v36 }
  0x4a   :  { %1784 = vmatmul.mubr.msk.f32.gmra.mxu0 %vm64_vm1, %v49_v37  ;;  %v522_v37 = vld [vmem:[%s3271_s2 + $0x20] sm:$0xff] }
  0x4b   :  { %1786 = vmatprep.mubr.msk.f32.mxu0 %vm64_vm1, %v50_v38  ;;  %v555_v38 = vld [vmem:[%s3271_s2 + $0x128] sm:$0xff] }
  0x4e   :  { %1787 = vmatmul.mubr.msk.f32.gmra.mxu0 %vm64_vm1, %v51_v39 }
  0x4f   :  { %1789 = vmatprep.mubr.msk.f32.mxu0 %vm64_vm1, %v52_v40  ;;  %v521_v40 = vld [vmem:[%s3271_s2 + $0x18] sm:$0xff] }
  0x52   :  { %1790 = vmatmul.mubr.msk.f32.gmra.mxu0 %vm64_vm1, %v53_v41  ;;  %v554_v41 = vld [vmem:[%s3271_s2 + $0x120] sm:$0xff] }
  0x53   :  { %1792 = vmatprep.mubr.msk.f32.mxu0 %vm64_vm1, %v54_v42 }
  0x56   :  { %1793 = vmatmul.mubr.msk.f32.gmra.mxu0 %vm64_vm1, %v55_v43  ;;  %v525_v43 = vld [vmem:[%s3271_s2 + $0x38] sm:$0xff] }
  0x57   :  { %1795 = vmatprep.mubr.msk.f32.mxu0 %vm64_vm1, %v56_v44  ;;  %v558_v44 = vld [vmem:[%s3271_s2 + $0x140] sm:$0xff] }
  0x5a   :  { %1796 = vmatmul.mubr.msk.f32.gmra.mxu0 %vm64_vm1, %v57_v45  ;;  %v524_v45 = vld [vmem:[%s3271_s2 + $0x30] sm:$0xff] }
  0x5b   :  { %1798 = vmatprep.mubr.msk.f32.mxu0 %vm64_vm1, %v58_v46  ;;  %v557_v46 = vld [vmem:[%s3271_s2 + $0x138] sm:$0xff] }
  0x5e   :  { %1799 = vmatmul.mubr.msk.f32.gmra.mxu0 %vm64_vm1, %v59_v47  ;;  %v528_v47 = vld [vmem:[%s3271_s2 + $0x50] sm:$0xff] }
  0x5f   :  { %1801 = vmatprep.mubr.msk.f32.mxu0 %vm64_vm1, %v60_v48  ;;  %v561_v48 = vld [vmem:[%s3271_s2 + $0x158] sm:$0xff] }
  0x62   :  { %1802 = vmatmul.mubr.msk.f32.gmra.mxu0 %vm64_vm1, %v61_v49  ;;  %v527_v49 = vld [vmem:[%s3271_s2 + $0x48] sm:$0xff] }
  0x63   :  { %774 = vmatprep.mubr.f32.mxu0 %v519_v51  ;;  %v531_v51 = vld [vmem:[%s3271_s2 + $0x68] sm:$0xff] }
  0xc6   :  { %v2224_v53 = vpop.f32.mrf.mxu0 }
  0xc8   :  { %v2226_v54 = vpop.f32.mrf.mxu0 }
  0xca   :  { %v2228_v55 = vpop.f32.mrf.mxu0 }
  0xcc   :  { %v2230_v56 = vpop.f32.mrf.mxu0 }
  0xce   :  { %v1740_v57 = vpop.f32.mrf.mxu0 }
  0xd0   :  { %v2232_v58 = vpop.f32.mrf.mxu0 }
  0xd2   :  { %v1743_v59 = vpop.f32.mrf.mxu0 }
  0xd4   :  { %v309_v60 = vpop.f32.mrf.mxu0 }
  0xd6   :  { %v1746_v61 = vpop.f32.mrf.mxu0 }
  0xd8   :  { %v319_v62 = vpop.f32.mrf.mxu0 }
  0xda   :  { %v1749_v63 = vpop.f32.mrf.mxu0 }
  0xdc   :  { %v329_v0 = vpop.f32.mrf.mxu0 }
  0xde   :  { %v1752_v1 = vpop.f32.mrf.mxu0 }
  0xe0   :  { %v339_v2 = vpop.f32.mrf.mxu0 }
  0xe2   :  { %v1755_v3 = vpop.f32.mrf.mxu0 }
  0xe3   :  { %711 = vmatpush1.msra.mxu0 %v1755_v3  ;;  %1964 = vmatpush1.msra.mxu1 %v1755_v3  ;;  %v543_v3 = vld [vmem:[%s3271_s2 + $0xc8] sm:$0xff] }
  0xe4   :  { %v349_v4 = vpop.f32.mrf.mxu0  ;;  %712 = vmatprep.subr.mxu0 %v1997_v50  ;;  %1933 = vmatprep.subr.mxu1 %v1997_v50 }
  0xe5   :  { %713 = vmatpush1.msra.mxu0 %v349_v4  ;;  %1965 = vmatpush1.msra.mxu1 %v349_v4  ;;  %v576_v4 = vld [vmem:[%s3271_s2 + $0x1d0] sm:$0xff] }
  0xe6   :  { %v2236_v5 = vpop.f32.mrf.mxu0  ;;  %714 = vmatprep.subr.mxu0 %v1997_v50  ;;  %1934 = vmatprep.subr.mxu1 %v1997_v50 }
  0xe7   :  { %715 = vmatpush1.msra.mxu0 %v1752_v1  ;;  %1966 = vmatpush1.msra.mxu1 %v1752_v1  ;;  %v539_v1 = vld [vmem:[%s3271_s2 + $0xa8] sm:$0xff] }
  0xe8   :  { %v2240_v6 = vpop.f32.mrf.mxu0  ;;  %716 = vmatprep.subr.mxu0 %v1997_v50  ;;  %1935 = vmatprep.subr.mxu1 %v1997_v50 }
  0xe9   :  { %717 = vmatpush1.msra.mxu0 %v339_v2  ;;  %1967 = vmatpush1.msra.mxu1 %v339_v2  ;;  %v572_v2 = vld [vmem:[%s3271_s2 + $0x1b0] sm:$0xff] }
  0xea   :  { %v2244_v7 = vpop.f32.mrf.mxu0  ;;  %718 = vmatprep.subr.mxu0 %v1997_v50  ;;  %1936 = vmatprep.subr.mxu1 %v1997_v50 }
  0xeb   :  { %719 = vmatpush1.msra.mxu0 %v1749_v63  ;;  %1968 = vmatpush1.msra.mxu1 %v1749_v63  ;;  %v540_v63 = vld [vmem:[%s3271_s2 + $0xb0] sm:$0xff] }
  0xec   :  { %v2248_v8 = vpop.f32.mrf.mxu0  ;;  %720 = vmatprep.subr.mxu0 %v1997_v50  ;;  %1937 = vmatprep.subr.mxu1 %v1997_v50 }
  0xed   :  { %721 = vmatpush1.msra.mxu0 %v329_v0  ;;  %1969 = vmatpush1.msra.mxu1 %v329_v0  ;;  %v573_v0 = vld [vmem:[%s3271_s2 + $0x1b8] sm:$0xff] }
  0xee   :  { %v2252_v9 = vpop.f32.mrf.mxu0  ;;  %722 = vmatprep.subr.mxu0 %v1997_v50  ;;  %1938 = vmatprep.subr.mxu1 %v1997_v50 }
  0xef   :  { %723 = vmatpush1.msra.mxu0 %v1746_v61  ;;  %1970 = vmatpush1.msra.mxu1 %v1746_v61  ;;  %v536_v61 = vld [vmem:[%s3271_s2 + $0x90] sm:$0xff] }
  0xf0   :  { %v2256_v10 = vpop.f32.mrf.mxu0  ;;  %724 = vmatprep.subr.mxu0 %v1997_v50  ;;  %1939 = vmatprep.subr.mxu1 %v1997_v50 }
  0xf1   :  { %725 = vmatpush1.msra.mxu0 %v319_v62  ;;  %1971 = vmatpush1.msra.mxu1 %v319_v62  ;;  %v569_v62 = vld [vmem:[%s3271_s2 + $0x198] sm:$0xff] }
  0xf2   :  { %v2260_v11 = vpop.f32.mrf.mxu0  ;;  %726 = vmatprep.subr.mxu0 %v1997_v50  ;;  %1940 = vmatprep.subr.mxu1 %v1997_v50 }
  0xf3   :  { %727 = vmatpush1.msra.mxu0 %v1743_v59  ;;  %1972 = vmatpush1.msra.mxu1 %v1743_v59  ;;  %v537_v59 = vld [vmem:[%s3271_s2 + $0x98] sm:$0xff] }
  0xf4   :  { %v2264_v12 = vpop.f32.mrf.mxu0  ;;  %728 = vmatprep.subr.mxu0 %v1997_v50  ;;  %1941 = vmatprep.subr.mxu1 %v1997_v50 }
  0xf5   :  { %729 = vmatpush1.msra.mxu0 %v309_v60  ;;  %1973 = vmatpush1.msra.mxu1 %v309_v60  ;;  %v570_v60 = vld [vmem:[%s3271_s2 + $0x1a0] sm:$0xff] }
  0xf6   :  { %v2268_v13 = vpop.f32.mrf.mxu0  ;;  %730 = vmatprep.subr.mxu0 %v1997_v50  ;;  %1942 = vmatprep.subr.mxu1 %v1997_v50 }
  0xf7   :  { %731 = vmatpush1.msra.mxu0 %v1740_v57  ;;  %1974 = vmatpush1.msra.mxu1 %v1740_v57  ;;  %v533_v57 = vld [vmem:[%s3271_s2 + $0x78] sm:$0xff] }
  0xf8   :  { %v2272_v14 = vpop.f32.mrf.mxu0  ;;  %732 = vmatprep.subr.mxu0 %v1997_v50  ;;  %1943 = vmatprep.subr.mxu1 %v1997_v50 }
  0xf9   :  { %733 = vmatpush1.msra.mxu0 %v2232_v58  ;;  %1975 = vmatpush1.msra.mxu1 %v2232_v58  ;;  %v566_v58 = vld [vmem:[%s3271_s2 + $0x180] sm:$0xff] }
  0xfa   :  { %v1773_v15 = vpop.f32.mrf.mxu0  ;;  %734 = vmatprep.subr.mxu0 %v1997_v50  ;;  %1944 = vmatprep.subr.mxu1 %v1997_v50 }
  0xfb   :  { %735 = vmatpush1.msra.mxu0 %v2228_v55  ;;  %1976 = vmatpush1.msra.mxu1 %v2228_v55  ;;  %v534_v55 = vld [vmem:[%s3271_s2 + $0x80] sm:$0xff] }
  0xfc   :  { %v409_v16 = vpop.f32.mrf.mxu0  ;;  %736 = vmatprep.subr.mxu0 %v1997_v50  ;;  %1945 = vmatprep.subr.mxu1 %v1997_v50 }
  0xfd   :  { %737 = vmatpush1.msra.mxu0 %v2230_v56  ;;  %1977 = vmatpush1.msra.mxu1 %v2230_v56  ;;  %v567_v56 = vld [vmem:[%s3271_s2 + $0x188] sm:$0xff] }
  0xfe   :  { %v1776_v17 = vpop.f32.mrf.mxu0  ;;  %738 = vmatprep.subr.mxu0 %v1997_v50  ;;  %1946 = vmatprep.subr.mxu1 %v1997_v50 }
  0xff   :  { %739 = vmatpush1.msra.mxu0 %v2224_v53  ;;  %1978 = vmatpush1.msra.mxu1 %v2224_v53  ;;  %v530_v53 = vld [vmem:[%s3271_s2 + $0x60] sm:$0xff] }
 0x100   :  { %v419_v18 = vpop.f32.mrf.mxu0  ;;  %740 = vmatprep.subr.mxu0 %v1997_v50  ;;  %1947 = vmatprep.subr.mxu1 %v1997_v50 }
 0x101   :  { %741 = vmatpush1.msra.mxu0 %v2226_v54  ;;  %1979 = vmatpush1.msra.mxu1 %v2226_v54  ;;  %v563_v54 = vld [vmem:[%s3271_s2 + $0x168] sm:$0xff] }
 0x102   :  { %v1779_v19 = vpop.f32.mrf.mxu0  ;;  %742 = vmatprep.subr.mxu0 %v1997_v50  ;;  %1948 = vmatprep.subr.mxu1 %v1997_v50 }
 0x103   :  { %743 = vmatpush2.msra.mxu0 %v1779_v19  ;;  %1980 = vmatpush2.msra.mxu1 %v1779_v19  ;;  %v526_v19 = vld [vmem:[%s3271_s2 + $0x40] sm:$0xff] }
 0x104   :  { %v429_v20 = vpop.f32.mrf.mxu0  ;;  %744 = vmatprep.subr.mxu0 %v1997_v50  ;;  %1949 = vmatprep.subr.mxu1 %v1997_v50 }
 0x105   :  { %745 = vmatpush2.msra.mxu0 %v429_v20  ;;  %1981 = vmatpush2.msra.mxu1 %v429_v20  ;;  %v588_v20 = vld [vmem:[%s3271_s2 + $0x230] sm:$0xff] }
 0x106   :  { %v2298_v21 = vpop.f32.mrf.mxu0  ;;  %746 = vmatprep.subr.mxu0 %v1997_v50  ;;  %1950 = vmatprep.subr.mxu1 %v1997_v50 }
 0x107   :  { %747 = vmatpush2.msra.mxu0 %v1776_v17  ;;  %1982 = vmatpush2.msra.mxu1 %v1776_v17  ;;  %v523_v17 = vld [vmem:[%s3271_s2 + $0x28] sm:$0xff] }
 0x108   :  { %v2302_v22 = vpop.f32.mrf.mxu0  ;;  %748 = vmatprep.subr.mxu0 %v1997_v50  ;;  %1951 = vmatprep.subr.mxu1 %v1997_v50 }
 0x109   :  { %749 = vmatpush2.msra.mxu0 %v419_v18  ;;  %1983 = vmatpush2.msra.mxu1 %v419_v18  ;;  %v584_v18 = vld [vmem:[%s3271_s2 + $0x210] sm:$0xff] }
 0x10a   :  { %v2306_v23 = vpop.f32.mrf.mxu0  ;;  %750 = vmatprep.subr.mxu0 %v1997_v50  ;;  %1952 = vmatprep.subr.mxu1 %v1997_v50 }
 0x10b   :  { %751 = vmatpush2.msra.mxu0 %v1773_v15  ;;  %1984 = vmatpush2.msra.mxu1 %v1773_v15  ;;  %v520_v15 = vld [vmem:[%s3271_s2 + $0x10] sm:$0xff] }
 0x10c   :  { %v2310_v24 = vpop.f32.mrf.mxu0  ;;  %752 = vmatprep.subr.mxu0 %v1997_v50  ;;  %1953 = vmatprep.subr.mxu1 %v1997_v50 }
 0x10d   :  { %753 = vmatpush2.msra.mxu0 %v409_v16  ;;  %1985 = vmatpush2.msra.mxu1 %v409_v16  ;;  %v585_v16 = vld [vmem:[%s3271_s2 + $0x218] sm:$0xff] }
 0x10e   :  { %v2314_v25 = vpop.f32.mrf.mxu0  ;;  %754 = vmatprep.subr.mxu0 %v1997_v50  ;;  %1954 = vmatprep.subr.mxu1 %v1997_v50 }
 0x10f   :  { %755 = vmatpush2.msra.mxu0 %v2268_v13  ;;  %1986 = vmatpush2.msra.mxu1 %v2268_v13  ;;  %v548_v13 = vld [vmem:[%s3271_s2 + $0xf0] sm:$0xff] }
 0x110   :  { %v2320_v26 = vpop.f32.mrf.mxu0  ;;  %756 = vmatprep.subr.mxu0 %v1997_v50  ;;  %1955 = vmatprep.subr.mxu1 %v1997_v50 }
 0x111   :  { %757 = vmatpush2.msra.mxu0 %v2272_v14  ;;  %1987 = vmatpush2.msra.mxu1 %v2272_v14  ;;  %v581_v14 = vld [vmem:[%s3271_s2 + $0x1f8] sm:$0xff] }
 0x112   :  { %v2326_v27 = vpop.f32.mrf.mxu0  ;;  %758 = vmatprep.subr.mxu0 %v1997_v50  ;;  %1956 = vmatprep.subr.mxu1 %v1997_v50 }
 0x113   :  { %759 = vmatpush2.msra.mxu0 %v2260_v11  ;;  %1988 = vmatpush2.msra.mxu1 %v2260_v11  ;;  %v549_v11 = vld [vmem:[%s3271_s2 + $0xf8] sm:$0xff] }
 0x114   :  { %v2332_v28 = vpop.f32.mrf.mxu0  ;;  %760 = vmatprep.subr.mxu0 %v1997_v50  ;;  %1957 = vmatprep.subr.mxu1 %v1997_v50 }
 0x115   :  { %761 = vmatpush2.msra.mxu0 %v2264_v12  ;;  %1989 = vmatpush2.msra.mxu1 %v2264_v12  ;;  %v582_v12 = vld [vmem:[%s3271_s2 + $0x200] sm:$0xff] }
 0x116   :  { %v2338_v29 = vpop.f32.mrf.mxu0  ;;  %762 = vmatprep.subr.mxu0 %v1997_v50  ;;  %1958 = vmatprep.subr.mxu1 %v1997_v50 }
 0x117   :  { %763 = vmatpush2.msra.mxu0 %v2252_v9  ;;  %1990 = vmatpush2.msra.mxu1 %v2252_v9  ;;  %v545_v9 = vld [vmem:[%s3271_s2 + $0xd8] sm:$0xff] }
 0x118   :  { %v2344_v30 = vpop.f32.mrf.mxu0  ;;  %764 = vmatprep.subr.mxu0 %v1997_v50  ;;  %1959 = vmatprep.subr.mxu1 %v1997_v50 }
 0x119   :  { %765 = vmatpush2.msra.mxu0 %v2256_v10  ;;  %1991 = vmatpush2.msra.mxu1 %v2256_v10  ;;  %v578_v10 = vld [vmem:[%s3271_s2 + $0x1e0] sm:$0xff] }
 0x11a   :  { %v1797_v31 = vpop.f32.mrf.mxu0  ;;  %766 = vmatprep.subr.mxu0 %v1997_v50  ;;  %1960 = vmatprep.subr.mxu1 %v1997_v50 }
 0x11b   :  { %767 = vmatpush2.msra.mxu0 %v2244_v7  ;;  %1992 = vmatpush2.msra.mxu1 %v2244_v7  ;;  %v546_v7 = vld [vmem:[%s3271_s2 + $0xe0] sm:$0xff] }
 0x11c   :  { %v489_v32 = vpop.f32.mrf.mxu0  ;;  %768 = vmatprep.subr.mxu0 %v1997_v50  ;;  %1961 = vmatprep.subr.mxu1 %v1997_v50 }
 0x11d   :  { %769 = vmatpush2.msra.mxu0 %v2248_v8  ;;  %1993 = vmatpush2.msra.mxu1 %v2248_v8  ;;  %v579_v8 = vld [vmem:[%s3271_s2 + $0x1e8] sm:$0xff] }
 0x11e   :  { %v1800_v33 = vpop.f32.mrf.mxu0  ;;  %770 = vmatprep.subr.mxu0 %v1997_v50  ;;  %1962 = vmatprep.subr.mxu1 %v1997_v50 }
 0x11f   :  { %771 = vmatpush2.msra.mxu0 %v2236_v5  ;;  %1994 = vmatpush2.msra.mxu1 %v2236_v5  ;;  %v542_v5 = vld [vmem:[%s3271_s2 + $0xc0] sm:$0xff] }
 0x120   :  { %v499_v36 = vpop.f32.mrf.mxu0  ;;  %772 = vmatprep.subr.mxu0 %v1997_v50  ;;  %1963 = vmatprep.subr.mxu1 %v1997_v50  ;;  %v560_v50 = vld [vmem:[%s3271_s2 + $0x150] sm:$0xff] }
 0x121   :  { %773 = vmatpush2.msra.mxu0 %v2240_v6  ;;  %1995 = vmatpush2.msra.mxu1 %v2240_v6  ;;  %v575_v6 = vld [vmem:[%s3271_s2 + $0x1c8] sm:$0xff] }
 0x122   :  { %v1803_v39 = vpop.f32.mrf.mxu0  ;;  %775 = vmatmul.mubr.f32.vlgmr.msra.gmra.mxu0 %v518_v34  ;;  %830 = vmatmul.mubr.f32.vlgmr.msra.gmra.mxu1 %v551_v35  ;;  %v596_v34 = vld [vmem:[%s3271_s2 + $0x270] sm:$0xff]  ;;  %v550_v35 = vld [vmem:[%s3271_s2 + $0x100] sm:$0xff] }
 0x123   :  { %1804 = vmatprep.subr.mxu0 %v1803_v39  ;;  %779 = vmatprep.mubr.f32.mxu0 %v522_v37  ;;  %v553_v37 = vld [vmem:[%s3271_s2 + $0x118] sm:$0xff] }
 0x124   :  { %v509_v42 = vpop.f32.mrf.mxu0  ;;  %1805 = vmatpush3.msra.mxu0 %v1803_v39  ;;  %834 = vmatprep.mubr.f32.mxu1 %v555_v38  ;;  %v599_v38 = vld [vmem:[%s3271_s2 + $0x288] sm:$0xff]  ;;  %v556_v39 = vld [vmem:[%s3271_s2 + $0x130] sm:$0xff] }
 0x125   :  { %1806 = vmatprep.subr.mxu0 %v509_v42 }
 0x126   :  { %780 = vmatmul.mubr.f32.gmra.mxu0 %v521_v40  ;;  %835 = vmatmul.mubr.f32.gmra.mxu1 %v554_v41  ;;  %v603_v40 = vld [vmem:[%s3271_s2 + $0x2a8] sm:$0xff] }
 0x127   :  { %1807 = vmatpush3.msra.mxu0 %v509_v42  ;;  %784 = vmatprep.mubr.f32.mxu0 %v525_v43  ;;  %v559_v41 = vld [vmem:[%s3271_s2 + $0x148] sm:$0xff]  ;;  %v602_v42 = vld [vmem:[%s3271_s2 + $0x2a0] sm:$0xff] }
 0x128   :  { %1808 = vmatprep.subr.mxu0 %v1800_v33  ;;  %839 = vmatprep.mubr.f32.mxu1 %v558_v44  ;;  %v562_v43 = vld [vmem:[%s3271_s2 + $0x160] sm:$0xff] }
 0x129   :  { %1809 = vmatpush3.msra.mxu0 %v1800_v33  ;;  %v547_v33 = vld [vmem:[%s3271_s2 + $0xe8] sm:$0xff]  ;;  %v606_v44 = vld [vmem:[%s3271_s2 + $0x2c0] sm:$0xff] }
 0x12a   :  { %1810 = vmatprep.subr.mxu0 %v499_v36  ;;  %785 = vmatmul.mubr.f32.gmra.mxu0 %v524_v45  ;;  %v565_v45 = vld [vmem:[%s3271_s2 + $0x178] sm:$0xff] }
 0x12b   :  { %840 = vmatmul.mubr.f32.gmra.mxu1 %v557_v46  ;;  %1811 = vmatpush3.msra.mxu0 %v499_v36  ;;  %v600_v36 = vld [vmem:[%s3271_s2 + $0x290] sm:$0xff]  ;;  %v605_v46 = vld [vmem:[%s3271_s2 + $0x2b8] sm:$0xff] }
 0x12c   :  { %1812 = vmatprep.subr.mxu0 %v1797_v31  ;;  %789 = vmatprep.mubr.f32.mxu0 %v528_v47  ;;  %v568_v47 = vld [vmem:[%s3271_s2 + $0x190] sm:$0xff] }
 0x12d   :  { %1813 = vmatpush3.msra.mxu0 %v1797_v31  ;;  %844 = vmatprep.mubr.f32.mxu1 %v561_v48  ;;  %v544_v31 = vld [vmem:[%s3271_s2 + $0xd0] sm:$0xff]  ;;  %v609_v48 = vld [vmem:[%s3271_s2 + $0x2d8] sm:$0xff] }
 0x12e   :  { %1814 = vmatprep.subr.mxu0 %v489_v32  ;;  %790 = vmatmul.mubr.f32.gmra.mxu0 %v527_v49  ;;  %v571_v49 = vld [vmem:[%s3271_s2 + $0x1a8] sm:$0xff] }
 0x12f   :  { %845 = vmatmul.mubr.f32.gmra.mxu1 %v560_v50  ;;  %1815 = vmatpush3.msra.mxu0 %v489_v32  ;;  %v597_v32 = vld [vmem:[%s3271_s2 + $0x278] sm:$0xff]  ;;  %v608_v50 = vld [vmem:[%s3271_s2 + $0x2d0] sm:$0xff] }
 0x130   :  { %1816 = vmatprep.subr.mxu0 %v2338_v29  ;;  %794 = vmatprep.mubr.f32.mxu0 %v531_v51  ;;  %v574_v51 = vld [vmem:[%s3271_s2 + $0x1c0] sm:$0xff] }
 0x131   :  { %1817 = vmatpush3.msra.mxu0 %v2338_v29  ;;  %849 = vmatprep.mubr.f32.mxu1 %v564_v52  ;;  %v541_v29 = vld [vmem:[%s3271_s2 + $0xb8] sm:$0xff]  ;;  %v612_v52 = vld [vmem:[%s3271_s2 + $0x2f0] sm:$0xff] }
 0x132   :  { %1818 = vmatprep.subr.mxu0 %v2344_v30  ;;  %795 = vmatmul.mubr.f32.gmra.mxu0 %v530_v53  ;;  %v577_v53 = vld [vmem:[%s3271_s2 + $0x1d8] sm:$0xff] }
 0x133   :  { %850 = vmatmul.mubr.f32.gmra.mxu1 %v563_v54  ;;  %1819 = vmatpush3.msra.mxu0 %v2344_v30  ;;  %v593_v30 = vld [vmem:[%s3271_s2 + $0x258] sm:$0xff]  ;;  %v611_v54 = vld [vmem:[%s3271_s2 + $0x2e8] sm:$0xff] }
 0x134   :  { %1820 = vmatprep.subr.mxu0 %v2326_v27  ;;  %799 = vmatprep.mubr.f32.mxu0 %v534_v55  ;;  %v580_v55 = vld [vmem:[%s3271_s2 + $0x1f0] sm:$0xff] }
 0x135   :  { %1821 = vmatpush3.msra.mxu0 %v2326_v27  ;;  %854 = vmatprep.mubr.f32.mxu1 %v567_v56  ;;  %v538_v27 = vld [vmem:[%s3271_s2 + $0xa0] sm:$0xff]  ;;  %v615_v56 = vld [vmem:[%s3271_s2 + $0x308] sm:$0xff] }
 0x136   :  { %1822 = vmatprep.subr.mxu0 %v2332_v28  ;;  %800 = vmatmul.mubr.f32.gmra.mxu0 %v533_v57  ;;  %v583_v57 = vld [vmem:[%s3271_s2 + $0x208] sm:$0xff] }
 0x137   :  { %855 = vmatmul.mubr.f32.gmra.mxu1 %v566_v58  ;;  %1823 = vmatpush3.msra.mxu0 %v2332_v28  ;;  %v594_v28 = vld [vmem:[%s3271_s2 + $0x260] sm:$0xff] }
 0x138   :  { %1824 = vmatprep.subr.mxu0 %v2314_v25  ;;  %804 = vmatprep.mubr.f32.mxu0 %v537_v59  ;;  %v614_v58 = vld [vmem:[%s3271_s2 + $0x300] sm:$0xff] }
 0x139   :  { %1825 = vmatpush3.msra.mxu0 %v2314_v25  ;;  %859 = vmatprep.mubr.f32.mxu1 %v570_v60  ;;  %v535_v25 = vld [vmem:[%s3271_s2 + $0x88] sm:$0xff]  ;;  %v586_v59 = vld [vmem:[%s3271_s2 + $0x220] sm:$0xff] }
 0x13a   :  { %1826 = vmatprep.subr.mxu0 %v2320_v26  ;;  %805 = vmatmul.mubr.f32.gmra.mxu0 %v536_v61  ;;  %v618_v60 = vld [vmem:[%s3271_s2 + $0x320] sm:$0xff]  ;;  %v589_v61 = vld [vmem:[%s3271_s2 + $0x238] sm:$0xff] }
 0x13b   :  { %860 = vmatmul.mubr.f32.gmra.mxu1 %v569_v62  ;;  %1827 = vmatpush3.msra.mxu0 %v2320_v26  ;;  %v590_v26 = vld [vmem:[%s3271_s2 + $0x240] sm:$0xff]  ;;  %v617_v62 = vld [vmem:[%s3271_s2 + $0x318] sm:$0xff] }
 0x13c   :  { %1828 = vmatprep.subr.mxu0 %v2306_v23  ;;  %809 = vmatprep.mubr.f32.mxu0 %v540_v63  ;;  %v592_v63 = vld [vmem:[%s3271_s2 + $0x250] sm:$0xff] }
 0x13d   :  { %1829 = vmatpush3.msra.mxu0 %v2306_v23  ;;  %864 = vmatprep.mubr.f32.mxu1 %v573_v0  ;;  %v532_v23 = vld [vmem:[%s3271_s2 + $0x70] sm:$0xff]  ;;  %v621_v0 = vld [vmem:[%s3271_s2 + $0x338] sm:$0xff] }
 0x13e   :  { %1830 = vmatprep.subr.mxu0 %v2310_v24  ;;  %810 = vmatmul.mubr.f32.gmra.mxu0 %v539_v1  ;;  %v595_v1 = vld [vmem:[%s3271_s2 + $0x268] sm:$0xff] }
 0x13f   :  { %865 = vmatmul.mubr.f32.gmra.mxu1 %v572_v2  ;;  %1831 = vmatpush3.msra.mxu0 %v2310_v24  ;;  %v591_v24 = vld [vmem:[%s3271_s2 + $0x248] sm:$0xff]  ;;  %v620_v2 = vld [vmem:[%s3271_s2 + $0x330] sm:$0xff] }
 0x140   :  { %1832 = vmatprep.subr.mxu0 %v2298_v21  ;;  %814 = vmatprep.mubr.f32.mxu0 %v543_v3  ;;  %v598_v3 = vld [vmem:[%s3271_s2 + $0x280] sm:$0xff] }
 0x141   :  { %1833 = vmatpush3.msra.mxu0 %v2298_v21  ;;  %869 = vmatprep.mubr.f32.mxu1 %v576_v4  ;;  %v529_v21 = vld [vmem:[%s3271_s2 + $0x58] sm:$0xff]  ;;  %v624_v4 = vld [vmem:[%s3271_s2 + $0x350] sm:$0xff] }
 0x142   :  { %1834 = vmatprep.subr.mxu0 %v2302_v22  ;;  %815 = vmatmul.mubr.f32.gmra.mxu0 %v542_v5  ;;  %v601_v5 = vld [vmem:[%s3271_s2 + $0x298] sm:$0xff] }
 0x143   :  { %870 = vmatmul.mubr.f32.gmra.mxu1 %v575_v6  ;;  %1835 = vmatpush3.msra.mxu0 %v2302_v22  ;;  %v587_v22 = vld [vmem:[%s3271_s2 + $0x228] sm:$0xff] }
 0x144   :  { %819 = vmatprep.mubr.f32.mxu0 %v546_v7  ;;  %874 = vmatprep.mubr.f32.mxu1 %v579_v8  ;;  %v623_v6 = vld [vmem:[%s3271_s2 + $0x348] sm:$0xff]  ;;  %v604_v7 = vld [vmem:[%s3271_s2 + $0x2b0] sm:$0xff] }
 0x145   :  { %v627_v8 = vld [vmem:[%s3271_s2 + $0x368] sm:$0xff] }
 0x146   :  { %820 = vmatmul.mubr.f32.gmra.mxu0 %v545_v9  ;;  %v607_v9 = vld [vmem:[%s3271_s2 + $0x2c8] sm:$0xff] }
 0x147   :  { %875 = vmatmul.mubr.f32.gmra.mxu1 %v578_v10  ;;  %824 = vmatprep.mubr.f32.mxu0 %v549_v11  ;;  %v626_v10 = vld [vmem:[%s3271_s2 + $0x360] sm:$0xff] }
 0x148   :  { %879 = vmatprep.mubr.f32.mxu1 %v582_v12  ;;  %v610_v11 = vld [vmem:[%s3271_s2 + $0x2e0] sm:$0xff] }
 0x149   :  { %v630_v12 = vld [vmem:[%s3271_s2 + $0x380] sm:$0xff] }
 0x14a   :  { %825 = vmatmul.mubr.f32.gmra.mxu0 %v548_v13  ;;  %v613_v13 = vld [vmem:[%s3271_s2 + $0x2f8] sm:$0xff] }
 0x14b   :  { %880 = vmatmul.mubr.f32.gmra.mxu1 %v581_v14  ;;  %1836 = vmatprep.mubr.f32.mxu0 %v520_v15  ;;  %v629_v14 = vld [vmem:[%s3271_s2 + $0x378] sm:$0xff]  ;;  %v616_v15 = vld [vmem:[%s3271_s2 + $0x310] sm:$0xff] }
 0x14c   :  { %884 = vmatprep.mubr.f32.mxu1 %v585_v16  ;;  %v633_v16 = vld [vmem:[%s3271_s2 + $0x398] sm:$0xff] }
 0x14e   :  { %1837 = vmatmul.mubr.f32.vlgmr.msra.gmra.mxu0 %v523_v17  ;;  %v619_v17 = vld [vmem:[%s3271_s2 + $0x328] sm:$0xff] }
 0x14f   :  { %885 = vmatmul.mubr.f32.gmra.mxu1 %v584_v18  ;;  %1839 = vmatprep.mubr.f32.mxu0 %v526_v19  ;;  %v632_v18 = vld [vmem:[%s3271_s2 + $0x390] sm:$0xff]  ;;  %v622_v19 = vld [vmem:[%s3271_s2 + $0x340] sm:$0xff] }
 0x150   :  { %889 = vmatprep.mubr.f32.mxu1 %v588_v20  ;;  %v636_v20 = vld [vmem:[%s3271_s2 + $0x3b0] sm:$0xff] }
 0x152   :  { %1840 = vmatmul.mubr.f32.gmra.mxu0 %v529_v21  ;;  %v625_v21 = vld [vmem:[%s3271_s2 + $0x358] sm:$0xff] }
 0x153   :  { %890 = vmatmul.mubr.f32.gmra.mxu1 %v587_v22  ;;  %1842 = vmatprep.mubr.f32.mxu0 %v532_v23  ;;  %v635_v22 = vld [vmem:[%s3271_s2 + $0x3a8] sm:$0xff]  ;;  %v628_v23 = vld [vmem:[%s3271_s2 + $0x370] sm:$0xff] }
 0x154   :  { %894 = vmatprep.mubr.f32.mxu1 %v591_v24  ;;  %v639_v24 = vld [vmem:[%s3271_s2 + $0x3c8] sm:$0xff] }
 0x156   :  { %1843 = vmatmul.mubr.f32.gmra.mxu0 %v535_v25  ;;  %v631_v25 = vld [vmem:[%s3271_s2 + $0x388] sm:$0xff] }
 0x157   :  { %895 = vmatmul.mubr.f32.gmra.mxu1 %v590_v26  ;;  %1845 = vmatprep.mubr.f32.mxu0 %v538_v27  ;;  %v638_v26 = vld [vmem:[%s3271_s2 + $0x3c0] sm:$0xff] }
 0x158   :  { %899 = vmatprep.mubr.f32.mxu1 %v594_v28  ;;  %v634_v27 = vld [vmem:[%s3271_s2 + $0x3a0] sm:$0xff] }
 0x159   :  { %v642_v28 = vld [vmem:[%s3271_s2 + $0x3e0] sm:$0xff] }
 0x15a   :  { %1846 = vmatmul.mubr.f32.gmra.mxu0 %v541_v29  ;;  %v637_v29 = vld [vmem:[%s3271_s2 + $0x3b8] sm:$0xff] }
 0x15b   :  { %900 = vmatmul.mubr.f32.gmra.mxu1 %v593_v30  ;;  %1848 = vmatprep.mubr.f32.mxu0 %v544_v31  ;;  %v641_v30 = vld [vmem:[%s3271_s2 + $0x3d8] sm:$0xff]  ;;  %v640_v31 = vld [vmem:[%s3271_s2 + $0x3d0] sm:$0xff] }
 0x15c   :  { %904 = vmatprep.mubr.f32.mxu1 %v597_v32  ;;  %v645_v32 = vld [vmem:[%s3271_s2 + $0x3f8] sm:$0xff] }
 0x15e   :  { %1849 = vmatmul.mubr.f32.gmra.mxu0 %v547_v33  ;;  %v643_v33 = vld [vmem:[%s3271_s2 + $0x3e8] sm:$0xff] }
 0x15f   :  { %905 = vmatmul.mubr.f32.gmra.mxu1 %v596_v34  ;;  %1851 = vmatprep.mubr.f32.mxu0 %v550_v35  ;;  %v644_v34 = vld [vmem:[%s3271_s2 + $0x3f0] sm:$0xff]  ;;  %v646_v35 = vld [vmem:[%s3271_s2 + $0x400] sm:$0xff] }
 0x160   :  { %909 = vmatprep.mubr.f32.mxu1 %v600_v36  ;;  %v648_v36 = vld [vmem:[%s3271_s2 + $0x410] sm:$0xff] }
 0x162   :  { %1852 = vmatmul.mubr.f32.gmra.mxu0 %v553_v37  ;;  %v649_v37 = vld [vmem:[%s3271_s2 + $0x418] sm:$0xff] }
 0x163   :  { %910 = vmatmul.mubr.f32.gmra.mxu1 %v599_v38  ;;  %1854 = vmatprep.mubr.f32.mxu0 %v556_v39  ;;  %v647_v38 = vld [vmem:[%s3271_s2 + $0x408] sm:$0xff]  ;;  %v652_v39 = vld [vmem:[%s3271_s2 + $0x430] sm:$0xff] }
 0x164   :  { %914 = vmatprep.mubr.f32.mxu1 %v603_v40  ;;  %v651_v40 = vld [vmem:[%s3271_s2 + $0x428] sm:$0xff] }
 0x166   :  { %1855 = vmatmul.mubr.f32.gmra.mxu0 %v559_v41  ;;  %v655_v41 = vld [vmem:[%s3271_s2 + $0x448] sm:$0xff] }
 0x167   :  { %915 = vmatmul.mubr.f32.gmra.mxu1 %v602_v42  ;;  %1857 = vmatprep.mubr.f32.mxu0 %v562_v43  ;;  %v650_v42 = vld [vmem:[%s3271_s2 + $0x420] sm:$0xff] }
 0x168   :  { %919 = vmatprep.mubr.f32.mxu1 %v606_v44  ;;  %v658_v43 = vld [vmem:[%s3271_s2 + $0x460] sm:$0xff] }
 0x169   :  { %v654_v44 = vld [vmem:[%s3271_s2 + $0x440] sm:$0xff] }
 0x16a   :  { %1858 = vmatmul.mubr.f32.gmra.mxu0 %v565_v45  ;;  %v661_v45 = vld [vmem:[%s3271_s2 + $0x478] sm:$0xff] }
 0x16b   :  { %920 = vmatmul.mubr.f32.gmra.mxu1 %v605_v46  ;;  %1860 = vmatprep.mubr.f32.mxu0 %v568_v47  ;;  %v653_v46 = vld [vmem:[%s3271_s2 + $0x438] sm:$0xff]  ;;  %v664_v47 = vld [vmem:[%s3271_s2 + $0x490] sm:$0xff] }
 0x16c   :  { %924 = vmatprep.mubr.f32.mxu1 %v609_v48  ;;  %v657_v48 = vld [vmem:[%s3271_s2 + $0x458] sm:$0xff] }
 0x16e   :  { %1861 = vmatmul.mubr.f32.gmra.mxu0 %v571_v49  ;;  %v667_v49 = vld [vmem:[%s3271_s2 + $0x4a8] sm:$0xff] }
 0x16f   :  { %925 = vmatmul.mubr.f32.gmra.mxu1 %v608_v50  ;;  %1863 = vmatprep.mubr.f32.mxu0 %v574_v51  ;;  %v656_v50 = vld [vmem:[%s3271_s2 + $0x450] sm:$0xff]  ;;  %v670_v51 = vld [vmem:[%s3271_s2 + $0x4c0] sm:$0xff] }
 0x170   :  { %929 = vmatprep.mubr.f32.mxu1 %v612_v52  ;;  %v660_v52 = vld [vmem:[%s3271_s2 + $0x470] sm:$0xff] }
 0x172   :  { %1864 = vmatmul.mubr.f32.gmra.mxu0 %v577_v53  ;;  %v673_v53 = vld [vmem:[%s3271_s2 + $0x4d8] sm:$0xff] }
 0x173   :  { %930 = vmatmul.mubr.f32.gmra.mxu1 %v611_v54  ;;  %1866 = vmatprep.mubr.f32.mxu0 %v580_v55  ;;  %v659_v54 = vld [vmem:[%s3271_s2 + $0x468] sm:$0xff]  ;;  %v676_v55 = vld [vmem:[%s3271_s2 + $0x4f0] sm:$0xff] }
 0x174   :  { %934 = vmatprep.mubr.f32.mxu1 %v615_v56  ;;  %v663_v56 = vld [vmem:[%s3271_s2 + $0x488] sm:$0xff] }
 0x176   :  { %1867 = vmatmul.mubr.f32.gmra.mxu0 %v583_v57  ;;  %v679_v57 = vld [vmem:[%s3271_s2 + $0x508] sm:$0xff] }
 0x177   :  { %935 = vmatmul.mubr.f32.gmra.mxu1 %v614_v58  ;;  %1869 = vmatprep.mubr.f32.mxu0 %v586_v59  ;;  %v662_v58 = vld [vmem:[%s3271_s2 + $0x480] sm:$0xff] }
 0x178   :  { %939 = vmatprep.mubr.f32.mxu1 %v618_v60  ;;  %v682_v59 = vld [vmem:[%s3271_s2 + $0x520] sm:$0xff] }
 0x179   :  { %v666_v60 = vld [vmem:[%s3271_s2 + $0x4a0] sm:$0xff] }
 0x17a   :  { %1870 = vmatmul.mubr.f32.gmra.mxu0 %v589_v61  ;;  %v685_v61 = vld [vmem:[%s3271_s2 + $0x538] sm:$0xff] }
 0x17b   :  { %940 = vmatmul.mubr.f32.gmra.mxu1 %v617_v62  ;;  %1872 = vmatprep.mubr.f32.mxu0 %v592_v63  ;;  %v665_v62 = vld [vmem:[%s3271_s2 + $0x498] sm:$0xff]  ;;  %v688_v63 = vld [vmem:[%s3271_s2 + $0x550] sm:$0xff] }
 0x17c   :  { %944 = vmatprep.mubr.f32.mxu1 %v621_v0  ;;  %v669_v0 = vld [vmem:[%s3271_s2 + $0x4b8] sm:$0xff] }
 0x17e   :  { %1873 = vmatmul.mubr.f32.gmra.mxu0 %v595_v1  ;;  %v691_v1 = vld [vmem:[%s3271_s2 + $0x568] sm:$0xff] }
 0x17f   :  { %945 = vmatmul.mubr.f32.gmra.mxu1 %v620_v2  ;;  %1875 = vmatprep.mubr.f32.mxu0 %v598_v3  ;;  %v668_v2 = vld [vmem:[%s3271_s2 + $0x4b0] sm:$0xff]  ;;  %v694_v3 = vld [vmem:[%s3271_s2 + $0x580] sm:$0xff] }
 0x180   :  { %949 = vmatprep.mubr.f32.mxu1 %v624_v4  ;;  %v672_v4 = vld [vmem:[%s3271_s2 + $0x4d0] sm:$0xff] }
 0x182   :  { %1876 = vmatmul.mubr.f32.gmra.mxu0 %v601_v5  ;;  %v697_v5 = vld [vmem:[%s3271_s2 + $0x598] sm:$0xff] }
 0x183   :  { %950 = vmatmul.mubr.f32.gmra.mxu1 %v623_v6  ;;  %1878 = vmatprep.mubr.f32.mxu0 %v604_v7  ;;  %v671_v6 = vld [vmem:[%s3271_s2 + $0x4c8] sm:$0xff]  ;;  %v700_v7 = vld [vmem:[%s3271_s2 + $0x5b0] sm:$0xff] }
 0x184   :  { %954 = vmatprep.mubr.f32.mxu1 %v627_v8  ;;  %v675_v8 = vld [vmem:[%s3271_s2 + $0x4e8] sm:$0xff] }
 0x186   :  { %1879 = vmatmul.mubr.f32.gmra.mxu0 %v607_v9  ;;  %v703_v9 = vld [vmem:[%s3271_s2 + $0x5c8] sm:$0xff] }
 0x187   :  { %955 = vmatmul.mubr.f32.gmra.mxu1 %v626_v10  ;;  %1881 = vmatprep.mubr.f32.mxu0 %v610_v11  ;;  %v674_v10 = vld [vmem:[%s3271_s2 + $0x4e0] sm:$0xff] }
 0x188   :  { %959 = vmatprep.mubr.f32.mxu1 %v630_v12  ;;  %v706_v11 = vld [vmem:[%s3271_s2 + $0x5e0] sm:$0xff] }
 0x189   :  { %v678_v12 = vld [vmem:[%s3271_s2 + $0x500] sm:$0xff] }
 0x18a   :  { %1882 = vmatmul.mubr.f32.gmra.mxu0 %v613_v13  ;;  %v709_v13 = vld [vmem:[%s3271_s2 + $0x5f8] sm:$0xff] }
 0x18b   :  { %960 = vmatmul.mubr.f32.gmra.mxu1 %v629_v14  ;;  %1884 = vmatprep.mubr.f32.mxu0 %v616_v15  ;;  %v677_v14 = vld [vmem:[%s3271_s2 + $0x4f8] sm:$0xff] }
 0x18c   :  { %964 = vmatprep.mubr.f32.mxu1 %v633_v16  ;;  %v681_v15 = vld [vmem:[%s3271_s2 + $0x518] sm:$0xff]  ;;  %v680_v16 = vld [vmem:[%s3271_s2 + $0x510] sm:$0xff] }
 0x18e   :  { %1885 = vmatmul.mubr.f32.gmra.mxu0 %v619_v17  ;;  %v684_v17 = vld [vmem:[%s3271_s2 + $0x530] sm:$0xff] }
 0x18f   :  { %965 = vmatmul.mubr.f32.gmra.mxu1 %v632_v18  ;;  %1887 = vmatprep.mubr.f32.mxu0 %v622_v19  ;;  %v683_v18 = vld [vmem:[%s3271_s2 + $0x528] sm:$0xff] }
 0x190   :  { %969 = vmatprep.mubr.f32.mxu1 %v636_v20  ;;  %v687_v19 = vld [vmem:[%s3271_s2 + $0x548] sm:$0xff]  ;;  %v686_v20 = vld [vmem:[%s3271_s2 + $0x540] sm:$0xff] }
 0x192   :  { %1888 = vmatmul.mubr.f32.gmra.mxu0 %v625_v21  ;;  %v690_v21 = vld [vmem:[%s3271_s2 + $0x560] sm:$0xff] }
 0x193   :  { %970 = vmatmul.mubr.f32.gmra.mxu1 %v635_v22  ;;  %1890 = vmatprep.mubr.f32.mxu0 %v628_v23  ;;  %v689_v22 = vld [vmem:[%s3271_s2 + $0x558] sm:$0xff] }
 0x194   :  { %974 = vmatprep.mubr.f32.mxu1 %v639_v24  ;;  %v693_v23 = vld [vmem:[%s3271_s2 + $0x578] sm:$0xff]  ;;  %v692_v24 = vld [vmem:[%s3271_s2 + $0x570] sm:$0xff] }
 0x196   :  { %1891 = vmatmul.mubr.f32.gmra.mxu0 %v631_v25  ;;  %v696_v25 = vld [vmem:[%s3271_s2 + $0x590] sm:$0xff] }
 0x197   :  { %975 = vmatmul.mubr.f32.gmra.mxu1 %v638_v26  ;;  %1893 = vmatprep.mubr.f32.mxu0 %v634_v27  ;;  %v695_v26 = vld [vmem:[%s3271_s2 + $0x588] sm:$0xff] }
 0x198   :  { %979 = vmatprep.mubr.f32.mxu1 %v642_v28  ;;  %v699_v27 = vld [vmem:[%s3271_s2 + $0x5a8] sm:$0xff] }
 0x19a   :  { %1894 = vmatmul.mubr.f32.gmra.mxu0 %v637_v29 }
 0x19b   :  { %980 = vmatmul.mubr.f32.gmra.mxu1 %v641_v30  ;;  %1896 = vmatprep.mubr.f32.mxu0 %v640_v31 }
 0x19c   :  { %984 = vmatprep.mubr.f32.mxu1 %v645_v32  ;;  %v698_v32 = vld [vmem:[%s3271_s2 + $0x5a0] sm:$0xff] }
 0x19e   :  { %1897 = vmatmul.mubr.f32.gmra.mxu0 %v643_v33  ;;  %v702_v33 = vld [vmem:[%s3271_s2 + $0x5c0] sm:$0xff] }
 0x19f   :  { %985 = vmatmul.mubr.f32.gmra.mxu1 %v644_v34  ;;  %1899 = vmatprep.mubr.f32.mxu0 %v646_v35 }
 0x1a0   :  { %989 = vmatprep.mubr.f32.mxu1 %v648_v36 }
 0x1a2   :  { %1900 = vmatmul.mubr.f32.gmra.mxu0 %v649_v37 }
 0x1a3   :  { %990 = vmatmul.mubr.f32.gmra.mxu1 %v647_v38  ;;  %1902 = vmatprep.mubr.f32.mxu0 %v652_v39  ;;  %v701_v38 = vld [vmem:[%s3271_s2 + $0x5b8] sm:$0xff] }
 0x1a4   :  { %994 = vmatprep.mubr.f32.mxu1 %v651_v40  ;;  %v705_v39 = vld [vmem:[%s3271_s2 + $0x5d8] sm:$0xff] }
 0x1a6   :  { %1903 = vmatmul.mubr.f32.gmra.mxu0 %v655_v41 }
 0x1a7   :  { %995 = vmatmul.mubr.f32.gmra.mxu1 %v650_v42  ;;  %1905 = vmatprep.mubr.f32.mxu0 %v658_v43  ;;  %v704_v43 = vld [vmem:[%s3271_s2 + $0x5d0] sm:$0xff] }
 0x1a8   :  { %999 = vmatprep.mubr.f32.mxu1 %v654_v44 }
 0x1aa   :  { %1906 = vmatmul.mubr.f32.gmra.mxu0 %v661_v45  ;;  %v708_v45 = vld [vmem:[%s3271_s2 + $0x5f0] sm:$0xff] }
 0x1ab   :  { %1000 = vmatmul.mubr.f32.gmra.mxu1 %v653_v46  ;;  %1908 = vmatprep.mubr.f32.mxu0 %v664_v47 }
 0x1ac   :  { %1004 = vmatprep.mubr.f32.mxu1 %v657_v48 }
 0x1ae   :  { %1909 = vmatmul.mubr.f32.gmra.mxu0 %v667_v49  ;;  %v707_v49 = vld [vmem:[%s3271_s2 + $0x5e8] sm:$0xff] }
 0x1af   :  { %1005 = vmatmul.mubr.f32.gmra.mxu1 %v656_v50  ;;  %1911 = vmatprep.mubr.f32.mxu0 %v670_v51 }
 0x1b0   :  { %1009 = vmatprep.mubr.f32.mxu1 %v660_v52 }
 0x1b2   :  { %1912 = vmatmul.mubr.f32.gmra.mxu0 %v673_v53 }
 0x1b3   :  { %1010 = vmatmul.mubr.f32.gmra.mxu1 %v659_v54  ;;  %1914 = vmatprep.mubr.f32.mxu0 %v676_v55 }
 0x1b4   :  { %1014 = vmatprep.mubr.f32.mxu1 %v663_v56 }
 0x1b6   :  { %1915 = vmatmul.mubr.f32.gmra.mxu0 %v679_v57 }
 0x1b7   :  { %1015 = vmatmul.mubr.f32.gmra.mxu1 %v662_v58  ;;  %1917 = vmatprep.mubr.f32.mxu0 %v682_v59 }
 0x1b8   :  { %1019 = vmatprep.mubr.f32.mxu1 %v666_v60 }
 0x1ba   :  { %1918 = vmatmul.mubr.f32.gmra.mxu0 %v685_v61 }
 0x1bb   :  { %1020 = vmatmul.mubr.f32.gmra.mxu1 %v665_v62  ;;  %1920 = vmatprep.mubr.f32.mxu0 %v688_v63 }
 0x1bc   :  { %1024 = vmatprep.mubr.f32.mxu1 %v669_v0 }
 0x1be   :  { %1921 = vmatmul.mubr.f32.gmra.mxu0 %v691_v1 }
 0x1bf   :  { %1025 = vmatmul.mubr.f32.gmra.mxu1 %v668_v2  ;;  %1923 = vmatprep.mubr.f32.mxu0 %v694_v3 }
 0x1c0   :  { %1029 = vmatprep.mubr.f32.mxu1 %v672_v4 }
 0x1c2   :  { %1924 = vmatmul.mubr.f32.gmra.mxu0 %v697_v5 }
 0x1c3   :  { %1030 = vmatmul.mubr.f32.gmra.mxu1 %v671_v6  ;;  %1926 = vmatprep.mubr.f32.mxu0 %v700_v7 }
 0x1c4   :  { %1034 = vmatprep.mubr.f32.mxu1 %v675_v8 }
 0x1c6   :  { %1927 = vmatmul.mubr.f32.gmra.mxu0 %v703_v9 }
 0x1c7   :  { %1035 = vmatmul.mubr.f32.gmra.mxu1 %v674_v10  ;;  %1929 = vmatprep.mubr.f32.mxu0 %v706_v11 }
 0x1c8   :  { %1039 = vmatprep.mubr.f32.mxu1 %v678_v12 }
 0x1ca   :  { %1930 = vmatmul.mubr.f32.gmra.mxu0 %v709_v13 }
 0x1cb   :  { %1040 = vmatmul.mubr.f32.gmra.mxu1 %v677_v14 }
 0x1cc   :  { %1044 = vmatprep.mubr.f32.mxu1 %v681_v15 }
 0x1cf   :  { %1045 = vmatmul.mubr.f32.gmra.mxu1 %v680_v16 }
 0x1d0   :  { %1049 = vmatprep.mubr.f32.mxu1 %v684_v17 }
 0x1d3   :  { %1050 = vmatmul.mubr.f32.gmra.mxu1 %v683_v18 }
 0x1d4   :  { %1054 = vmatprep.mubr.f32.mxu1 %v687_v19 }
 0x1d7   :  { %1055 = vmatmul.mubr.f32.gmra.mxu1 %v686_v20 }
 0x1d8   :  { %1059 = vmatprep.mubr.f32.mxu1 %v690_v21 }
 0x1db   :  { %1060 = vmatmul.mubr.f32.gmra.mxu1 %v689_v22 }
 0x1dc   :  { %1064 = vmatprep.mubr.f32.mxu1 %v693_v23 }
 0x1df   :  { %1065 = vmatmul.mubr.f32.gmra.mxu1 %v692_v24 }
 0x1e0   :  { %1069 = vmatprep.mubr.f32.mxu1 %v696_v25 }
 0x1e2   :  { %v2935_v28 = vpop.f32.mrf.mxu0  ;;  %v2937_v29 = vpop.f32.mrf.mxu1 }
 0x1e3   :  { %1070 = vmatmul.mubr.f32.gmra.mxu1 %v695_v26 }
 0x1e4   :  { %v778_v30 = vpop.f32.mrf.mxu0  ;;  %v833_v31 = vpop.f32.mrf.mxu1  ;;  %1074 = vmatprep.mubr.f32.mxu1 %v699_v27 }
 0x1e6   :  { %v781_v34 = vpop.f32.mrf.mxu0  ;;  %v2945_v35 = vpop.f32.mrf.mxu1 }
 0x1e7   :  { %1075 = vmatmul.mubr.f32.gmra.mxu1 %v698_v32 }
 0x1e8   :  { %v783_v36 = vpop.f32.mrf.mxu0  ;;  %v838_v37 = vpop.f32.mrf.mxu1  ;;  %1079 = vmatprep.mubr.f32.mxu1 %v702_v33 }
 0x1ea   :  { %v786_v40 = vpop.f32.mrf.mxu0 }
 0x1eb   :  { %v2953_v41 = vpop.f32.mrf.mxu1  ;;  %1080 = vmatmul.mubr.f32.gmra.mxu1 %v701_v38 }
 0x1ec   :  { %v788_v42 = vpop.f32.mrf.mxu0  ;;  %1084 = vmatprep.mubr.f32.mxu1 %v705_v39 }
 0x1ed   :  { %v843_v44 = vpop.f32.mrf.mxu1 }
 0x1ee   :  { %v791_v46 = vpop.f32.mrf.mxu0 }
 0x1ef   :  { %v2961_v47 = vpop.f32.mrf.mxu1  ;;  %1085 = vmatmul.mubr.f32.gmra.mxu1 %v704_v43 }
 0x1f0   :  { %v793_v48 = vpop.f32.mrf.mxu0  ;;  %1089 = vmatprep.mubr.f32.mxu1 %v708_v45 }
 0x1f1   :  { %v848_v50 = vpop.f32.mrf.mxu1 }
 0x1f2   :  { %v796_v51 = vpop.f32.mrf.mxu0 }
 0x1f3   :  { %v2966_v52 = vpop.f32.mrf.mxu1  ;;  %1090 = vmatmul.mubr.f32.gmra.mxu1 %v707_v49 }
 0x1f4   :  { %v798_v53 = vpop.f32.mrf.mxu0 }
 0x1f5   :  { %v853_v54 = vpop.f32.mrf.mxu1 }
 0x1f6   :  { %v801_v55 = vpop.f32.mrf.mxu0 }
 0x1f7   :  { %v2968_v56 = vpop.f32.mrf.mxu1 }
 0x1f8   :  { %v803_v57 = vpop.f32.mrf.mxu0 }
 0x1f9   :  { %v858_v58 = vpop.f32.mrf.mxu1 }
 0x1fa   :  { %v806_v59 = vpop.f32.mrf.mxu0 }
 0x1fb   :  { %v2970_v60 = vpop.f32.mrf.mxu1 }
 0x1fc   :  { %v808_v61 = vpop.f32.mrf.mxu0 }
 0x1fd   :  { %v863_v62 = vpop.f32.mrf.mxu1 }
 0x1fe   :  { %v811_v63 = vpop.f32.mrf.mxu0 }
 0x1ff   :  { %v2972_v0 = vpop.f32.mrf.mxu1 }
 0x200   :  { %v813_v1 = vpop.f32.mrf.mxu0 }
 0x201   :  { %v868_v2 = vpop.f32.mrf.mxu1 }
 0x202   :  { %v816_v3 = vpop.f32.mrf.mxu0 }
 0x203   :  { %v2974_v4 = vpop.f32.mrf.mxu1 }
 0x204   :  { %v818_v5 = vpop.f32.mrf.mxu0 }
 0x205   :  { %v873_v6 = vpop.f32.mrf.mxu1 }
 0x206   :  { %v821_v7 = vpop.f32.mrf.mxu0 }
 0x207   :  { %v2976_v8 = vpop.f32.mrf.mxu1 }
 0x208   :  { %v823_v9 = vpop.f32.mrf.mxu0 }
 0x209   :  { %v878_v10 = vpop.f32.mrf.mxu1 }
 0x20a   :  { %v826_v11 = vpop.f32.mrf.mxu0 }
 0x20b   :  { %v2978_v12 = vpop.f32.mrf.mxu1 }
 0x20c   :  { %v828_v13 = vpop.f32.mrf.mxu0 }
 0x20d   :  { %v883_v14 = vpop.f32.mrf.mxu1 }
 0x20e   :  { %v1838_v15 = vpop.f32.mrf.mxu0 }
 0x20f   :  { %v2980_v16 = vpop.f32.mrf.mxu1  ;;  %v1167_v17 = vadd.f32 %v1838_v15, %v781_v34 }
 0x210   :  { %v1161_v18 = vpop.f32.mrf.mxu0 }
 0x211   :  { %1482 = vst.msk [vmem:[%s3272_s3 + $0x8] sm:$0xff] %vm1480_vm2, %v1167_v17  ;;  %v888_v19 = vpop.f32.mrf.mxu1  ;;  %v1162_v20 = vadd.f32 %v1161_v18, %v2935_v28 }
 0x212   :  { %v1841_v21 = vpop.f32.mrf.mxu0 }
 0x213   :  { %1481 = vst.msk [vmem:[%s3272_s3] sm:$0xff] %vm1480_vm2, %v1162_v20  ;;  %v2991_v22 = vpop.f32.mrf.mxu1  ;;  %v1177_v23 = vadd.f32 %v1841_v21, %v791_v46 }
 0x214   :  { %v1171_v24 = vpop.f32.mrf.mxu0 }
 0x215   :  { %1484 = vst.msk [vmem:[%s3272_s3 + $0x18] sm:$0xff] %vm1480_vm2, %v1177_v23  ;;  %v893_v25 = vpop.f32.mrf.mxu1  ;;  %v1172_v26 = vadd.f32 %v1171_v24, %v786_v40 }
 0x216   :  { %v1844_v27 = vpop.f32.mrf.mxu0 }
 0x217   :  { %1483 = vst.msk [vmem:[%s3272_s3 + $0x10] sm:$0xff] %vm1480_vm2, %v1172_v26  ;;  %v3001_v28 = vpop.f32.mrf.mxu1  ;;  %v1187_v30 = vadd.f32 %v1844_v27, %v801_v55 }
 0x218   :  { %v1181_v31 = vpop.f32.mrf.mxu0 }
 0x219   :  { %1486 = vst.msk [vmem:[%s3272_s3 + $0x28] sm:$0xff] %vm1480_vm2, %v1187_v30  ;;  %v898_v32 = vpop.f32.mrf.mxu1  ;;  %v1182_v33 = vadd.f32 %v1181_v31, %v796_v51 }
 0x21a   :  { %v1847_v34 = vpop.f32.mrf.mxu0 }
 0x21b   :  { %1485 = vst.msk [vmem:[%s3272_s3 + $0x20] sm:$0xff] %vm1480_vm2, %v1182_v33  ;;  %v3011_v36 = vpop.f32.mrf.mxu1  ;;  %v1197_v37 = vadd.f32 %v1847_v34, %v811_v63 }
 0x21c   :  { %v1191_v38 = vpop.f32.mrf.mxu0 }
 0x21d   :  { %1488 = vst.msk [vmem:[%s3272_s3 + $0x38] sm:$0xff] %vm1480_vm2, %v1197_v37  ;;  %v903_v39 = vpop.f32.mrf.mxu1  ;;  %v1192_v40 = vadd.f32 %v1191_v38, %v806_v59 }
 0x21e   :  { %v1850_v42 = vpop.f32.mrf.mxu0 }
 0x21f   :  { %1487 = vst.msk [vmem:[%s3272_s3 + $0x30] sm:$0xff] %vm1480_vm2, %v1192_v40  ;;  %v3021_v43 = vpop.f32.mrf.mxu1  ;;  %v1207_v44 = vadd.f32 %v1850_v42, %v821_v7 }
 0x220   :  { %v1201_v45 = vpop.f32.mrf.mxu0 }
 0x221   :  { %1490 = vst.msk [vmem:[%s3272_s3 + $0x48] sm:$0xff] %vm1480_vm2, %v1207_v44  ;;  %v908_v46 = vpop.f32.mrf.mxu1  ;;  %v1202_v48 = vadd.f32 %v1201_v45, %v816_v3 }
 0x222   :  { %v1853_v49 = vpop.f32.mrf.mxu0 }
 0x223   :  { %1489 = vst.msk [vmem:[%s3272_s3 + $0x40] sm:$0xff] %vm1480_vm2, %v1202_v48  ;;  %v3031_v50 = vpop.f32.mrf.mxu1  ;;  %v1217_v51 = vadd.f32 %v1853_v49, %v2937_v29 }
 0x224   :  { %v1211_v53 = vpop.f32.mrf.mxu0 }
 0x225   :  { %1492 = vst.msk [vmem:[%s3272_s3 + $0x58] sm:$0xff] %vm1480_vm2, %v1217_v51  ;;  %v913_v54 = vpop.f32.mrf.mxu1  ;;  %v1212_v55 = vadd.f32 %v1211_v53, %v826_v11 }
 0x226   :  { %v1856_v57 = vpop.f32.mrf.mxu0 }
 0x227   :  { %1491 = vst.msk [vmem:[%s3272_s3 + $0x50] sm:$0xff] %vm1480_vm2, %v1212_v55  ;;  %v3042_v58 = vpop.f32.mrf.mxu1  ;;  %v1227_v59 = vadd.f32 %v1856_v57, %v2953_v41 }
 0x228   :  { %v1221_v61 = vpop.f32.mrf.mxu0 }
 0x229   :  { %1494 = vst.msk [vmem:[%s3272_s3 + $0x68] sm:$0xff] %vm1480_vm2, %v1227_v59  ;;  %v918_v29 = vpop.f32.mrf.mxu1  ;;  %v1222_v62 = vadd.f32 %v1221_v61, %v2945_v35 }
 0x22a   :  { %v1859_v63 = vpop.f32.mrf.mxu0 }
 0x22b   :  { %1493 = vst.msk [vmem:[%s3272_s3 + $0x60] sm:$0xff] %vm1480_vm2, %v1222_v62  ;;  %v921_v1 = vpop.f32.mrf.mxu1  ;;  %v1237_v2 = vadd.f32 %v1859_v63, %v2966_v52 }
 0x22c   :  { %v1231_v3 = vpop.f32.mrf.mxu0 }
 0x22d   :  { %1496 = vst.msk [vmem:[%s3272_s3 + $0x78] sm:$0xff] %vm1480_vm2, %v1237_v2  ;;  %v923_v41 = vpop.f32.mrf.mxu1  ;;  %v1232_v5 = vadd.f32 %v1231_v3, %v2961_v47 }
 0x22e   :  { %v1862_v6 = vpop.f32.mrf.mxu0 }
 0x22f   :  { %1495 = vst.msk [vmem:[%s3272_s3 + $0x70] sm:$0xff] %vm1480_vm2, %v1232_v5  ;;  %v926_v35 = vpop.f32.mrf.mxu1  ;;  %v1247_v7 = vadd.f32 %v1862_v6, %v2970_v60 }
 0x230   :  { %v1241_v9 = vpop.f32.mrf.mxu0 }
 0x231   :  { %1498 = vst.msk [vmem:[%s3272_s3 + $0x88] sm:$0xff] %vm1480_vm2, %v1247_v7  ;;  %v928_v52 = vpop.f32.mrf.mxu1  ;;  %v1242_v10 = vadd.f32 %v1241_v9, %v2968_v56 }
 0x232   :  { %v1865_v11 = vpop.f32.mrf.mxu0 }
 0x233   :  { %1497 = vst.msk [vmem:[%s3272_s3 + $0x80] sm:$0xff] %vm1480_vm2, %v1242_v10  ;;  %v931_v47 = vpop.f32.mrf.mxu1  ;;  %v1257_v13 = vadd.f32 %v1865_v11, %v2974_v4 }
 0x234   :  { %v1251_v14 = vpop.f32.mrf.mxu0 }
 0x235   :  { %1500 = vst.msk [vmem:[%s3272_s3 + $0x98] sm:$0xff] %vm1480_vm2, %v1257_v13  ;;  %v933_v60 = vpop.f32.mrf.mxu1  ;;  %v1252_v15 = vadd.f32 %v1251_v14, %v2972_v0 }
 0x236   :  { %v1868_v17 = vpop.f32.mrf.mxu0 }
 0x237   :  { %1499 = vst.msk [vmem:[%s3272_s3 + $0x90] sm:$0xff] %vm1480_vm2, %v1252_v15  ;;  %v936_v56 = vpop.f32.mrf.mxu1  ;;  %v1267_v18 = vadd.f32 %v1868_v17, %v2978_v12 }
 0x238   :  { %v1261_v19 = vpop.f32.mrf.mxu0 }
 0x239   :  { %1502 = vst.msk [vmem:[%s3272_s3 + $0xa8] sm:$0xff] %vm1480_vm2, %v1267_v18  ;;  %v938_v4 = vpop.f32.mrf.mxu1  ;;  %v1262_v20 = vadd.f32 %v1261_v19, %v2976_v8 }
 0x23a   :  { %v1871_v21 = vpop.f32.mrf.mxu0 }
 0x23b   :  { %1501 = vst.msk [vmem:[%s3272_s3 + $0xa0] sm:$0xff] %vm1480_vm2, %v1262_v20  ;;  %v941_v0 = vpop.f32.mrf.mxu1  ;;  %v1277_v23 = vadd.f32 %v1871_v21, %v2991_v22 }
 0x23c   :  { %v1271_v24 = vpop.f32.mrf.mxu0 }
 0x23d   :  { %1504 = vst.msk [vmem:[%s3272_s3 + $0xb8] sm:$0xff] %vm1480_vm2, %v1277_v23  ;;  %v943_v12 = vpop.f32.mrf.mxu1  ;;  %v1272_v25 = vadd.f32 %v1271_v24, %v2980_v16 }
 0x23e   :  { %v1874_v26 = vpop.f32.mrf.mxu0 }
 0x23f   :  { %1503 = vst.msk [vmem:[%s3272_s3 + $0xb0] sm:$0xff] %vm1480_vm2, %v1272_v25  ;;  %v946_v8 = vpop.f32.mrf.mxu1  ;;  %v1287_v27 = vadd.f32 %v1874_v26, %v3011_v36 }
 0x240   :  { %v1281_v30 = vpop.f32.mrf.mxu0 }
 0x241   :  { %1506 = vst.msk [vmem:[%s3272_s3 + $0xc8] sm:$0xff] %vm1480_vm2, %v1287_v27  ;;  %v948_v22 = vpop.f32.mrf.mxu1  ;;  %v1282_v31 = vadd.f32 %v1281_v30, %v3001_v28 }
 0x242   :  { %v1877_v32 = vpop.f32.mrf.mxu0 }
 0x243   :  { %1505 = vst.msk [vmem:[%s3272_s3 + $0xc0] sm:$0xff] %vm1480_vm2, %v1282_v31  ;;  %v951_v16 = vpop.f32.mrf.mxu1  ;;  %v1297_v33 = vadd.f32 %v1877_v32, %v3031_v50 }
 0x244   :  { %v1291_v34 = vpop.f32.mrf.mxu0 }
 0x245   :  { %1508 = vst.msk [vmem:[%s3272_s3 + $0xd8] sm:$0xff] %vm1480_vm2, %v1297_v33  ;;  %v953_v36 = vpop.f32.mrf.mxu1  ;;  %v1292_v37 = vadd.f32 %v1291_v34, %v3021_v43 }
 0x246   :  { %v1880_v38 = vpop.f32.mrf.mxu0 }
 0x247   :  { %1507 = vst.msk [vmem:[%s3272_s3 + $0xd0] sm:$0xff] %vm1480_vm2, %v1292_v37  ;;  %v956_v28 = vpop.f32.mrf.mxu1  ;;  %v1307_v39 = vadd.f32 %v1880_v38, %v921_v1 }
 0x248   :  { %v1301_v40 = vpop.f32.mrf.mxu0 }
 0x249   :  { %1510 = vst.msk [vmem:[%s3272_s3 + $0xe8] sm:$0xff] %vm1480_vm2, %v1307_v39  ;;  %v958_v42 = vpop.f32.mrf.mxu1  ;;  %v1302_v44 = vadd.f32 %v1301_v40, %v3042_v58 }
 0x24a   :  { %v1883_v45 = vpop.f32.mrf.mxu0 }
 0x24b   :  { %1509 = vst.msk [vmem:[%s3272_s3 + $0xe0] sm:$0xff] %vm1480_vm2, %v1302_v44  ;;  %v961_v43 = vpop.f32.mrf.mxu1  ;;  %v1317_v46 = vadd.f32 %v1883_v45, %v931_v47 }
 0x24c   :  { %v1311_v48 = vpop.f32.mrf.mxu0 }
 0x24d   :  { %1512 = vst.msk [vmem:[%s3272_s3 + $0xf8] sm:$0xff] %vm1480_vm2, %v1317_v46  ;;  %v963_v49 = vpop.f32.mrf.mxu1  ;;  %v1312_v50 = vadd.f32 %v1311_v48, %v926_v35 }
 0x24e   :  { %v1886_v51 = vpop.f32.mrf.mxu0 }
 0x24f   :  { %1511 = vst.msk [vmem:[%s3272_s3 + $0xf0] sm:$0xff] %vm1480_vm2, %v1312_v50  ;;  %v966_v53 = vpop.f32.mrf.mxu1  ;;  %v1327_v54 = vadd.f32 %v1886_v51, %v941_v0 }
 0x250   :  { %v1321_v55 = vpop.f32.mrf.mxu0 }
 0x251   :  { %1514 = vst.msk [vmem:[%s3272_s3 + $0x108] sm:$0xff] %vm1480_vm2, %v1327_v54  ;;  %v968_v57 = vpop.f32.mrf.mxu1  ;;  %v1322_v58 = vadd.f32 %v1321_v55, %v936_v56 }
 0x252   :  { %v1889_v59 = vpop.f32.mrf.mxu0 }
 0x253   :  { %1513 = vst.msk [vmem:[%s3272_s3 + $0x100] sm:$0xff] %vm1480_vm2, %v1322_v58  ;;  %v971_v61 = vpop.f32.mrf.mxu1  ;;  %v1337_v29 = vadd.f32 %v1889_v59, %v951_v16 }
 0x254   :  { %v1331_v62 = vpop.f32.mrf.mxu0 }
 0x255   :  { %1516 = vst.msk [vmem:[%s3272_s3 + $0x118] sm:$0xff] %vm1480_vm2, %v1337_v29  ;;  %v973_v63 = vpop.f32.mrf.mxu1  ;;  %v1332_v1 = vadd.f32 %v1331_v62, %v946_v8 }
 0x256   :  { %v1892_v2 = vpop.f32.mrf.mxu0 }
 0x257   :  { %1515 = vst.msk [vmem:[%s3272_s3 + $0x110] sm:$0xff] %vm1480_vm2, %v1332_v1  ;;  %v976_v3 = vpop.f32.mrf.mxu1  ;;  %v1347_v41 = vadd.f32 %v1892_v2, %v961_v43 }
 0x258   :  { %v1341_v5 = vpop.f32.mrf.mxu0 }
 0x259   :  { %1518 = vst.msk [vmem:[%s3272_s3 + $0x128] sm:$0xff] %vm1480_vm2, %v1347_v41  ;;  %v978_v6 = vpop.f32.mrf.mxu1  ;;  %v1342_v35 = vadd.f32 %v1341_v5, %v956_v28 }
 0x25a   :  { %v1895_v7 = vpop.f32.mrf.mxu0 }
 0x25b   :  { %1517 = vst.msk [vmem:[%s3272_s3 + $0x120] sm:$0xff] %vm1480_vm2, %v1342_v35  ;;  %v981_v9 = vpop.f32.mrf.mxu1  ;;  %v1357_v52 = vadd.f32 %v1895_v7, %v971_v61 }
 0x25c   :  { %v1351_v10 = vpop.f32.mrf.mxu0 }
 0x25d   :  { %1520 = vst.msk [vmem:[%s3272_s3 + $0x138] sm:$0xff] %vm1480_vm2, %v1357_v52  ;;  %v983_v11 = vpop.f32.mrf.mxu1  ;;  %v1352_v47 = vadd.f32 %v1351_v10, %v966_v53 }
 0x25e   :  { %v1898_v13 = vpop.f32.mrf.mxu0 }
 0x25f   :  { %1519 = vst.msk [vmem:[%s3272_s3 + $0x130] sm:$0xff] %vm1480_vm2, %v1352_v47  ;;  %v986_v14 = vpop.f32.mrf.mxu1  ;;  %v1367_v60 = vadd.f32 %v1898_v13, %v981_v9 }
 0x260   :  { %v1361_v15 = vpop.f32.mrf.mxu0 }
 0x261   :  { %1522 = vst.msk [vmem:[%s3272_s3 + $0x148] sm:$0xff] %vm1480_vm2, %v1367_v60  ;;  %v988_v17 = vpop.f32.mrf.mxu1  ;;  %v1362_v56 = vadd.f32 %v1361_v15, %v976_v3 }
 0x262   :  { %v1901_v18 = vpop.f32.mrf.mxu0 }
 0x263   :  { %1521 = vst.msk [vmem:[%s3272_s3 + $0x140] sm:$0xff] %vm1480_vm2, %v1362_v56  ;;  %v991_v19 = vpop.f32.mrf.mxu1 }
 0x264   :  { %v1377_v4 = vadd.f32 %v1901_v18, %v991_v19  ;;  %v1371_v20 = vpop.f32.mrf.mxu0 }
 0x265   :  { %v993_v21 = vpop.f32.mrf.mxu1  ;;  %v1372_v0 = vadd.f32 %v1371_v20, %v986_v14 }
 0x266   :  { %1524 = vst.msk [vmem:[%s3272_s3 + $0x158] sm:$0xff] %vm1480_vm2, %v1377_v4  ;;  %v1904_v23 = vpop.f32.mrf.mxu0 }
 0x267   :  { %1523 = vst.msk [vmem:[%s3272_s3 + $0x150] sm:$0xff] %vm1480_vm2, %v1372_v0  ;;  %v996_v24 = vpop.f32.mrf.mxu1 }
 0x268   :  { %v1381_v12 = vpop.f32.mrf.mxu0 }
 0x269   :  { %v998_v25 = vpop.f32.mrf.mxu1  ;;  %v1382_v26 = vadd.f32 %v1381_v12, %v996_v24 }
 0x26a   :  { %v1907_v8 = vpop.f32.mrf.mxu0 }
 0x26b   :  { %1525 = vst.msk [vmem:[%s3272_s3 + $0x160] sm:$0xff] %vm1480_vm2, %v1382_v26  ;;  %v1001_v27 = vpop.f32.mrf.mxu1 }
 0x26c   :  { %v1387_v30 = vadd.f32 %v1904_v23, %v1001_v27  ;;  %v1391_v31 = vpop.f32.mrf.mxu0 }
 0x26d   :  { %v1003_v22 = vpop.f32.mrf.mxu1 }
 0x26e   :  { %1526 = vst.msk [vmem:[%s3272_s3 + $0x168] sm:$0xff] %vm1480_vm2, %v1387_v30  ;;  %v1910_v34 = vpop.f32.mrf.mxu0 }
 0x26f   :  { %v1006_v32 = vpop.f32.mrf.mxu1 }
 0x270   :  { %v1392_v16 = vadd.f32 %v1391_v31, %v1006_v32  ;;  %v1401_v28 = vpop.f32.mrf.mxu0 }
 0x271   :  { %v1008_v33 = vpop.f32.mrf.mxu1 }
 0x272   :  { %1527 = vst.msk [vmem:[%s3272_s3 + $0x170] sm:$0xff] %vm1480_vm2, %v1392_v16  ;;  %v1913_v44 = vpop.f32.mrf.mxu0 }
 0x273   :  { %v1011_v36 = vpop.f32.mrf.mxu1 }
 0x274   :  { %v1397_v37 = vadd.f32 %v1907_v8, %v1011_v36  ;;  %v1411_v48 = vpop.f32.mrf.mxu0 }
 0x275   :  { %v1013_v38 = vpop.f32.mrf.mxu1 }
 0x276   :  { %1528 = vst.msk [vmem:[%s3272_s3 + $0x178] sm:$0xff] %vm1480_vm2, %v1397_v37  ;;  %v1916_v53 = vpop.f32.mrf.mxu0 }
 0x277   :  { %v1016_v39 = vpop.f32.mrf.mxu1 }
 0x278   :  { %v1402_v40 = vadd.f32 %v1401_v28, %v1016_v39  ;;  %v1421_v58 = vpop.f32.mrf.mxu0 }
 0x279   :  { %v1018_v42 = vpop.f32.mrf.mxu1 }
 0x27a   :  { %1529 = vst.msk [vmem:[%s3272_s3 + $0x180] sm:$0xff] %vm1480_vm2, %v1402_v40  ;;  %v1919_v62 = vpop.f32.mrf.mxu0 }
 0x27b   :  { %v1021_v45 = vpop.f32.mrf.mxu1 }
 0x27c   :  { %v1407_v43 = vadd.f32 %v1910_v34, %v1021_v45  ;;  %v1431_v3 = vpop.f32.mrf.mxu0 }
 0x27d   :  { %v1023_v46 = vpop.f32.mrf.mxu1 }
 0x27e   :  { %1530 = vst.msk [vmem:[%s3272_s3 + $0x188] sm:$0xff] %vm1480_vm2, %v1407_v43  ;;  %v1922_v35 = vpop.f32.mrf.mxu0 }
 0x27f   :  { %v1026_v49 = vpop.f32.mrf.mxu1 }
 0x280   :  { %v1412_v50 = vadd.f32 %v1411_v48, %v1026_v49  ;;  %v1441_v10 = vpop.f32.mrf.mxu0 }
 0x281   :  { %v1028_v51 = vpop.f32.mrf.mxu1 }
 0x282   :  { %1531 = vst.msk [vmem:[%s3272_s3 + $0x190] sm:$0xff] %vm1480_vm2, %v1412_v50  ;;  %v1925_v14 = vpop.f32.mrf.mxu0 }
 0x283   :  { %v1031_v54 = vpop.f32.mrf.mxu1 }
 0x284   :  { %v1417_v55 = vadd.f32 %v1913_v44, %v1031_v54  ;;  %v1451_v56 = vpop.f32.mrf.mxu0 }
 0x285   :  { %v1033_v57 = vpop.f32.mrf.mxu1 }
 0x286   :  { %1532 = vst.msk [vmem:[%s3272_s3 + $0x198] sm:$0xff] %vm1480_vm2, %v1417_v55  ;;  %v1928_v20 = vpop.f32.mrf.mxu0 }
 0x287   :  { %v1036_v59 = vpop.f32.mrf.mxu1 }
 0x288   :  { %v1422_v61 = vadd.f32 %v1421_v58, %v1036_v59  ;;  %v1461_v24 = vpop.f32.mrf.mxu0 }
 0x289   :  { %v1038_v29 = vpop.f32.mrf.mxu1 }
 0x28a   :  { %1533 = vst.msk [vmem:[%s3272_s3 + $0x1a0] sm:$0xff] %vm1480_vm2, %v1422_v61  ;;  %v1931_v8 = vpop.f32.mrf.mxu0 }
 0x28b   :  { %v1041_v63 = vpop.f32.mrf.mxu1 }
 0x28c   :  { %v1427_v1 = vadd.f32 %v1916_v53, %v1041_v63  ;;  %v1471_v31 = vpop.f32.mrf.mxu0 }
 0x28d   :  { %v1043_v2 = vpop.f32.mrf.mxu1 }
 0x28e   :  { %1534 = vst.msk [vmem:[%s3272_s3 + $0x1a8] sm:$0xff] %vm1480_vm2, %v1427_v1 }
 0x28f   :  { %v1046_v41 = vpop.f32.mrf.mxu1 }
 0x290   :  { %v1432_v5 = vadd.f32 %v1431_v3, %v1046_v41 }
 0x291   :  { %v1048_v6 = vpop.f32.mrf.mxu1 }
 0x292   :  { %1535 = vst.msk [vmem:[%s3272_s3 + $0x1b0] sm:$0xff] %vm1480_vm2, %v1432_v5 }
 0x293   :  { %v1051_v7 = vpop.f32.mrf.mxu1 }
 0x294   :  { %v1437_v9 = vadd.f32 %v1919_v62, %v1051_v7 }
 0x295   :  { %v1053_v52 = vpop.f32.mrf.mxu1 }
 0x296   :  { %1536 = vst.msk [vmem:[%s3272_s3 + $0x1b8] sm:$0xff] %vm1480_vm2, %v1437_v9 }
 0x297   :  { %v1056_v11 = vpop.f32.mrf.mxu1 }
 0x298   :  { %v1442_v47 = vadd.f32 %v1441_v10, %v1056_v11 }
 0x299   :  { %v1058_v13 = vpop.f32.mrf.mxu1 }
 0x29a   :  { %1537 = vst.msk [vmem:[%s3272_s3 + $0x1c0] sm:$0xff] %vm1480_vm2, %v1442_v47 }
 0x29b   :  { %v1061_v60 = vpop.f32.mrf.mxu1 }
 0x29c   :  { %v1447_v15 = vadd.f32 %v1922_v35, %v1061_v60 }
 0x29d   :  { %v1063_v17 = vpop.f32.mrf.mxu1 }
 0x29e   :  { %1538 = vst.msk [vmem:[%s3272_s3 + $0x1c8] sm:$0xff] %vm1480_vm2, %v1447_v15 }
 0x29f   :  { %v1066_v18 = vpop.f32.mrf.mxu1 }
 0x2a0   :  { %v1452_v19 = vadd.f32 %v1451_v56, %v1066_v18 }
 0x2a1   :  { %v1068_v4 = vpop.f32.mrf.mxu1 }
 0x2a2   :  { %1539 = vst.msk [vmem:[%s3272_s3 + $0x1d0] sm:$0xff] %vm1480_vm2, %v1452_v19 }
 0x2a3   :  { %v1071_v21 = vpop.f32.mrf.mxu1 }
 0x2a4   :  { %v1457_v0 = vadd.f32 %v1925_v14, %v1071_v21 }
 0x2a5   :  { %v1073_v23 = vpop.f32.mrf.mxu1 }
 0x2a6   :  { %1540 = vst.msk [vmem:[%s3272_s3 + $0x1d8] sm:$0xff] %vm1480_vm2, %v1457_v0 }
 0x2a7   :  { %v1076_v12 = vpop.f32.mrf.mxu1 }
 0x2a8   :  { %v1462_v25 = vadd.f32 %v1461_v24, %v1076_v12 }
 0x2a9   :  { %v1078_v26 = vpop.f32.mrf.mxu1 }
 0x2aa   :  { %1541 = vst.msk [vmem:[%s3272_s3 + $0x1e0] sm:$0xff] %vm1480_vm2, %v1462_v25 }
 0x2ab   :  { %v1081_v27 = vpop.f32.mrf.mxu1 }
 0x2ac   :  { %v1467_v30 = vadd.f32 %v1928_v20, %v1081_v27 }
 0x2ad   :  { %v1083_v22 = vpop.f32.mrf.mxu1 }
 0x2ae   :  { %1542 = vst.msk [vmem:[%s3272_s3 + $0x1e8] sm:$0xff] %vm1480_vm2, %v1467_v30 }
 0x2af   :  { %v1086_v32 = vpop.f32.mrf.mxu1 }
 0x2b0   :  { %v1472_v16 = vadd.f32 %v1471_v31, %v1086_v32 }
 0x2b1   :  { %v1088_v33 = vpop.f32.mrf.mxu1 }
 0x2b2   :  { %1543 = vst.msk [vmem:[%s3272_s3 + $0x1f0] sm:$0xff] %vm1480_vm2, %v1472_v16 }
 0x2b3   :  { %v1091_v34 = vpop.f32.mrf.mxu1 }
 0x2b4   :  { %v1477_v36 = vadd.f32 %v1931_v8, %v1091_v34 }
 0x2b5   :  { %v1093_v37 = vpop.f32.mrf.mxu1 }
 0x2b6   :  { %1544 = vst.msk [vmem:[%s3272_s3 + $0x1f8] sm:$0xff] %vm1480_vm2, %v1477_v36 }

// kernel: learn_to_resize.11
= control target key start
LH: loop header
LB: loop body
LE: loop exit
PB: predicated region body
PF: predicated region fallthrough
CT: control target
= control target key end

     0   :  { %v409_v3 = vmov 0   ;;  %vm108_vm0 = vcmask 130048   ;;  %s714_s0 = inlined_call_operand.vmem [shape: f32[144,512], index: 0, kind: input, shape index: {}]   ;;  %s715_s1 = inlined_call_operand.vmem [shape: f32[16,144], index: 1, kind: input, shape index: {}]   ;;  %s716_s2 = inlined_call_operand.vmem [shape: f32[16,1], index: 2, kind: input, shape index: {}]   ;;  %s717_s3 = inlined_call_operand.vmem [shape: f32[16,1], index: 3, kind: input, shape index: {}]   ;;  %s718_s4 = inlined_call_operand.vmem [shape: f32[16,1], index: 4, kind: input, shape index: {}]   ;;  %s719_s5 = inlined_call_operand.vmem [shape: f32[16,512], index: 5, kind: output, shape index: {}]  }
   0x1   :  { %v85_v0 = vld [vmem:[%s714_s0 + $0x1e8] sm:$0xff]  ;;  %v87_v1 = vld [vmem:[%s714_s0 + $0x1f8] sm:$0xff]  ;;  %v84_v2 = vld [vmem:[%s714_s0 + $0x1e0] sm:$0xff]  ;;  %403 = vset.pattern.permute.xlu0 %v409_v3  ;;  %404 = vset.pattern.permute.xlu1 %v409_v3 }
   0x2   :  { %115 = vmatprep.subr.mxu0 %v85_v0  ;;  %192 = vmatprep.subr.mxu1 %v87_v1  ;;  %v86_v4 = vld [vmem:[%s714_s0 + $0x1f0] sm:$0xff]  ;;  %v81_v5 = vld [vmem:[%s714_s0 + $0x1c8] sm:$0xff]  ;;  %v83_v6 = vld [vmem:[%s714_s0 + $0x1d8] sm:$0xff] }
   0x3   :  { %116 = vmatpush1.msra.mxu0 %v84_v2  ;;  %193 = vmatpush1.msra.mxu1 %v86_v4  ;;  %v80_v7 = vld [vmem:[%s714_s0 + $0x1c0] sm:$0xff]  ;;  %v82_v8 = vld [vmem:[%s714_s0 + $0x1d0] sm:$0xff]  ;;  %v77_v9 = vld [vmem:[%s714_s0 + $0x1a8] sm:$0xff] }
   0x4   :  { %117 = vmatprep.subr.mxu0 %v81_v5  ;;  %194 = vmatprep.subr.mxu1 %v83_v6  ;;  %v79_v10 = vld [vmem:[%s714_s0 + $0x1b8] sm:$0xff]  ;;  %v76_v11 = vld [vmem:[%s714_s0 + $0x1a0] sm:$0xff]  ;;  %v78_v12 = vld [vmem:[%s714_s0 + $0x1b0] sm:$0xff] }
   0x5   :  { %118 = vmatpush1.msra.mxu0 %v80_v7  ;;  %195 = vmatpush1.msra.mxu1 %v82_v8  ;;  %v73_v13 = vld [vmem:[%s714_s0 + $0x188] sm:$0xff]  ;;  %v75_v14 = vld [vmem:[%s714_s0 + $0x198] sm:$0xff]  ;;  %v72_v15 = vld [vmem:[%s714_s0 + $0x180] sm:$0xff] }
   0x6   :  { %119 = vmatprep.subr.mxu0 %v77_v9  ;;  %196 = vmatprep.subr.mxu1 %v79_v10  ;;  %v74_v16 = vld [vmem:[%s714_s0 + $0x190] sm:$0xff]  ;;  %v69_v17 = vld [vmem:[%s714_s0 + $0x168] sm:$0xff]  ;;  %v71_v18 = vld [vmem:[%s714_s0 + $0x178] sm:$0xff] }
   0x7   :  { %120 = vmatpush1.msra.mxu0 %v76_v11  ;;  %197 = vmatpush1.msra.mxu1 %v78_v12  ;;  %v68_v19 = vld [vmem:[%s714_s0 + $0x160] sm:$0xff]  ;;  %v70_v20 = vld [vmem:[%s714_s0 + $0x170] sm:$0xff]  ;;  %v65_v21 = vld [vmem:[%s714_s0 + $0x148] sm:$0xff] }
   0x8   :  { %121 = vmatprep.subr.mxu0 %v73_v13  ;;  %198 = vmatprep.subr.mxu1 %v75_v14  ;;  %v67_v22 = vld [vmem:[%s714_s0 + $0x158] sm:$0xff]  ;;  %v64_v23 = vld [vmem:[%s714_s0 + $0x140] sm:$0xff]  ;;  %v66_v24 = vld [vmem:[%s714_s0 + $0x150] sm:$0xff] }
   0x9   :  { %122 = vmatpush1.msra.mxu0 %v72_v15  ;;  %199 = vmatpush1.msra.mxu1 %v74_v16  ;;  %v61_v25 = vld [vmem:[%s714_s0 + $0x128] sm:$0xff]  ;;  %v63_v26 = vld [vmem:[%s714_s0 + $0x138] sm:$0xff]  ;;  %v60_v27 = vld [vmem:[%s714_s0 + $0x120] sm:$0xff] }
   0xa   :  { %123 = vmatprep.subr.mxu0 %v69_v17  ;;  %200 = vmatprep.subr.mxu1 %v71_v18  ;;  %v62_v28 = vld [vmem:[%s714_s0 + $0x130] sm:$0xff]  ;;  %v57_v29 = vld [vmem:[%s714_s0 + $0x108] sm:$0xff]  ;;  %v59_v30 = vld [vmem:[%s714_s0 + $0x118] sm:$0xff] }
   0xb   :  { %124 = vmatpush1.msra.mxu0 %v68_v19  ;;  %201 = vmatpush1.msra.mxu1 %v70_v20  ;;  %v56_v31 = vld [vmem:[%s714_s0 + $0x100] sm:$0xff]  ;;  %v58_v32 = vld [vmem:[%s714_s0 + $0x110] sm:$0xff]  ;;  %v53_v33 = vld [vmem:[%s714_s0 + $0xe8] sm:$0xff] }
   0xc   :  { %125 = vmatprep.subr.mxu0 %v65_v21  ;;  %202 = vmatprep.subr.mxu1 %v67_v22  ;;  %v55_v34 = vld [vmem:[%s714_s0 + $0xf8] sm:$0xff]  ;;  %v52_v35 = vld [vmem:[%s714_s0 + $0xe0] sm:$0xff]  ;;  %v54_v36 = vld [vmem:[%s714_s0 + $0xf0] sm:$0xff] }
   0xd   :  { %126 = vmatpush1.msra.mxu0 %v64_v23  ;;  %203 = vmatpush1.msra.mxu1 %v66_v24  ;;  %v49_v37 = vld [vmem:[%s714_s0 + $0xc8] sm:$0xff]  ;;  %v51_v38 = vld [vmem:[%s714_s0 + $0xd8] sm:$0xff]  ;;  %v48_v39 = vld [vmem:[%s714_s0 + $0xc0] sm:$0xff] }
   0xe   :  { %127 = vmatprep.subr.mxu0 %v61_v25  ;;  %204 = vmatprep.subr.mxu1 %v63_v26  ;;  %v50_v40 = vld [vmem:[%s714_s0 + $0xd0] sm:$0xff]  ;;  %v45_v41 = vld [vmem:[%s714_s0 + $0xa8] sm:$0xff]  ;;  %v47_v42 = vld [vmem:[%s714_s0 + $0xb8] sm:$0xff] }
   0xf   :  { %128 = vmatpush1.msra.mxu0 %v60_v27  ;;  %205 = vmatpush1.msra.mxu1 %v62_v28  ;;  %v44_v43 = vld [vmem:[%s714_s0 + $0xa0] sm:$0xff]  ;;  %v46_v44 = vld [vmem:[%s714_s0 + $0xb0] sm:$0xff]  ;;  %v41_v45 = vld [vmem:[%s714_s0 + $0x88] sm:$0xff] }
  0x10   :  { %129 = vmatprep.subr.mxu0 %v57_v29  ;;  %206 = vmatprep.subr.mxu1 %v59_v30  ;;  %v43_v46 = vld [vmem:[%s714_s0 + $0x98] sm:$0xff]  ;;  %v40_v47 = vld [vmem:[%s714_s0 + $0x80] sm:$0xff]  ;;  %v42_v48 = vld [vmem:[%s714_s0 + $0x90] sm:$0xff] }
  0x11   :  { %130 = vmatpush1.msra.mxu0 %v56_v31  ;;  %207 = vmatpush1.msra.mxu1 %v58_v32  ;;  %v37_v49 = vld [vmem:[%s714_s0 + $0x68] sm:$0xff]  ;;  %v39_v50 = vld [vmem:[%s714_s0 + $0x78] sm:$0xff]  ;;  %v36_v51 = vld [vmem:[%s714_s0 + $0x60] sm:$0xff] }
  0x12   :  { %131 = vmatprep.subr.mxu0 %v53_v33  ;;  %208 = vmatprep.subr.mxu1 %v55_v34  ;;  %v38_v52 = vld [vmem:[%s714_s0 + $0x70] sm:$0xff]  ;;  %v33_v53 = vld [vmem:[%s714_s0 + $0x48] sm:$0xff]  ;;  %v35_v54 = vld [vmem:[%s714_s0 + $0x58] sm:$0xff] }
  0x13   :  { %132 = vmatpush1.msra.mxu0 %v52_v35  ;;  %209 = vmatpush1.msra.mxu1 %v54_v36  ;;  %v32_v55 = vld [vmem:[%s714_s0 + $0x40] sm:$0xff]  ;;  %v34_v56 = vld [vmem:[%s714_s0 + $0x50] sm:$0xff]  ;;  %v29_v57 = vld [vmem:[%s714_s0 + $0x28] sm:$0xff] }
  0x14   :  { %133 = vmatprep.subr.mxu0 %v49_v37  ;;  %210 = vmatprep.subr.mxu1 %v51_v38  ;;  %v31_v58 = vld [vmem:[%s714_s0 + $0x38] sm:$0xff]  ;;  %v28_v59 = vld [vmem:[%s714_s0 + $0x20] sm:$0xff]  ;;  %v30_v60 = vld [vmem:[%s714_s0 + $0x30] sm:$0xff] }
  0x15   :  { %134 = vmatpush1.msra.mxu0 %v48_v39  ;;  %211 = vmatpush1.msra.mxu1 %v50_v40  ;;  %v25_v61 = vld [vmem:[%s714_s0 + $0x8] sm:$0xff]  ;;  %v27_v62 = vld [vmem:[%s714_s0 + $0x18] sm:$0xff]  ;;  %v24_v63 = vld [vmem:[%s714_s0] sm:$0xff] }
  0x16   :  { %135 = vmatprep.subr.mxu0 %v45_v41  ;;  %212 = vmatprep.subr.mxu1 %v47_v42  ;;  %v26_v0 = vld [vmem:[%s714_s0 + $0x10] sm:$0xff]  ;;  %v93_v1 = vld [vmem:[%s714_s0 + $0x228] sm:$0xff]  ;;  %v95_v2 = vld [vmem:[%s714_s0 + $0x238] sm:$0xff] }
  0x17   :  { %136 = vmatpush1.msra.mxu0 %v44_v43  ;;  %213 = vmatpush1.msra.mxu1 %v46_v44  ;;  %v92_v3 = vld [vmem:[%s714_s0 + $0x220] sm:$0xff]  ;;  %v94_v4 = vld [vmem:[%s714_s0 + $0x230] sm:$0xff]  ;;  %v89_v5 = vld [vmem:[%s714_s0 + $0x208] sm:$0xff] }
  0x18   :  { %137 = vmatprep.subr.mxu0 %v41_v45  ;;  %214 = vmatprep.subr.mxu1 %v43_v46  ;;  %v91_v6 = vld [vmem:[%s714_s0 + $0x218] sm:$0xff]  ;;  %v88_v7 = vld [vmem:[%s714_s0 + $0x200] sm:$0xff]  ;;  %v21_v8 = vld [vmem:[%s715_s1 + $0x8] sm:$0xff] }
  0x19   :  { %138 = vmatpush1.msra.mxu0 %v40_v47  ;;  %215 = vmatpush1.msra.mxu1 %v42_v48  ;;  %v90_v9 = vld [vmem:[%s714_s0 + $0x210] sm:$0xff]  ;;  %v20_v10 = vld [vmem:[%s715_s1] sm:$0xff]  ;;  %v23_v11 = vld [vmem:[%s715_s1 + $0x18] sm:$0xff] }
  0x1a   :  { %139 = vmatprep.subr.mxu0 %v37_v49  ;;  %216 = vmatprep.subr.mxu1 %v39_v50  ;;  %v96_v12 = vld [vmem:[%s716_s2] sm:$0xff]  ;;  %v22_v13 = vld [vmem:[%s715_s1 + $0x10] sm:$0xff]  ;;  %v97_v14 = vld [vmem:[%s716_s2 + $0x8] sm:$0xff] }
  0x1b   :  { %140 = vmatpush1.msra.mxu0 %v36_v51  ;;  %217 = vmatpush1.msra.mxu1 %v38_v52  ;;  %v322_v39 = vld [vmem:[%s717_s3] sm:$0xff]  ;;  %v323_v40 = vld [vmem:[%s717_s3 + $0x8] sm:$0xff] }
  0x1c   :  { %141 = vmatprep.subr.mxu0 %v33_v53  ;;  %218 = vmatprep.subr.mxu1 %v35_v54  ;;  %v342_v41 = vld [vmem:[%s718_s4] sm:$0xff] }
  0x1d   :  { %142 = vmatpush1.msra.mxu0 %v32_v55  ;;  %219 = vmatpush1.msra.mxu1 %v34_v56 }
  0x1e   :  { %143 = vmatprep.subr.mxu0 %v29_v57  ;;  %220 = vmatprep.subr.mxu1 %v31_v58 }
  0x1f   :  { %144 = vmatpush1.msra.mxu0 %v28_v59  ;;  %221 = vmatpush1.msra.mxu1 %v30_v60 }
  0x20   :  { %145 = vmatprep.subr.mxu0 %v25_v61  ;;  %222 = vmatprep.subr.mxu1 %v27_v62 }
  0x21   :  { %146 = vmatpush1.msra.mxu0 %v24_v63  ;;  %223 = vmatpush1.msra.mxu1 %v26_v0 }
  0x22   :  { %175 = vmatprep.subr.mxu0 %v93_v1  ;;  %252 = vmatprep.subr.mxu1 %v95_v2 }
  0x23   :  { %176 = vmatpush2.msra.mxu0 %v92_v3  ;;  %253 = vmatpush2.msra.mxu1 %v94_v4  ;;  %v343_v4 = vld [vmem:[%s718_s4 + $0x8] sm:$0xff] }
  0x24   :  { %177 = vmatprep.subr.mxu0 %v89_v5  ;;  %254 = vmatprep.subr.mxu1 %v91_v6 }
  0x25   :  { %178 = vmatpush2.msra.mxu0 %v88_v7  ;;  %398 = vmatprep.mubr.msk.f32.mxu0 %vm108_vm0, %v21_v8 }
  0x26   :  { %255 = vmatpush2.msra.mxu1 %v90_v9  ;;  %400 = vmatprep.mubr.msk.f32.mxu1 %vm108_vm0, %v21_v8 }
  0x27   :  { %180 = vmatmul.mubr.f32.vlgmr.msra.gmra.mxu0 %v20_v10  ;;  %257 = vmatmul.mubr.f32.vlgmr.msra.gmra.mxu1 %v20_v10 }
  0x28   :  { %399 = vmatprep.mubr.msk.f32.mxu0 %vm108_vm0, %v23_v11  ;;  %401 = vmatprep.mubr.msk.f32.mxu1 %vm108_vm0, %v23_v11 }
  0x29   :  { %100 = vperm.xlu0 %403, %v96_v12  }
  0x2b   :  { %186 = vmatmul.mubr.f32.gmra.mxu0 %v22_v13  ;;  %263 = vmatmul.mubr.f32.gmra.mxu1 %v22_v13 }
  0x2d   :  { %105 = vperm.xlu0 %403, %v97_v14  }
  0xa4   :  { %v101_v15 = vpop.permute.xlu0 %100 }
  0xa8   :  { %v106_v26 = vpop.permute.xlu0 %105 }
  0xe7   :  { %v181_v16 = vpop.f32.mrf.mxu0  ;;  %v258_v17 = vpop.f32.mrf.mxu1 }
  0xe8   :  { %v182_v20 = vadd.f32 %v181_v16, %v101_v15  ;;  %v259_v24 = vadd.f32 %v258_v17, %v101_v15 }
  0xe9   :  { %v183_v18 = vpop.f32.mrf.mxu0  ;;  %v260_v19 = vpop.f32.mrf.mxu1 }
  0xea   :  { %v184_v21 = vadd.f32 %v183_v18, %v101_v15  ;;  %v261_v28 = vadd.f32 %v260_v19, %v101_v15 }
  0xeb   :  { %v187_v22 = vpop.f32.mrf.mxu0  ;;  %v264_v23 = vpop.f32.mrf.mxu1 }
  0xec   :  { %v269_v25 = vadd.f32 %v184_v21, %v182_v20  ;;  %v188_v29 = vadd.f32 %v187_v22, %v106_v26  ;;  %v265_v33 = vadd.f32 %v264_v23, %v106_v26 }
  0xed   :  { %v189_v27 = vpop.f32.mrf.mxu0  ;;  %v266_v32 = vpop.f32.mrf.mxu1 }
  0xee   :  { %v190_v30 = vadd.f32 %v189_v27, %v106_v26  ;;  %v270_v31 = vadd.f32 %v269_v25, %v259_v24  ;;  %v267_v36 = vadd.f32 %v266_v32, %v106_v26 }
  0xf0   :  { %v274_v34 = vadd.f32 %v190_v30, %v188_v29  ;;  %v271_v35 = vadd.f32 %v270_v31, %v261_v28 }
  0xf2   :  { %272 = vadd.xlane.f32.xlu1 %v271_v35  ;;  %v275_v37 = vadd.f32 %v274_v34, %v265_v33 }
  0xf4   :  { %v276_v38 = vadd.f32 %v275_v37, %v267_v36 }
  0xf6   :  { %277 = vadd.xlane.f32.xlu1 %v276_v38 }
 0x107   :  { %326 = vperm.xlu1 %404, %v322_v39  }
 0x10b   :  { %331 = vperm.xlu1 %404, %v323_v40  }
 0x10f   :  { %346 = vperm.xlu1 %404, %v342_v41  }
 0x17b   :  { %v273_v42 = vpop.xlane.xlu1 %272 }
 0x17c   :  { %v280_v43 = vmul.f32 0.001953125, %v273_v42 }
 0x17e   :  { %v282_v44 = vsub.f32 %v182_v20, %v280_v43  ;;  %v283_v45 = vsub.f32 %v184_v21, %v280_v43  ;;  %v284_v46 = vsub.f32 %v259_v24, %v280_v43  ;;  %v285_v48 = vsub.f32 %v261_v28, %v280_v43 }
 0x17f   :  { %v278_v47 = vpop.xlane.xlu1 %277 }
 0x180   :  { %v281_v49 = vmul.f32 0.001953125, %v278_v47  ;;  %v290_v50 = vmul.f32 %v282_v44, %v282_v44  ;;  %v291_v51 = vmul.f32 %v283_v45, %v283_v45  ;;  %v292_v52 = vmul.f32 %v284_v46, %v284_v46 }
 0x181   :  { %v293_v57 = vmul.f32 %v285_v48, %v285_v48 }
 0x182   :  { %v286_v53 = vsub.f32 %v188_v29, %v281_v49  ;;  %v287_v54 = vsub.f32 %v190_v30, %v281_v49  ;;  %v298_v55 = vadd.f32 %v291_v51, %v290_v50  ;;  %v288_v56 = vsub.f32 %v265_v33, %v281_v49 }
 0x183   :  { %v289_v59 = vsub.f32 %v267_v36, %v281_v49  ;;  %v327_v5 = vpop.permute.xlu1 %326 }
 0x184   :  { %v299_v58 = vadd.f32 %v298_v55, %v292_v52  ;;  %v294_v60 = vmul.f32 %v286_v53, %v286_v53  ;;  %v295_v61 = vmul.f32 %v287_v54, %v287_v54  ;;  %v296_v63 = vmul.f32 %v288_v56, %v288_v56 }
 0x185   :  { %v297_v1 = vmul.f32 %v289_v59, %v289_v59 }
 0x186   :  { %v300_v62 = vadd.f32 %v299_v58, %v293_v57  ;;  %v303_v0 = vadd.f32 %v295_v61, %v294_v60 }
 0x187   :  { %v332_v6 = vpop.permute.xlu1 %331 }
 0x188   :  { %301 = vadd.xlane.f32.xlu0 %v300_v62  ;;  %v304_v2 = vadd.f32 %v303_v0, %v296_v63 }
 0x18a   :  { %v305_v3 = vadd.f32 %v304_v2, %v297_v1 }
 0x18b   :  { %v347_v7 = vpop.permute.xlu1 %346 }
 0x18c   :  { %306 = vadd.xlane.f32.xlu1 %v305_v3 }
 0x19d   :  { %351 = vperm.xlu1 %404, %v343_v4  }
 0x211   :  { %v302_v8 = vpop.xlane.xlu0 %301 }
 0x212   :  { %v308_v9 = vmul.f32 0.001953125, %v302_v8 }
 0x214   :  { %v310_v10 = vadd.f32 1e-05, %v308_v9 }
 0x215   :  { %v307_v11 = vpop.xlane.xlu1 %306 }
 0x216   :  { %405 = vrsqrt.f32 %v310_v10  ;;  %v309_v12 = vmul.f32 0.001953125, %v307_v11 }
 0x218   :  { %v311_v13 = vadd.f32 1e-05, %v309_v12 }
 0x219   :  { %v352_v36 = vpop.permute.xlu1 %351 }
 0x21a   :  { %407 = vrsqrt.f32 %v311_v13 }
 0x223   :  { %v406_v14 = vpop.eup %405 }
 0x224   :  { %v314_v15 = vmul.f32 %v406_v14, %v282_v44  ;;  %v315_v16 = vmul.f32 %v406_v14, %v283_v45  ;;  %v316_v17 = vmul.f32 %v406_v14, %v284_v46  ;;  %v317_v18 = vmul.f32 %v406_v14, %v285_v48 }
 0x226   :  { %v334_v19 = vmul.f32 %v327_v5, %v314_v15  ;;  %v335_v20 = vmul.f32 %v327_v5, %v315_v16  ;;  %v336_v21 = vmul.f32 %v327_v5, %v316_v17  ;;  %v337_v22 = vmul.f32 %v327_v5, %v317_v18 }
 0x227   :  { %v408_v23 = vpop.eup %407 }
 0x228   :  { %v318_v24 = vmul.f32 %v408_v23, %v286_v53  ;;  %v319_v25 = vmul.f32 %v408_v23, %v287_v54  ;;  %v320_v26 = vmul.f32 %v408_v23, %v288_v56  ;;  %v321_v27 = vmul.f32 %v408_v23, %v289_v59 }
 0x229   :  { %v354_v28 = vadd.f32 %v347_v7, %v334_v19  ;;  %v355_v29 = vadd.f32 %v347_v7, %v335_v20  ;;  %v356_v30 = vadd.f32 %v347_v7, %v336_v21  ;;  %v357_v31 = vadd.f32 %v347_v7, %v337_v22 }
 0x22a   :  { %v338_v32 = vmul.f32 %v332_v6, %v318_v24  ;;  %v339_v33 = vmul.f32 %v332_v6, %v319_v25  ;;  %v340_v34 = vmul.f32 %v332_v6, %v320_v26  ;;  %v341_v35 = vmul.f32 %v332_v6, %v321_v27 }
 0x22b   :  { %vm362_vm1 = vcmp.gt.f32.partialorder %v354_v28, 0.0  ;;  %vm363_vm2 = vcmp.gt.f32.partialorder %v355_v29, 0.0  ;;  %vm364_vm3 = vcmp.gt.f32.partialorder %v356_v30, 0.0  ;;  %vm365_vm4 = vcmp.gt.f32.partialorder %v357_v31, 0.0 }
 0x22c   :  { %v370_v37 = vmul.f32 0.2, %v354_v28  ;;  %v371_v38 = vmul.f32 0.2, %v355_v29  ;;  %v372_v39 = vmul.f32 0.2, %v356_v30  ;;  %v358_v40 = vadd.f32 %v352_v36, %v338_v32 }
 0x22d   :  { %v373_v41 = vmul.f32 0.2, %v357_v31  ;;  %v359_v42 = vadd.f32 %v352_v36, %v339_v33  ;;  %v360_v43 = vadd.f32 %v352_v36, %v340_v34  ;;  %v361_v44 = vadd.f32 %v352_v36, %v341_v35 }
 0x22e   :  { %v378_v45 = vsel %vm362_vm1, %v354_v28, %v370_v37  ;;  %v379_v46 = vsel %vm363_vm2, %v355_v29, %v371_v38  ;;  %v380_v47 = vsel %vm364_vm3, %v356_v30, %v372_v39  ;;  %vm366_vm5 = vcmp.gt.f32.partialorder %v358_v40, 0.0 }
 0x22f   :  { %v381_v48 = vsel %vm365_vm4, %v357_v31, %v373_v41  ;;  %386 = vst [vmem:[%s719_s5] sm:$0xff] %v378_v45  ;;  %387 = vst [vmem:[%s719_s5 + $0x8] sm:$0xff] %v379_v46  ;;  %vm367_vm6 = vcmp.gt.f32.partialorder %v359_v42, 0.0  ;;  %vm368_vm7 = vcmp.gt.f32.partialorder %v360_v43, 0.0  ;;  %vm369_vm8 = vcmp.gt.f32.partialorder %v361_v44, 0.0 }
 0x230   :  { %388 = vst [vmem:[%s719_s5 + $0x10] sm:$0xff] %v380_v47  ;;  %389 = vst [vmem:[%s719_s5 + $0x18] sm:$0xff] %v381_v48  ;;  %v374_v49 = vmul.f32 0.2, %v358_v40  ;;  %v375_v50 = vmul.f32 0.2, %v359_v42 }
 0x231   :  { %v376_v51 = vmul.f32 0.2, %v360_v43  ;;  %v377_v52 = vmul.f32 0.2, %v361_v44 }
 0x232   :  { %v382_v53 = vsel %vm366_vm5, %v358_v40, %v374_v49  ;;  %v383_v54 = vsel %vm367_vm6, %v359_v42, %v375_v50 }
 0x233   :  { %v384_v55 = vsel %vm368_vm7, %v360_v43, %v376_v51  ;;  %v385_v56 = vsel %vm369_vm8, %v361_v44, %v377_v52  ;;  %390 = vst [vmem:[%s719_s5 + $0x20] sm:$0xff] %v382_v53  ;;  %391 = vst [vmem:[%s719_s5 + $0x28] sm:$0xff] %v383_v54 }
 0x234   :  { %392 = vst [vmem:[%s719_s5 + $0x30] sm:$0xff] %v384_v55  ;;  %393 = vst [vmem:[%s719_s5 + $0x38] sm:$0xff] %v385_v56 }

// kernel: learn_to_resize.12
= control target key start
LH: loop header
LB: loop body
LE: loop exit
PB: predicated region body
PF: predicated region fallthrough
CT: control target
= control target key end

     0   :  { %v404_v3 = vmov 0   ;;  %vm111_vm0 = vcmask 130048   ;;  %s738_s0 = inlined_call_operand.vmem [shape: f32[144,512], index: 0, kind: input, shape index: {}]   ;;  %s739_s1 = inlined_call_operand.vmem [shape: f32[16,144], index: 1, kind: input, shape index: {}]   ;;  %s740_s2 = inlined_call_operand.vmem [shape: f32[16,1], index: 2, kind: input, shape index: {}]   ;;  %s741_s3 = inlined_call_operand.vmem [shape: f32[16,1], index: 3, kind: input, shape index: {}]   ;;  %s742_s4 = inlined_call_operand.vmem [shape: f32[16,1], index: 4, kind: input, shape index: {}]   ;;  %s743_s5 = inlined_call_operand.vmem [shape: f32[16,512], index: 5, kind: input, shape index: {}]   ;;  %s744_s6 = inlined_call_operand.vmem [shape: f32[16,512], index: 6, kind: output, shape index: {}]  }
   0x1   :  { %v88_v0 = vld [vmem:[%s738_s0 + $0x1e8] sm:$0xff]  ;;  %v90_v1 = vld [vmem:[%s738_s0 + $0x1f8] sm:$0xff]  ;;  %v87_v2 = vld [vmem:[%s738_s0 + $0x1e0] sm:$0xff]  ;;  %398 = vset.pattern.permute.xlu0 %v404_v3  ;;  %399 = vset.pattern.permute.xlu1 %v404_v3 }
   0x2   :  { %118 = vmatprep.subr.mxu0 %v88_v0  ;;  %195 = vmatprep.subr.mxu1 %v90_v1  ;;  %v89_v4 = vld [vmem:[%s738_s0 + $0x1f0] sm:$0xff]  ;;  %v84_v5 = vld [vmem:[%s738_s0 + $0x1c8] sm:$0xff]  ;;  %v86_v6 = vld [vmem:[%s738_s0 + $0x1d8] sm:$0xff] }
   0x3   :  { %119 = vmatpush1.msra.mxu0 %v87_v2  ;;  %196 = vmatpush1.msra.mxu1 %v89_v4  ;;  %v83_v7 = vld [vmem:[%s738_s0 + $0x1c0] sm:$0xff]  ;;  %v85_v8 = vld [vmem:[%s738_s0 + $0x1d0] sm:$0xff]  ;;  %v80_v9 = vld [vmem:[%s738_s0 + $0x1a8] sm:$0xff] }
   0x4   :  { %120 = vmatprep.subr.mxu0 %v84_v5  ;;  %197 = vmatprep.subr.mxu1 %v86_v6  ;;  %v82_v10 = vld [vmem:[%s738_s0 + $0x1b8] sm:$0xff]  ;;  %v79_v11 = vld [vmem:[%s738_s0 + $0x1a0] sm:$0xff]  ;;  %v81_v12 = vld [vmem:[%s738_s0 + $0x1b0] sm:$0xff] }
   0x5   :  { %121 = vmatpush1.msra.mxu0 %v83_v7  ;;  %198 = vmatpush1.msra.mxu1 %v85_v8  ;;  %v76_v13 = vld [vmem:[%s738_s0 + $0x188] sm:$0xff]  ;;  %v78_v14 = vld [vmem:[%s738_s0 + $0x198] sm:$0xff]  ;;  %v75_v15 = vld [vmem:[%s738_s0 + $0x180] sm:$0xff] }
   0x6   :  { %122 = vmatprep.subr.mxu0 %v80_v9  ;;  %199 = vmatprep.subr.mxu1 %v82_v10  ;;  %v77_v16 = vld [vmem:[%s738_s0 + $0x190] sm:$0xff]  ;;  %v72_v17 = vld [vmem:[%s738_s0 + $0x168] sm:$0xff]  ;;  %v74_v18 = vld [vmem:[%s738_s0 + $0x178] sm:$0xff] }
   0x7   :  { %123 = vmatpush1.msra.mxu0 %v79_v11  ;;  %200 = vmatpush1.msra.mxu1 %v81_v12  ;;  %v71_v19 = vld [vmem:[%s738_s0 + $0x160] sm:$0xff]  ;;  %v73_v20 = vld [vmem:[%s738_s0 + $0x170] sm:$0xff]  ;;  %v68_v21 = vld [vmem:[%s738_s0 + $0x148] sm:$0xff] }
   0x8   :  { %124 = vmatprep.subr.mxu0 %v76_v13  ;;  %201 = vmatprep.subr.mxu1 %v78_v14  ;;  %v70_v22 = vld [vmem:[%s738_s0 + $0x158] sm:$0xff]  ;;  %v67_v23 = vld [vmem:[%s738_s0 + $0x140] sm:$0xff]  ;;  %v69_v24 = vld [vmem:[%s738_s0 + $0x150] sm:$0xff] }
   0x9   :  { %125 = vmatpush1.msra.mxu0 %v75_v15  ;;  %202 = vmatpush1.msra.mxu1 %v77_v16  ;;  %v64_v25 = vld [vmem:[%s738_s0 + $0x128] sm:$0xff]  ;;  %v66_v26 = vld [vmem:[%s738_s0 + $0x138] sm:$0xff]  ;;  %v63_v27 = vld [vmem:[%s738_s0 + $0x120] sm:$0xff] }
   0xa   :  { %126 = vmatprep.subr.mxu0 %v72_v17  ;;  %203 = vmatprep.subr.mxu1 %v74_v18  ;;  %v65_v28 = vld [vmem:[%s738_s0 + $0x130] sm:$0xff]  ;;  %v60_v29 = vld [vmem:[%s738_s0 + $0x108] sm:$0xff]  ;;  %v62_v30 = vld [vmem:[%s738_s0 + $0x118] sm:$0xff] }
   0xb   :  { %127 = vmatpush1.msra.mxu0 %v71_v19  ;;  %204 = vmatpush1.msra.mxu1 %v73_v20  ;;  %v59_v31 = vld [vmem:[%s738_s0 + $0x100] sm:$0xff]  ;;  %v61_v32 = vld [vmem:[%s738_s0 + $0x110] sm:$0xff]  ;;  %v56_v33 = vld [vmem:[%s738_s0 + $0xe8] sm:$0xff] }
   0xc   :  { %128 = vmatprep.subr.mxu0 %v68_v21  ;;  %205 = vmatprep.subr.mxu1 %v70_v22  ;;  %v58_v34 = vld [vmem:[%s738_s0 + $0xf8] sm:$0xff]  ;;  %v55_v35 = vld [vmem:[%s738_s0 + $0xe0] sm:$0xff]  ;;  %v57_v36 = vld [vmem:[%s738_s0 + $0xf0] sm:$0xff] }
   0xd   :  { %129 = vmatpush1.msra.mxu0 %v67_v23  ;;  %206 = vmatpush1.msra.mxu1 %v69_v24  ;;  %v52_v37 = vld [vmem:[%s738_s0 + $0xc8] sm:$0xff]  ;;  %v54_v38 = vld [vmem:[%s738_s0 + $0xd8] sm:$0xff]  ;;  %v51_v39 = vld [vmem:[%s738_s0 + $0xc0] sm:$0xff] }
   0xe   :  { %130 = vmatprep.subr.mxu0 %v64_v25  ;;  %207 = vmatprep.subr.mxu1 %v66_v26  ;;  %v53_v40 = vld [vmem:[%s738_s0 + $0xd0] sm:$0xff]  ;;  %v48_v41 = vld [vmem:[%s738_s0 + $0xa8] sm:$0xff]  ;;  %v50_v42 = vld [vmem:[%s738_s0 + $0xb8] sm:$0xff] }
   0xf   :  { %131 = vmatpush1.msra.mxu0 %v63_v27  ;;  %208 = vmatpush1.msra.mxu1 %v65_v28  ;;  %v47_v43 = vld [vmem:[%s738_s0 + $0xa0] sm:$0xff]  ;;  %v49_v44 = vld [vmem:[%s738_s0 + $0xb0] sm:$0xff]  ;;  %v44_v45 = vld [vmem:[%s738_s0 + $0x88] sm:$0xff] }
  0x10   :  { %132 = vmatprep.subr.mxu0 %v60_v29  ;;  %209 = vmatprep.subr.mxu1 %v62_v30  ;;  %v46_v46 = vld [vmem:[%s738_s0 + $0x98] sm:$0xff]  ;;  %v43_v47 = vld [vmem:[%s738_s0 + $0x80] sm:$0xff]  ;;  %v45_v48 = vld [vmem:[%s738_s0 + $0x90] sm:$0xff] }
  0x11   :  { %133 = vmatpush1.msra.mxu0 %v59_v31  ;;  %210 = vmatpush1.msra.mxu1 %v61_v32  ;;  %v40_v49 = vld [vmem:[%s738_s0 + $0x68] sm:$0xff]  ;;  %v42_v50 = vld [vmem:[%s738_s0 + $0x78] sm:$0xff]  ;;  %v39_v51 = vld [vmem:[%s738_s0 + $0x60] sm:$0xff] }
  0x12   :  { %134 = vmatprep.subr.mxu0 %v56_v33  ;;  %211 = vmatprep.subr.mxu1 %v58_v34  ;;  %v41_v52 = vld [vmem:[%s738_s0 + $0x70] sm:$0xff]  ;;  %v36_v53 = vld [vmem:[%s738_s0 + $0x48] sm:$0xff]  ;;  %v38_v54 = vld [vmem:[%s738_s0 + $0x58] sm:$0xff] }
  0x13   :  { %135 = vmatpush1.msra.mxu0 %v55_v35  ;;  %212 = vmatpush1.msra.mxu1 %v57_v36  ;;  %v35_v55 = vld [vmem:[%s738_s0 + $0x40] sm:$0xff]  ;;  %v37_v56 = vld [vmem:[%s738_s0 + $0x50] sm:$0xff]  ;;  %v32_v57 = vld [vmem:[%s738_s0 + $0x28] sm:$0xff] }
  0x14   :  { %136 = vmatprep.subr.mxu0 %v52_v37  ;;  %213 = vmatprep.subr.mxu1 %v54_v38  ;;  %v34_v58 = vld [vmem:[%s738_s0 + $0x38] sm:$0xff]  ;;  %v31_v59 = vld [vmem:[%s738_s0 + $0x20] sm:$0xff]  ;;  %v33_v60 = vld [vmem:[%s738_s0 + $0x30] sm:$0xff] }
  0x15   :  { %137 = vmatpush1.msra.mxu0 %v51_v39  ;;  %214 = vmatpush1.msra.mxu1 %v53_v40  ;;  %v28_v61 = vld [vmem:[%s738_s0 + $0x8] sm:$0xff]  ;;  %v30_v62 = vld [vmem:[%s738_s0 + $0x18] sm:$0xff]  ;;  %v27_v63 = vld [vmem:[%s738_s0] sm:$0xff] }
  0x16   :  { %138 = vmatprep.subr.mxu0 %v48_v41  ;;  %215 = vmatprep.subr.mxu1 %v50_v42  ;;  %v29_v0 = vld [vmem:[%s738_s0 + $0x10] sm:$0xff]  ;;  %v96_v1 = vld [vmem:[%s738_s0 + $0x228] sm:$0xff]  ;;  %v98_v2 = vld [vmem:[%s738_s0 + $0x238] sm:$0xff] }
  0x17   :  { %139 = vmatpush1.msra.mxu0 %v47_v43  ;;  %216 = vmatpush1.msra.mxu1 %v49_v44  ;;  %v95_v3 = vld [vmem:[%s738_s0 + $0x220] sm:$0xff]  ;;  %v97_v4 = vld [vmem:[%s738_s0 + $0x230] sm:$0xff]  ;;  %v92_v5 = vld [vmem:[%s738_s0 + $0x208] sm:$0xff] }
  0x18   :  { %140 = vmatprep.subr.mxu0 %v44_v45  ;;  %217 = vmatprep.subr.mxu1 %v46_v46  ;;  %v94_v6 = vld [vmem:[%s738_s0 + $0x218] sm:$0xff]  ;;  %v91_v7 = vld [vmem:[%s738_s0 + $0x200] sm:$0xff]  ;;  %v24_v8 = vld [vmem:[%s739_s1 + $0x8] sm:$0xff] }
  0x19   :  { %141 = vmatpush1.msra.mxu0 %v43_v47  ;;  %218 = vmatpush1.msra.mxu1 %v45_v48  ;;  %v93_v9 = vld [vmem:[%s738_s0 + $0x210] sm:$0xff]  ;;  %v23_v10 = vld [vmem:[%s739_s1] sm:$0xff]  ;;  %v26_v11 = vld [vmem:[%s739_s1 + $0x18] sm:$0xff] }
  0x1a   :  { %142 = vmatprep.subr.mxu0 %v40_v49  ;;  %219 = vmatprep.subr.mxu1 %v42_v50  ;;  %v99_v12 = vld [vmem:[%s740_s2] sm:$0xff]  ;;  %v25_v13 = vld [vmem:[%s739_s1 + $0x10] sm:$0xff]  ;;  %v100_v14 = vld [vmem:[%s740_s2 + $0x8] sm:$0xff] }
  0x1b   :  { %143 = vmatpush1.msra.mxu0 %v39_v51  ;;  %220 = vmatpush1.msra.mxu1 %v41_v52  ;;  %v325_v39 = vld [vmem:[%s741_s3] sm:$0xff]  ;;  %v326_v40 = vld [vmem:[%s741_s3 + $0x8] sm:$0xff] }
  0x1c   :  { %144 = vmatprep.subr.mxu0 %v36_v53  ;;  %221 = vmatprep.subr.mxu1 %v38_v54  ;;  %v345_v41 = vld [vmem:[%s742_s4] sm:$0xff] }
  0x1d   :  { %145 = vmatpush1.msra.mxu0 %v35_v55  ;;  %222 = vmatpush1.msra.mxu1 %v37_v56 }
  0x1e   :  { %146 = vmatprep.subr.mxu0 %v32_v57  ;;  %223 = vmatprep.subr.mxu1 %v34_v58 }
  0x1f   :  { %147 = vmatpush1.msra.mxu0 %v31_v59  ;;  %224 = vmatpush1.msra.mxu1 %v33_v60 }
  0x20   :  { %148 = vmatprep.subr.mxu0 %v28_v61  ;;  %225 = vmatprep.subr.mxu1 %v30_v62 }
  0x21   :  { %149 = vmatpush1.msra.mxu0 %v27_v63  ;;  %226 = vmatpush1.msra.mxu1 %v29_v0 }
  0x22   :  { %178 = vmatprep.subr.mxu0 %v96_v1  ;;  %255 = vmatprep.subr.mxu1 %v98_v2 }
  0x23   :  { %179 = vmatpush2.msra.mxu0 %v95_v3  ;;  %256 = vmatpush2.msra.mxu1 %v97_v4  ;;  %v346_v4 = vld [vmem:[%s742_s4 + $0x8] sm:$0xff] }
  0x24   :  { %180 = vmatprep.subr.mxu0 %v92_v5  ;;  %257 = vmatprep.subr.mxu1 %v94_v6 }
  0x25   :  { %181 = vmatpush2.msra.mxu0 %v91_v7  ;;  %393 = vmatprep.mubr.msk.f32.mxu0 %vm111_vm0, %v24_v8 }
  0x26   :  { %258 = vmatpush2.msra.mxu1 %v93_v9  ;;  %395 = vmatprep.mubr.msk.f32.mxu1 %vm111_vm0, %v24_v8 }
  0x27   :  { %183 = vmatmul.mubr.f32.vlgmr.msra.gmra.mxu0 %v23_v10  ;;  %260 = vmatmul.mubr.f32.vlgmr.msra.gmra.mxu1 %v23_v10 }
  0x28   :  { %394 = vmatprep.mubr.msk.f32.mxu0 %vm111_vm0, %v26_v11  ;;  %396 = vmatprep.mubr.msk.f32.mxu1 %vm111_vm0, %v26_v11 }
  0x29   :  { %103 = vperm.xlu0 %398, %v99_v12  }
  0x2b   :  { %189 = vmatmul.mubr.f32.gmra.mxu0 %v25_v13  ;;  %266 = vmatmul.mubr.f32.gmra.mxu1 %v25_v13 }
  0x2d   :  { %108 = vperm.xlu0 %398, %v100_v14  }
  0xa4   :  { %v104_v15 = vpop.permute.xlu0 %103 }
  0xa8   :  { %v109_v26 = vpop.permute.xlu0 %108 }
  0xe7   :  { %v184_v16 = vpop.f32.mrf.mxu0  ;;  %v261_v17 = vpop.f32.mrf.mxu1 }
  0xe8   :  { %v185_v20 = vadd.f32 %v184_v16, %v104_v15  ;;  %v262_v24 = vadd.f32 %v261_v17, %v104_v15 }
  0xe9   :  { %v186_v18 = vpop.f32.mrf.mxu0  ;;  %v263_v19 = vpop.f32.mrf.mxu1 }
  0xea   :  { %v187_v21 = vadd.f32 %v186_v18, %v104_v15  ;;  %v264_v28 = vadd.f32 %v263_v19, %v104_v15 }
  0xeb   :  { %v190_v22 = vpop.f32.mrf.mxu0  ;;  %v267_v23 = vpop.f32.mrf.mxu1 }
  0xec   :  { %v272_v25 = vadd.f32 %v187_v21, %v185_v20  ;;  %v191_v29 = vadd.f32 %v190_v22, %v109_v26  ;;  %v268_v33 = vadd.f32 %v267_v23, %v109_v26 }
  0xed   :  { %v192_v27 = vpop.f32.mrf.mxu0  ;;  %v269_v32 = vpop.f32.mrf.mxu1 }
  0xee   :  { %v193_v30 = vadd.f32 %v192_v27, %v109_v26  ;;  %v273_v31 = vadd.f32 %v272_v25, %v262_v24  ;;  %v270_v36 = vadd.f32 %v269_v32, %v109_v26 }
  0xf0   :  { %v277_v34 = vadd.f32 %v193_v30, %v191_v29  ;;  %v274_v35 = vadd.f32 %v273_v31, %v264_v28  ;;  %v368_v31 = vld [vmem:[%s743_s5 + $0x18] sm:$0xff] }
  0xf2   :  { %275 = vadd.xlane.f32.xlu1 %v274_v35  ;;  %v278_v37 = vadd.f32 %v277_v34, %v268_v33 }
  0xf4   :  { %v279_v38 = vadd.f32 %v278_v37, %v270_v36 }
  0xf6   :  { %280 = vadd.xlane.f32.xlu1 %v279_v38 }
 0x107   :  { %329 = vperm.xlu1 %399, %v325_v39  }
 0x10b   :  { %334 = vperm.xlu1 %399, %v326_v40   ;;  %v369_v40 = vld [vmem:[%s743_s5 + $0x20] sm:$0xff] }
 0x10f   :  { %349 = vperm.xlu1 %399, %v345_v41   ;;  %v370_v41 = vld [vmem:[%s743_s5 + $0x28] sm:$0xff] }
 0x17b   :  { %v276_v42 = vpop.xlane.xlu1 %275 }
 0x17c   :  { %v283_v43 = vmul.f32 0.001953125, %v276_v42  ;;  %v371_v42 = vld [vmem:[%s743_s5 + $0x30] sm:$0xff] }
 0x17e   :  { %v285_v44 = vsub.f32 %v185_v20, %v283_v43  ;;  %v286_v45 = vsub.f32 %v187_v21, %v283_v43  ;;  %v287_v46 = vsub.f32 %v262_v24, %v283_v43  ;;  %v288_v48 = vsub.f32 %v264_v28, %v283_v43  ;;  %v365_v24 = vld [vmem:[%s743_s5] sm:$0xff]  ;;  %v372_v43 = vld [vmem:[%s743_s5 + $0x38] sm:$0xff] }
 0x17f   :  { %v281_v47 = vpop.xlane.xlu1 %280 }
 0x180   :  { %v284_v49 = vmul.f32 0.001953125, %v281_v47  ;;  %v293_v50 = vmul.f32 %v285_v44, %v285_v44  ;;  %v294_v51 = vmul.f32 %v286_v45, %v286_v45  ;;  %v295_v52 = vmul.f32 %v287_v46, %v287_v46 }
 0x181   :  { %v296_v57 = vmul.f32 %v288_v48, %v288_v48 }
 0x182   :  { %v289_v53 = vsub.f32 %v191_v29, %v284_v49  ;;  %v290_v54 = vsub.f32 %v193_v30, %v284_v49  ;;  %v301_v55 = vadd.f32 %v294_v51, %v293_v50  ;;  %v291_v56 = vsub.f32 %v268_v33, %v284_v49  ;;  %v366_v29 = vld [vmem:[%s743_s5 + $0x8] sm:$0xff]  ;;  %v367_v30 = vld [vmem:[%s743_s5 + $0x10] sm:$0xff] }
 0x183   :  { %v292_v59 = vsub.f32 %v270_v36, %v284_v49  ;;  %v330_v5 = vpop.permute.xlu1 %329 }
 0x184   :  { %v302_v58 = vadd.f32 %v301_v55, %v295_v52  ;;  %v297_v60 = vmul.f32 %v289_v53, %v289_v53  ;;  %v298_v61 = vmul.f32 %v290_v54, %v290_v54  ;;  %v299_v63 = vmul.f32 %v291_v56, %v291_v56 }
 0x185   :  { %v300_v1 = vmul.f32 %v292_v59, %v292_v59 }
 0x186   :  { %v303_v62 = vadd.f32 %v302_v58, %v296_v57  ;;  %v306_v0 = vadd.f32 %v298_v61, %v297_v60 }
 0x187   :  { %v335_v6 = vpop.permute.xlu1 %334 }
 0x188   :  { %304 = vadd.xlane.f32.xlu0 %v303_v62  ;;  %v307_v2 = vadd.f32 %v306_v0, %v299_v63 }
 0x18a   :  { %v308_v3 = vadd.f32 %v307_v2, %v300_v1 }
 0x18b   :  { %v350_v7 = vpop.permute.xlu1 %349 }
 0x18c   :  { %309 = vadd.xlane.f32.xlu1 %v308_v3 }
 0x19d   :  { %354 = vperm.xlu1 %399, %v346_v4  }
 0x211   :  { %v305_v8 = vpop.xlane.xlu0 %304 }
 0x212   :  { %v311_v9 = vmul.f32 0.001953125, %v305_v8 }
 0x214   :  { %v313_v10 = vadd.f32 1e-05, %v311_v9 }
 0x215   :  { %v310_v11 = vpop.xlane.xlu1 %309 }
 0x216   :  { %400 = vrsqrt.f32 %v313_v10  ;;  %v312_v12 = vmul.f32 0.001953125, %v310_v11 }
 0x218   :  { %v314_v13 = vadd.f32 1e-05, %v312_v12 }
 0x21a   :  { %402 = vrsqrt.f32 %v314_v13 }
 0x223   :  { %v401_v14 = vpop.eup %400 }
 0x224   :  { %v317_v15 = vmul.f32 %v401_v14, %v285_v44  ;;  %v318_v16 = vmul.f32 %v401_v14, %v286_v45  ;;  %v319_v17 = vmul.f32 %v401_v14, %v287_v46  ;;  %v320_v18 = vmul.f32 %v401_v14, %v288_v48  ;;  %v355_v48 = vpop.permute.xlu1 %354 }
 0x226   :  { %v337_v19 = vmul.f32 %v330_v5, %v317_v15  ;;  %v338_v20 = vmul.f32 %v330_v5, %v318_v16  ;;  %v339_v21 = vmul.f32 %v330_v5, %v319_v17  ;;  %v340_v22 = vmul.f32 %v330_v5, %v320_v18 }
 0x227   :  { %v403_v23 = vpop.eup %402 }
 0x228   :  { %v321_v25 = vmul.f32 %v403_v23, %v289_v53  ;;  %v322_v26 = vmul.f32 %v403_v23, %v290_v54  ;;  %v323_v27 = vmul.f32 %v403_v23, %v291_v56  ;;  %v324_v28 = vmul.f32 %v403_v23, %v292_v59 }
 0x229   :  { %v357_v32 = vadd.f32 %v350_v7, %v337_v19  ;;  %v358_v33 = vadd.f32 %v350_v7, %v338_v20  ;;  %v359_v34 = vadd.f32 %v350_v7, %v339_v21  ;;  %v360_v35 = vadd.f32 %v350_v7, %v340_v22 }
 0x22a   :  { %v341_v36 = vmul.f32 %v335_v6, %v321_v25  ;;  %v342_v37 = vmul.f32 %v335_v6, %v322_v26  ;;  %v343_v38 = vmul.f32 %v335_v6, %v323_v27  ;;  %v344_v39 = vmul.f32 %v335_v6, %v324_v28 }
 0x22b   :  { %v373_v44 = vadd.f32 %v365_v24, %v357_v32  ;;  %v374_v45 = vadd.f32 %v366_v29, %v358_v33  ;;  %v375_v46 = vadd.f32 %v367_v30, %v359_v34  ;;  %v376_v47 = vadd.f32 %v368_v31, %v360_v35 }
 0x22c   :  { %v361_v49 = vadd.f32 %v355_v48, %v341_v36  ;;  %v362_v50 = vadd.f32 %v355_v48, %v342_v37  ;;  %v363_v51 = vadd.f32 %v355_v48, %v343_v38  ;;  %v364_v52 = vadd.f32 %v355_v48, %v344_v39 }
 0x22d   :  { %381 = vst [vmem:[%s744_s6] sm:$0xff] %v373_v44  ;;  %382 = vst [vmem:[%s744_s6 + $0x8] sm:$0xff] %v374_v45 }
 0x22e   :  { %383 = vst [vmem:[%s744_s6 + $0x10] sm:$0xff] %v375_v46  ;;  %384 = vst [vmem:[%s744_s6 + $0x18] sm:$0xff] %v376_v47  ;;  %v377_v53 = vadd.f32 %v369_v40, %v361_v49  ;;  %v378_v54 = vadd.f32 %v370_v41, %v362_v50  ;;  %v379_v55 = vadd.f32 %v371_v42, %v363_v51 }
 0x22f   :  { %v380_v56 = vadd.f32 %v372_v43, %v364_v52 }
 0x230   :  { %385 = vst [vmem:[%s744_s6 + $0x20] sm:$0xff] %v377_v53  ;;  %386 = vst [vmem:[%s744_s6 + $0x28] sm:$0xff] %v378_v54 }
 0x231   :  { %387 = vst [vmem:[%s744_s6 + $0x30] sm:$0xff] %v379_v55  ;;  %388 = vst [vmem:[%s744_s6 + $0x38] sm:$0xff] %v380_v56 }

// kernel: learn_to_resize.14
= control target key start
LH: loop header
LB: loop body
LE: loop exit
PB: predicated region body
PF: predicated region fallthrough
CT: control target
= control target key end

     0   :  { %vm78_vm0 = vcmask 1043456   ;;  %v587_v0 = vmov 0.0   ;;  %vm588_vm1 = vmmov 0   ;;  %vm32_vm2 = vcmask 162816   ;;  %s789_s1 = inlined_call_operand.vmem [shape: f32[20,16], index: 1, kind: input, shape index: {}]   ;;  %s790_s0 = inlined_call_operand.vmem [shape: f32[120,20], index: 0, kind: input, shape index: {}]   ;;  %s791_s2 = inlined_call_operand.vmem [shape: f32[96,120], index: 2, kind: input, shape index: {}]   ;;  %s792_s3 = inlined_call_operand.vmem [shape: f32[96,16], index: 3, kind: output, shape index: {}]  }
   0x1   :  { %486 = vmatprep.subr.mxu0 %v587_v0  ;;  %v31_v1 = vld [vmem:[%s789_s1 + $0x10] sm:$0xf]  ;;  %v30_v2 = vld [vmem:[%s789_s1 + $0x8] sm:$0xff]  ;;  %492 = vmatprep.mubr.msk.f32.mxu0 %vm588_vm1, %v587_v0  ;;  %v29_v3 = vld [vmem:[%s789_s1] sm:$0xff]  ;;  %vm234_vm3 = vcmask 982016   ;;  %vm396_vm4 = vcmask 130048  }
   0x2   :  { %487 = vmatpush3.msk.msra.mxu0 %vm78_vm0, %v31_v1  ;;  %v14_v4 = vld [vmem:[%s790_s0] sm:$0xff]  ;;  %v15_v5 = vld [vmem:[%s790_s0 + $0x8] sm:$0xff]  ;;  %v16_v6 = vld [vmem:[%s790_s0 + $0x10] sm:$0xff] }
   0x3   :  { %488 = vmatprep.subr.mxu0 %v587_v0  ;;  %v17_v7 = vld [vmem:[%s790_s0 + $0x18] sm:$0xff]  ;;  %v18_v8 = vld [vmem:[%s790_s0 + $0x20] sm:$0xff]  ;;  %v19_v9 = vld [vmem:[%s790_s0 + $0x28] sm:$0xff] }
   0x4   :  { %489 = vmatpush3.msra.mxu0 %v30_v2  ;;  %v20_v10 = vld [vmem:[%s790_s0 + $0x30] sm:$0xff]  ;;  %v21_v11 = vld [vmem:[%s790_s0 + $0x38] sm:$0xff]  ;;  %v22_v12 = vld [vmem:[%s790_s0 + $0x40] sm:$0xff] }
   0x5   :  { %490 = vmatprep.subr.mxu0 %v587_v0  ;;  %v23_v13 = vld [vmem:[%s790_s0 + $0x48] sm:$0xff]  ;;  %v24_v14 = vld [vmem:[%s790_s0 + $0x50] sm:$0xff]  ;;  %v25_v15 = vld [vmem:[%s790_s0 + $0x58] sm:$0xff] }
   0x6   :  { %491 = vmatpush3.msra.mxu0 %v29_v3  ;;  %v26_v16 = vld [vmem:[%s790_s0 + $0x60] sm:$0xff]  ;;  %v27_v17 = vld [vmem:[%s790_s0 + $0x68] sm:$0xff]  ;;  %v28_v18 = vld [vmem:[%s790_s0 + $0x70] sm:$0xff] }
   0x7   :  { %493 = vmatmul.mubr.msk.f32.vlgmr.msra.gmra.mxu0 %vm32_vm2, %v14_v4  ;;  %v222_v19 = vld [vmem:[%s791_s2] sm:$0xff]  ;;  %v223_v50 = vld [vmem:[%s791_s2 + $0x8] sm:$0xff]  ;;  %v224_v51 = vld [vmem:[%s791_s2 + $0x10] sm:$0xff] }
   0x8   :  { %495 = vmatprep.mubr.msk.f32.mxu0 %vm588_vm1, %v587_v0  ;;  %567 = vmatprep.mubr.msk.f32.mxu1 %vm234_vm3, %v222_v19  ;;  %v225_v52 = vld [vmem:[%s791_s2 + $0x18] sm:$0xff]  ;;  %v226_v53 = vld [vmem:[%s791_s2 + $0x20] sm:$0xff]  ;;  %v227_v54 = vld [vmem:[%s791_s2 + $0x28] sm:$0xff] }
   0x9   :  { %v228_v55 = vld [vmem:[%s791_s2 + $0x30] sm:$0xff]  ;;  %v229_v56 = vld [vmem:[%s791_s2 + $0x38] sm:$0xff]  ;;  %v230_v57 = vld [vmem:[%s791_s2 + $0x40] sm:$0xff] }
   0xa   :  { %v231_v58 = vld [vmem:[%s791_s2 + $0x48] sm:$0xff]  ;;  %v232_v59 = vld [vmem:[%s791_s2 + $0x50] sm:$0xff]  ;;  %v233_v60 = vld [vmem:[%s791_s2 + $0x58] sm:$0xff] }
   0xb   :  { %496 = vmatmul.mubr.msk.f32.gmra.mxu0 %vm32_vm2, %v15_v5 }
   0xc   :  { %498 = vmatprep.mubr.msk.f32.mxu0 %vm588_vm1, %v587_v0 }
   0xf   :  { %499 = vmatmul.mubr.msk.f32.gmra.mxu0 %vm32_vm2, %v16_v6 }
  0x10   :  { %501 = vmatprep.mubr.msk.f32.mxu0 %vm588_vm1, %v587_v0 }
  0x13   :  { %502 = vmatmul.mubr.msk.f32.gmra.mxu0 %vm32_vm2, %v17_v7 }
  0x14   :  { %504 = vmatprep.mubr.msk.f32.mxu0 %vm588_vm1, %v587_v0 }
  0x17   :  { %505 = vmatmul.mubr.msk.f32.gmra.mxu0 %vm32_vm2, %v18_v8 }
  0x18   :  { %507 = vmatprep.mubr.msk.f32.mxu0 %vm588_vm1, %v587_v0 }
  0x1b   :  { %508 = vmatmul.mubr.msk.f32.gmra.mxu0 %vm32_vm2, %v19_v9 }
  0x1c   :  { %510 = vmatprep.mubr.msk.f32.mxu0 %vm588_vm1, %v587_v0 }
  0x1f   :  { %511 = vmatmul.mubr.msk.f32.gmra.mxu0 %vm32_vm2, %v20_v10 }
  0x20   :  { %513 = vmatprep.mubr.msk.f32.mxu0 %vm588_vm1, %v587_v0 }
  0x23   :  { %514 = vmatmul.mubr.msk.f32.gmra.mxu0 %vm32_vm2, %v21_v11 }
  0x24   :  { %516 = vmatprep.mubr.msk.f32.mxu0 %vm588_vm1, %v587_v0 }
  0x27   :  { %517 = vmatmul.mubr.msk.f32.gmra.mxu0 %vm32_vm2, %v22_v12 }
  0x28   :  { %519 = vmatprep.mubr.msk.f32.mxu0 %vm588_vm1, %v587_v0 }
  0x2b   :  { %520 = vmatmul.mubr.msk.f32.gmra.mxu0 %vm32_vm2, %v23_v13 }
  0x2c   :  { %522 = vmatprep.mubr.msk.f32.mxu0 %vm588_vm1, %v587_v0 }
  0x2f   :  { %523 = vmatmul.mubr.msk.f32.gmra.mxu0 %vm32_vm2, %v24_v14 }
  0x30   :  { %525 = vmatprep.mubr.msk.f32.mxu0 %vm588_vm1, %v587_v0 }
  0x33   :  { %526 = vmatmul.mubr.msk.f32.gmra.mxu0 %vm32_vm2, %v25_v15 }
  0x34   :  { %528 = vmatprep.mubr.msk.f32.mxu0 %vm588_vm1, %v587_v0 }
  0x37   :  { %529 = vmatmul.mubr.msk.f32.gmra.mxu0 %vm32_vm2, %v26_v16 }
  0x38   :  { %531 = vmatprep.mubr.msk.f32.mxu0 %vm588_vm1, %v587_v0 }
  0x3b   :  { %532 = vmatmul.mubr.msk.f32.gmra.mxu0 %vm32_vm2, %v27_v17 }
  0x3c   :  { %534 = vmatprep.mubr.msk.f32.mxu0 %vm588_vm1, %v587_v0 }
  0x3f   :  { %535 = vmatmul.mubr.msk.f32.gmra.mxu0 %vm32_vm2, %v28_v18 }
  0xc7   :  { %v148_v20 = vpop.f32.mrf.mxu0 }
  0xc9   :  { %v494_v21 = vpop.f32.mrf.mxu0 }
  0xcb   :  { %v153_v22 = vpop.f32.mrf.mxu0 }
  0xcd   :  { %v497_v23 = vpop.f32.mrf.mxu0 }
  0xcf   :  { %v158_v24 = vpop.f32.mrf.mxu0 }
  0xd1   :  { %v500_v25 = vpop.f32.mrf.mxu0 }
  0xd3   :  { %v163_v26 = vpop.f32.mrf.mxu0 }
  0xd5   :  { %v503_v27 = vpop.f32.mrf.mxu0 }
  0xd7   :  { %v168_v28 = vpop.f32.mrf.mxu0 }
  0xd9   :  { %v506_v29 = vpop.f32.mrf.mxu0 }
  0xdb   :  { %v173_v30 = vpop.f32.mrf.mxu0 }
  0xdd   :  { %v509_v31 = vpop.f32.mrf.mxu0 }
  0xdf   :  { %v178_v32 = vpop.f32.mrf.mxu0 }
  0xe1   :  { %v512_v33 = vpop.f32.mrf.mxu0 }
  0xe3   :  { %v183_v34 = vpop.f32.mrf.mxu0 }
  0xe5   :  { %v515_v35 = vpop.f32.mrf.mxu0 }
  0xe7   :  { %v188_v36 = vpop.f32.mrf.mxu0 }
  0xe9   :  { %v518_v37 = vpop.f32.mrf.mxu0 }
  0xeb   :  { %v193_v38 = vpop.f32.mrf.mxu0 }
  0xed   :  { %v521_v39 = vpop.f32.mrf.mxu0 }
  0xef   :  { %v198_v40 = vpop.f32.mrf.mxu0 }
  0xf1   :  { %v524_v41 = vpop.f32.mrf.mxu0 }
  0xf3   :  { %v203_v42 = vpop.f32.mrf.mxu0 }
  0xf5   :  { %v527_v43 = vpop.f32.mrf.mxu0 }
  0xf7   :  { %v208_v44 = vpop.f32.mrf.mxu0 }
  0xf9   :  { %v530_v45 = vpop.f32.mrf.mxu0 }
  0xfb   :  { %v213_v46 = vpop.f32.mrf.mxu0 }
  0xfd   :  { %v533_v47 = vpop.f32.mrf.mxu0 }
  0xff   :  { %v218_v48 = vpop.f32.mrf.mxu0 }
 0x100   :  { %537 = vmatprep.subr.mxu1 %v218_v48 }
 0x101   :  { %v536_v49 = vpop.f32.mrf.mxu0  ;;  %538 = vmatpush3.msra.mxu1 %v218_v48 }
 0x102   :  { %539 = vmatprep.subr.mxu1 %v213_v46 }
 0x103   :  { %540 = vmatpush3.msra.mxu1 %v213_v46 }
 0x104   :  { %541 = vmatprep.subr.mxu1 %v208_v44 }
 0x105   :  { %542 = vmatpush3.msra.mxu1 %v208_v44 }
 0x106   :  { %543 = vmatprep.subr.mxu1 %v203_v42 }
 0x107   :  { %544 = vmatpush3.msra.mxu1 %v203_v42 }
 0x108   :  { %545 = vmatprep.subr.mxu1 %v198_v40 }
 0x109   :  { %546 = vmatpush3.msra.mxu1 %v198_v40 }
 0x10a   :  { %547 = vmatprep.subr.mxu1 %v193_v38 }
 0x10b   :  { %548 = vmatpush3.msra.mxu1 %v193_v38 }
 0x10c   :  { %549 = vmatprep.subr.mxu1 %v188_v36 }
 0x10d   :  { %550 = vmatpush3.msra.mxu1 %v188_v36 }
 0x10e   :  { %551 = vmatprep.subr.mxu1 %v183_v34 }
 0x10f   :  { %552 = vmatpush3.msra.mxu1 %v183_v34 }
 0x110   :  { %553 = vmatprep.subr.mxu1 %v178_v32 }
 0x111   :  { %554 = vmatpush3.msra.mxu1 %v178_v32 }
 0x112   :  { %555 = vmatprep.subr.mxu1 %v173_v30 }
 0x113   :  { %556 = vmatpush3.msra.mxu1 %v173_v30 }
 0x114   :  { %557 = vmatprep.subr.mxu1 %v168_v28 }
 0x115   :  { %558 = vmatpush3.msra.mxu1 %v168_v28 }
 0x116   :  { %559 = vmatprep.subr.mxu1 %v163_v26 }
 0x117   :  { %560 = vmatpush3.msra.mxu1 %v163_v26 }
 0x118   :  { %561 = vmatprep.subr.mxu1 %v158_v24 }
 0x119   :  { %562 = vmatpush3.msra.mxu1 %v158_v24 }
 0x11a   :  { %563 = vmatprep.subr.mxu1 %v153_v22 }
 0x11b   :  { %564 = vmatpush3.msra.mxu1 %v153_v22 }
 0x11c   :  { %565 = vmatprep.subr.mxu1 %v148_v20 }
 0x11d   :  { %566 = vmatpush3.msra.mxu1 %v148_v20 }
 0x11e   :  { %568 = vmatmul.mubr.msk.f32.vlgmr.msra.gmra.mxu1 %vm234_vm3, %v223_v50 }
 0x11f   :  { %570 = vmatprep.mubr.msk.f32.mxu1 %vm234_vm3, %v224_v51 }
 0x122   :  { %571 = vmatmul.mubr.msk.f32.gmra.mxu1 %vm234_vm3, %v225_v52 }
 0x123   :  { %573 = vmatprep.mubr.msk.f32.mxu1 %vm234_vm3, %v226_v53 }
 0x126   :  { %574 = vmatmul.mubr.msk.f32.gmra.mxu1 %vm234_vm3, %v227_v54 }
 0x127   :  { %576 = vmatprep.mubr.msk.f32.mxu1 %vm234_vm3, %v228_v55 }
 0x12a   :  { %577 = vmatmul.mubr.msk.f32.gmra.mxu1 %vm234_vm3, %v229_v56 }
 0x12b   :  { %579 = vmatprep.mubr.msk.f32.mxu1 %vm234_vm3, %v230_v57 }
 0x12e   :  { %580 = vmatmul.mubr.msk.f32.gmra.mxu1 %vm234_vm3, %v231_v58 }
 0x12f   :  { %582 = vmatprep.mubr.msk.f32.mxu1 %vm234_vm3, %v232_v59 }
 0x132   :  { %583 = vmatmul.mubr.msk.f32.gmra.mxu1 %vm234_vm3, %v233_v60 }
 0x1de   :  { %v569_v61 = vpop.f32.mrf.mxu1 }
 0x1df   :  { %398 = vst.msk [vmem:[%s792_s3 + $0x8] sm:$0xff] %vm396_vm4, %v569_v61 }
 0x1e0   :  { %v337_v62 = vpop.f32.mrf.mxu1 }
 0x1e1   :  { %397 = vst.msk [vmem:[%s792_s3] sm:$0xff] %vm396_vm4, %v337_v62 }
 0x1e2   :  { %v572_v63 = vpop.f32.mrf.mxu1 }
 0x1e3   :  { %400 = vst.msk [vmem:[%s792_s3 + $0x18] sm:$0xff] %vm396_vm4, %v572_v63 }
 0x1e4   :  { %v347_v0 = vpop.f32.mrf.mxu1 }
 0x1e5   :  { %399 = vst.msk [vmem:[%s792_s3 + $0x10] sm:$0xff] %vm396_vm4, %v347_v0 }
 0x1e6   :  { %v575_v1 = vpop.f32.mrf.mxu1 }
 0x1e7   :  { %402 = vst.msk [vmem:[%s792_s3 + $0x28] sm:$0xff] %vm396_vm4, %v575_v1 }
 0x1e8   :  { %v357_v2 = vpop.f32.mrf.mxu1 }
 0x1e9   :  { %401 = vst.msk [vmem:[%s792_s3 + $0x20] sm:$0xff] %vm396_vm4, %v357_v2 }
 0x1ea   :  { %v578_v3 = vpop.f32.mrf.mxu1 }
 0x1eb   :  { %404 = vst.msk [vmem:[%s792_s3 + $0x38] sm:$0xff] %vm396_vm4, %v578_v3 }
 0x1ec   :  { %v367_v4 = vpop.f32.mrf.mxu1 }
 0x1ed   :  { %403 = vst.msk [vmem:[%s792_s3 + $0x30] sm:$0xff] %vm396_vm4, %v367_v4 }
 0x1ee   :  { %v581_v5 = vpop.f32.mrf.mxu1 }
 0x1ef   :  { %406 = vst.msk [vmem:[%s792_s3 + $0x48] sm:$0xff] %vm396_vm4, %v581_v5 }
 0x1f0   :  { %v377_v6 = vpop.f32.mrf.mxu1 }
 0x1f1   :  { %405 = vst.msk [vmem:[%s792_s3 + $0x40] sm:$0xff] %vm396_vm4, %v377_v6 }
 0x1f2   :  { %v584_v7 = vpop.f32.mrf.mxu1 }
 0x1f3   :  { %408 = vst.msk [vmem:[%s792_s3 + $0x58] sm:$0xff] %vm396_vm4, %v584_v7 }
 0x1f4   :  { %v387_v8 = vpop.f32.mrf.mxu1 }
 0x1f5   :  { %407 = vst.msk [vmem:[%s792_s3 + $0x50] sm:$0xff] %vm396_vm4, %v387_v8 }

// kernel: learn_to_resize.15
= control target key start
LH: loop header
LB: loop body
LE: loop exit
PB: predicated region body
PF: predicated region fallthrough
CT: control target
= control target key end

     0   :  { %vm429_vm0 = vcmask 130048   ;;  %s2302_s0 = inlined_call_operand.vmem [shape: f32[784,512], index: 0, kind: input, shape index: {}]   ;;  %s2303_s1 = inlined_call_operand.vmem [shape: f32[3,784], index: 1, kind: input, shape index: {}]   ;;  %s2304_s2 = inlined_call_operand.vmem [shape: f32[3,1], index: 2, kind: input, shape index: {}]   ;;  %s2305_s3 = inlined_call_operand.vmem [shape: f32[3,512], index: 3, kind: input, shape index: {}]   ;;  %s2306_s4 = inlined_call_operand.vmem [shape: f32[3,512], index: 4, kind: output, shape index: {}]  }
   0x1   :  { %v82_v0 = vld [vmem:[%s2302_s0 + $0x1e8] sm:$0xff]  ;;  %v81_v2 = vld [vmem:[%s2302_s0 + $0x1e0] sm:$0xff] }
   0x2   :  { %v210_v1 = vld [vmem:[%s2302_s0 + $0x5e8] sm:$0xff]  ;;  %432 = vmatprep.subr.mxu0 %v82_v0  ;;  %v209_v3 = vld [vmem:[%s2302_s0 + $0x5e0] sm:$0xff] }
   0x3   :  { %503 = vmatprep.subr.mxu1 %v210_v1  ;;  %v78_v4 = vld [vmem:[%s2302_s0 + $0x1c8] sm:$0xff]  ;;  %433 = vmatpush1.msra.mxu0 %v81_v2  ;;  %v77_v6 = vld [vmem:[%s2302_s0 + $0x1c0] sm:$0xff] }
   0x4   :  { %v206_v5 = vld [vmem:[%s2302_s0 + $0x5c8] sm:$0xff]  ;;  %504 = vmatpush1.msra.mxu1 %v209_v3  ;;  %v205_v7 = vld [vmem:[%s2302_s0 + $0x5c0] sm:$0xff]  ;;  %434 = vmatprep.subr.mxu0 %v78_v4 }
   0x5   :  { %v74_v8 = vld [vmem:[%s2302_s0 + $0x1a8] sm:$0xff]  ;;  %505 = vmatprep.subr.mxu1 %v206_v5  ;;  %v73_v10 = vld [vmem:[%s2302_s0 + $0x1a0] sm:$0xff]  ;;  %435 = vmatpush1.msra.mxu0 %v77_v6 }
   0x6   :  { %v202_v9 = vld [vmem:[%s2302_s0 + $0x5a8] sm:$0xff]  ;;  %v201_v11 = vld [vmem:[%s2302_s0 + $0x5a0] sm:$0xff]  ;;  %506 = vmatpush1.msra.mxu1 %v205_v7  ;;  %436 = vmatprep.subr.mxu0 %v74_v8 }
   0x7   :  { %v70_v12 = vld [vmem:[%s2302_s0 + $0x188] sm:$0xff]  ;;  %507 = vmatprep.subr.mxu1 %v202_v9  ;;  %v69_v14 = vld [vmem:[%s2302_s0 + $0x180] sm:$0xff]  ;;  %437 = vmatpush1.msra.mxu0 %v73_v10 }
   0x8   :  { %v198_v13 = vld [vmem:[%s2302_s0 + $0x588] sm:$0xff]  ;;  %v197_v15 = vld [vmem:[%s2302_s0 + $0x580] sm:$0xff]  ;;  %508 = vmatpush1.msra.mxu1 %v201_v11  ;;  %438 = vmatprep.subr.mxu0 %v70_v12 }
   0x9   :  { %v66_v16 = vld [vmem:[%s2302_s0 + $0x168] sm:$0xff]  ;;  %509 = vmatprep.subr.mxu1 %v198_v13  ;;  %v65_v18 = vld [vmem:[%s2302_s0 + $0x160] sm:$0xff]  ;;  %439 = vmatpush1.msra.mxu0 %v69_v14 }
   0xa   :  { %v194_v17 = vld [vmem:[%s2302_s0 + $0x568] sm:$0xff]  ;;  %v193_v19 = vld [vmem:[%s2302_s0 + $0x560] sm:$0xff]  ;;  %510 = vmatpush1.msra.mxu1 %v197_v15  ;;  %440 = vmatprep.subr.mxu0 %v66_v16 }
   0xb   :  { %v62_v20 = vld [vmem:[%s2302_s0 + $0x148] sm:$0xff]  ;;  %511 = vmatprep.subr.mxu1 %v194_v17  ;;  %v61_v22 = vld [vmem:[%s2302_s0 + $0x140] sm:$0xff]  ;;  %441 = vmatpush1.msra.mxu0 %v65_v18 }
   0xc   :  { %v190_v21 = vld [vmem:[%s2302_s0 + $0x548] sm:$0xff]  ;;  %v189_v23 = vld [vmem:[%s2302_s0 + $0x540] sm:$0xff]  ;;  %512 = vmatpush1.msra.mxu1 %v193_v19  ;;  %442 = vmatprep.subr.mxu0 %v62_v20 }
   0xd   :  { %v58_v24 = vld [vmem:[%s2302_s0 + $0x128] sm:$0xff]  ;;  %513 = vmatprep.subr.mxu1 %v190_v21  ;;  %v57_v26 = vld [vmem:[%s2302_s0 + $0x120] sm:$0xff]  ;;  %443 = vmatpush1.msra.mxu0 %v61_v22 }
   0xe   :  { %v186_v25 = vld [vmem:[%s2302_s0 + $0x528] sm:$0xff]  ;;  %v185_v27 = vld [vmem:[%s2302_s0 + $0x520] sm:$0xff]  ;;  %514 = vmatpush1.msra.mxu1 %v189_v23  ;;  %444 = vmatprep.subr.mxu0 %v58_v24 }
   0xf   :  { %v54_v28 = vld [vmem:[%s2302_s0 + $0x108] sm:$0xff]  ;;  %515 = vmatprep.subr.mxu1 %v186_v25  ;;  %v53_v30 = vld [vmem:[%s2302_s0 + $0x100] sm:$0xff]  ;;  %445 = vmatpush1.msra.mxu0 %v57_v26 }
  0x10   :  { %v182_v29 = vld [vmem:[%s2302_s0 + $0x508] sm:$0xff]  ;;  %v181_v31 = vld [vmem:[%s2302_s0 + $0x500] sm:$0xff]  ;;  %516 = vmatpush1.msra.mxu1 %v185_v27  ;;  %446 = vmatprep.subr.mxu0 %v54_v28 }
  0x11   :  { %v50_v32 = vld [vmem:[%s2302_s0 + $0xe8] sm:$0xff]  ;;  %517 = vmatprep.subr.mxu1 %v182_v29  ;;  %v49_v34 = vld [vmem:[%s2302_s0 + $0xe0] sm:$0xff]  ;;  %447 = vmatpush1.msra.mxu0 %v53_v30 }
  0x12   :  { %v178_v33 = vld [vmem:[%s2302_s0 + $0x4e8] sm:$0xff]  ;;  %v177_v35 = vld [vmem:[%s2302_s0 + $0x4e0] sm:$0xff]  ;;  %518 = vmatpush1.msra.mxu1 %v181_v31  ;;  %448 = vmatprep.subr.mxu0 %v50_v32 }
  0x13   :  { %v46_v36 = vld [vmem:[%s2302_s0 + $0xc8] sm:$0xff]  ;;  %519 = vmatprep.subr.mxu1 %v178_v33  ;;  %v45_v38 = vld [vmem:[%s2302_s0 + $0xc0] sm:$0xff]  ;;  %449 = vmatpush1.msra.mxu0 %v49_v34 }
  0x14   :  { %v174_v37 = vld [vmem:[%s2302_s0 + $0x4c8] sm:$0xff]  ;;  %v173_v39 = vld [vmem:[%s2302_s0 + $0x4c0] sm:$0xff]  ;;  %520 = vmatpush1.msra.mxu1 %v177_v35  ;;  %450 = vmatprep.subr.mxu0 %v46_v36 }
  0x15   :  { %v42_v40 = vld [vmem:[%s2302_s0 + $0xa8] sm:$0xff]  ;;  %521 = vmatprep.subr.mxu1 %v174_v37  ;;  %v41_v42 = vld [vmem:[%s2302_s0 + $0xa0] sm:$0xff]  ;;  %451 = vmatpush1.msra.mxu0 %v45_v38 }
  0x16   :  { %v170_v41 = vld [vmem:[%s2302_s0 + $0x4a8] sm:$0xff]  ;;  %v169_v43 = vld [vmem:[%s2302_s0 + $0x4a0] sm:$0xff]  ;;  %522 = vmatpush1.msra.mxu1 %v173_v39  ;;  %452 = vmatprep.subr.mxu0 %v42_v40 }
  0x17   :  { %v38_v44 = vld [vmem:[%s2302_s0 + $0x88] sm:$0xff]  ;;  %523 = vmatprep.subr.mxu1 %v170_v41  ;;  %v37_v46 = vld [vmem:[%s2302_s0 + $0x80] sm:$0xff]  ;;  %453 = vmatpush1.msra.mxu0 %v41_v42 }
  0x18   :  { %v166_v45 = vld [vmem:[%s2302_s0 + $0x488] sm:$0xff]  ;;  %v165_v47 = vld [vmem:[%s2302_s0 + $0x480] sm:$0xff]  ;;  %524 = vmatpush1.msra.mxu1 %v169_v43  ;;  %454 = vmatprep.subr.mxu0 %v38_v44 }
  0x19   :  { %v34_v48 = vld [vmem:[%s2302_s0 + $0x68] sm:$0xff]  ;;  %525 = vmatprep.subr.mxu1 %v166_v45  ;;  %v33_v50 = vld [vmem:[%s2302_s0 + $0x60] sm:$0xff]  ;;  %455 = vmatpush1.msra.mxu0 %v37_v46 }
  0x1a   :  { %v162_v49 = vld [vmem:[%s2302_s0 + $0x468] sm:$0xff]  ;;  %v161_v51 = vld [vmem:[%s2302_s0 + $0x460] sm:$0xff]  ;;  %526 = vmatpush1.msra.mxu1 %v165_v47  ;;  %456 = vmatprep.subr.mxu0 %v34_v48 }
  0x1b   :  { %v30_v52 = vld [vmem:[%s2302_s0 + $0x48] sm:$0xff]  ;;  %527 = vmatprep.subr.mxu1 %v162_v49  ;;  %v29_v54 = vld [vmem:[%s2302_s0 + $0x40] sm:$0xff]  ;;  %457 = vmatpush1.msra.mxu0 %v33_v50 }
  0x1c   :  { %v158_v53 = vld [vmem:[%s2302_s0 + $0x448] sm:$0xff]  ;;  %v157_v55 = vld [vmem:[%s2302_s0 + $0x440] sm:$0xff]  ;;  %528 = vmatpush1.msra.mxu1 %v161_v51  ;;  %458 = vmatprep.subr.mxu0 %v30_v52 }
  0x1d   :  { %v26_v56 = vld [vmem:[%s2302_s0 + $0x28] sm:$0xff]  ;;  %529 = vmatprep.subr.mxu1 %v158_v53  ;;  %v25_v58 = vld [vmem:[%s2302_s0 + $0x20] sm:$0xff]  ;;  %459 = vmatpush1.msra.mxu0 %v29_v54 }
  0x1e   :  { %v154_v57 = vld [vmem:[%s2302_s0 + $0x428] sm:$0xff]  ;;  %v153_v59 = vld [vmem:[%s2302_s0 + $0x420] sm:$0xff]  ;;  %530 = vmatpush1.msra.mxu1 %v157_v55  ;;  %460 = vmatprep.subr.mxu0 %v26_v56 }
  0x1f   :  { %v22_v60 = vld [vmem:[%s2302_s0 + $0x8] sm:$0xff]  ;;  %531 = vmatprep.subr.mxu1 %v154_v57  ;;  %v21_v62 = vld [vmem:[%s2302_s0] sm:$0xff]  ;;  %461 = vmatpush1.msra.mxu0 %v25_v58 }
  0x20   :  { %v150_v61 = vld [vmem:[%s2302_s0 + $0x408] sm:$0xff]  ;;  %v149_v63 = vld [vmem:[%s2302_s0 + $0x400] sm:$0xff]  ;;  %532 = vmatpush1.msra.mxu1 %v153_v59  ;;  %462 = vmatprep.subr.mxu0 %v22_v60 }
  0x21   :  { %v146_v0 = vld [vmem:[%s2302_s0 + $0x3e8] sm:$0xff]  ;;  %533 = vmatprep.subr.mxu1 %v150_v61  ;;  %v145_v2 = vld [vmem:[%s2302_s0 + $0x3e0] sm:$0xff]  ;;  %463 = vmatpush1.msra.mxu0 %v21_v62 }
  0x22   :  { %v274_v1 = vld [vmem:[%s2302_s0 + $0x7e8] sm:$0xff]  ;;  %v273_v3 = vld [vmem:[%s2302_s0 + $0x7e0] sm:$0xff]  ;;  %534 = vmatpush1.msra.mxu1 %v149_v63  ;;  %464 = vmatprep.subr.mxu0 %v146_v0 }
  0x23   :  { %v142_v4 = vld [vmem:[%s2302_s0 + $0x3c8] sm:$0xff]  ;;  %535 = vmatprep.subr.mxu1 %v274_v1  ;;  %v141_v6 = vld [vmem:[%s2302_s0 + $0x3c0] sm:$0xff]  ;;  %465 = vmatpush2.msra.mxu0 %v145_v2 }
  0x24   :  { %v270_v5 = vld [vmem:[%s2302_s0 + $0x7c8] sm:$0xff]  ;;  %v269_v7 = vld [vmem:[%s2302_s0 + $0x7c0] sm:$0xff]  ;;  %536 = vmatpush2.msra.mxu1 %v273_v3  ;;  %466 = vmatprep.subr.mxu0 %v142_v4 }
  0x25   :  { %v138_v8 = vld [vmem:[%s2302_s0 + $0x3a8] sm:$0xff]  ;;  %537 = vmatprep.subr.mxu1 %v270_v5  ;;  %v137_v10 = vld [vmem:[%s2302_s0 + $0x3a0] sm:$0xff]  ;;  %467 = vmatpush2.msra.mxu0 %v141_v6 }
  0x26   :  { %v266_v9 = vld [vmem:[%s2302_s0 + $0x7a8] sm:$0xff]  ;;  %v265_v11 = vld [vmem:[%s2302_s0 + $0x7a0] sm:$0xff]  ;;  %538 = vmatpush2.msra.mxu1 %v269_v7  ;;  %468 = vmatprep.subr.mxu0 %v138_v8 }
  0x27   :  { %v134_v12 = vld [vmem:[%s2302_s0 + $0x388] sm:$0xff]  ;;  %539 = vmatprep.subr.mxu1 %v266_v9  ;;  %v133_v14 = vld [vmem:[%s2302_s0 + $0x380] sm:$0xff]  ;;  %469 = vmatpush2.msra.mxu0 %v137_v10 }
  0x28   :  { %v262_v13 = vld [vmem:[%s2302_s0 + $0x788] sm:$0xff]  ;;  %v261_v15 = vld [vmem:[%s2302_s0 + $0x780] sm:$0xff]  ;;  %540 = vmatpush2.msra.mxu1 %v265_v11  ;;  %470 = vmatprep.subr.mxu0 %v134_v12 }
  0x29   :  { %v130_v16 = vld [vmem:[%s2302_s0 + $0x368] sm:$0xff]  ;;  %541 = vmatprep.subr.mxu1 %v262_v13  ;;  %v129_v18 = vld [vmem:[%s2302_s0 + $0x360] sm:$0xff]  ;;  %471 = vmatpush2.msra.mxu0 %v133_v14  ;;  %v20_v13 = vld [vmem:[%s2303_s1 + $0x18] sm:$0x7] }
  0x2a   :  { %v258_v17 = vld [vmem:[%s2302_s0 + $0x768] sm:$0xff]  ;;  %v257_v19 = vld [vmem:[%s2302_s0 + $0x760] sm:$0xff]  ;;  %542 = vmatpush2.msra.mxu1 %v261_v15  ;;  %472 = vmatprep.subr.mxu0 %v130_v16  ;;  %v84_v14 = vld [vmem:[%s2302_s0 + $0x1f8] sm:$0xff] }
  0x2b   :  { %v126_v20 = vld [vmem:[%s2302_s0 + $0x348] sm:$0xff]  ;;  %543 = vmatprep.subr.mxu1 %v258_v17  ;;  %v125_v22 = vld [vmem:[%s2302_s0 + $0x340] sm:$0xff]  ;;  %473 = vmatpush2.msra.mxu0 %v129_v18  ;;  %v83_v16 = vld [vmem:[%s2302_s0 + $0x1f0] sm:$0xff]  ;;  %v1038_v17 = vmov 0.0  }
  0x2c   :  { %v254_v21 = vld [vmem:[%s2302_s0 + $0x748] sm:$0xff]  ;;  %v253_v23 = vld [vmem:[%s2302_s0 + $0x740] sm:$0xff]  ;;  %544 = vmatpush2.msra.mxu1 %v257_v19  ;;  %474 = vmatprep.subr.mxu0 %v126_v20  ;;  %v80_v19 = vld [vmem:[%s2302_s0 + $0x1d8] sm:$0xff] }
  0x2d   :  { %v122_v24 = vld [vmem:[%s2302_s0 + $0x328] sm:$0xff]  ;;  %545 = vmatprep.subr.mxu1 %v254_v21  ;;  %v121_v26 = vld [vmem:[%s2302_s0 + $0x320] sm:$0xff]  ;;  %475 = vmatpush2.msra.mxu0 %v125_v22  ;;  %v79_v21 = vld [vmem:[%s2302_s0 + $0x1d0] sm:$0xff] }
  0x2e   :  { %v250_v25 = vld [vmem:[%s2302_s0 + $0x728] sm:$0xff]  ;;  %v249_v27 = vld [vmem:[%s2302_s0 + $0x720] sm:$0xff]  ;;  %546 = vmatpush2.msra.mxu1 %v253_v23  ;;  %476 = vmatprep.subr.mxu0 %v122_v24  ;;  %v76_v23 = vld [vmem:[%s2302_s0 + $0x1b8] sm:$0xff] }
  0x2f   :  { %v118_v28 = vld [vmem:[%s2302_s0 + $0x308] sm:$0xff]  ;;  %547 = vmatprep.subr.mxu1 %v250_v25  ;;  %v117_v30 = vld [vmem:[%s2302_s0 + $0x300] sm:$0xff]  ;;  %477 = vmatpush2.msra.mxu0 %v121_v26  ;;  %v75_v25 = vld [vmem:[%s2302_s0 + $0x1b0] sm:$0xff] }
  0x30   :  { %v246_v29 = vld [vmem:[%s2302_s0 + $0x708] sm:$0xff]  ;;  %v245_v31 = vld [vmem:[%s2302_s0 + $0x700] sm:$0xff]  ;;  %548 = vmatpush2.msra.mxu1 %v249_v27  ;;  %478 = vmatprep.subr.mxu0 %v118_v28  ;;  %v72_v27 = vld [vmem:[%s2302_s0 + $0x198] sm:$0xff] }
  0x31   :  { %v114_v32 = vld [vmem:[%s2302_s0 + $0x2e8] sm:$0xff]  ;;  %549 = vmatprep.subr.mxu1 %v246_v29  ;;  %v113_v34 = vld [vmem:[%s2302_s0 + $0x2e0] sm:$0xff]  ;;  %479 = vmatpush2.msra.mxu0 %v117_v30  ;;  %v71_v29 = vld [vmem:[%s2302_s0 + $0x190] sm:$0xff] }
  0x32   :  { %v242_v33 = vld [vmem:[%s2302_s0 + $0x6e8] sm:$0xff]  ;;  %v241_v35 = vld [vmem:[%s2302_s0 + $0x6e0] sm:$0xff]  ;;  %550 = vmatpush2.msra.mxu1 %v245_v31  ;;  %480 = vmatprep.subr.mxu0 %v114_v32  ;;  %v68_v31 = vld [vmem:[%s2302_s0 + $0x178] sm:$0xff] }
  0x33   :  { %v110_v36 = vld [vmem:[%s2302_s0 + $0x2c8] sm:$0xff]  ;;  %551 = vmatprep.subr.mxu1 %v242_v33  ;;  %v109_v38 = vld [vmem:[%s2302_s0 + $0x2c0] sm:$0xff]  ;;  %481 = vmatpush2.msra.mxu0 %v113_v34  ;;  %v67_v33 = vld [vmem:[%s2302_s0 + $0x170] sm:$0xff] }
  0x34   :  { %v238_v37 = vld [vmem:[%s2302_s0 + $0x6c8] sm:$0xff]  ;;  %v237_v39 = vld [vmem:[%s2302_s0 + $0x6c0] sm:$0xff]  ;;  %552 = vmatpush2.msra.mxu1 %v241_v35  ;;  %482 = vmatprep.subr.mxu0 %v110_v36  ;;  %v64_v35 = vld [vmem:[%s2302_s0 + $0x158] sm:$0xff] }
  0x35   :  { %v106_v40 = vld [vmem:[%s2302_s0 + $0x2a8] sm:$0xff]  ;;  %553 = vmatprep.subr.mxu1 %v238_v37  ;;  %v105_v42 = vld [vmem:[%s2302_s0 + $0x2a0] sm:$0xff]  ;;  %483 = vmatpush2.msra.mxu0 %v109_v38  ;;  %v63_v37 = vld [vmem:[%s2302_s0 + $0x150] sm:$0xff] }
  0x36   :  { %v234_v41 = vld [vmem:[%s2302_s0 + $0x6a8] sm:$0xff]  ;;  %v233_v43 = vld [vmem:[%s2302_s0 + $0x6a0] sm:$0xff]  ;;  %554 = vmatpush2.msra.mxu1 %v237_v39  ;;  %484 = vmatprep.subr.mxu0 %v106_v40  ;;  %v60_v39 = vld [vmem:[%s2302_s0 + $0x138] sm:$0xff] }
  0x37   :  { %v102_v44 = vld [vmem:[%s2302_s0 + $0x288] sm:$0xff]  ;;  %555 = vmatprep.subr.mxu1 %v234_v41  ;;  %v101_v46 = vld [vmem:[%s2302_s0 + $0x280] sm:$0xff]  ;;  %485 = vmatpush2.msra.mxu0 %v105_v42  ;;  %v59_v41 = vld [vmem:[%s2302_s0 + $0x130] sm:$0xff] }
  0x38   :  { %v230_v45 = vld [vmem:[%s2302_s0 + $0x688] sm:$0xff]  ;;  %v229_v47 = vld [vmem:[%s2302_s0 + $0x680] sm:$0xff]  ;;  %556 = vmatpush2.msra.mxu1 %v233_v43  ;;  %486 = vmatprep.subr.mxu0 %v102_v44  ;;  %v56_v43 = vld [vmem:[%s2302_s0 + $0x118] sm:$0xff] }
  0x39   :  { %v98_v48 = vld [vmem:[%s2302_s0 + $0x268] sm:$0xff]  ;;  %557 = vmatprep.subr.mxu1 %v230_v45  ;;  %v97_v50 = vld [vmem:[%s2302_s0 + $0x260] sm:$0xff]  ;;  %487 = vmatpush2.msra.mxu0 %v101_v46  ;;  %v55_v45 = vld [vmem:[%s2302_s0 + $0x110] sm:$0xff] }
  0x3a   :  { %v226_v49 = vld [vmem:[%s2302_s0 + $0x668] sm:$0xff]  ;;  %v225_v51 = vld [vmem:[%s2302_s0 + $0x660] sm:$0xff]  ;;  %558 = vmatpush2.msra.mxu1 %v229_v47  ;;  %488 = vmatprep.subr.mxu0 %v98_v48  ;;  %v52_v47 = vld [vmem:[%s2302_s0 + $0xf8] sm:$0xff] }
  0x3b   :  { %v94_v52 = vld [vmem:[%s2302_s0 + $0x248] sm:$0xff]  ;;  %559 = vmatprep.subr.mxu1 %v226_v49  ;;  %v93_v54 = vld [vmem:[%s2302_s0 + $0x240] sm:$0xff]  ;;  %489 = vmatpush2.msra.mxu0 %v97_v50  ;;  %v51_v49 = vld [vmem:[%s2302_s0 + $0xf0] sm:$0xff] }
  0x3c   :  { %v222_v53 = vld [vmem:[%s2302_s0 + $0x648] sm:$0xff]  ;;  %v221_v55 = vld [vmem:[%s2302_s0 + $0x640] sm:$0xff]  ;;  %560 = vmatpush2.msra.mxu1 %v225_v51  ;;  %490 = vmatprep.subr.mxu0 %v94_v52  ;;  %v48_v51 = vld [vmem:[%s2302_s0 + $0xd8] sm:$0xff] }
  0x3d   :  { %v1428_v56 = vld [vmem:[%s2303_s1] sm:$0x77]  ;;  %v90_v57 = vld [vmem:[%s2302_s0 + $0x228] sm:$0xff]  ;;  %561 = vmatprep.subr.mxu1 %v222_v53  ;;  %491 = vmatpush2.msra.mxu0 %v93_v54  ;;  %v47_v53 = vld [vmem:[%s2302_s0 + $0xd0] sm:$0xff] }
  0x3e   :  { %v218_v58 = vld [vmem:[%s2302_s0 + $0x628] sm:$0xff]  ;;  %v89_v60 = vld [vmem:[%s2302_s0 + $0x220] sm:$0xff]  ;;  %562 = vmatpush2.msra.mxu1 %v221_v55  ;;  %v1453_v0 = vcombine.high %v1428_v56, %v1428_v56  ;;  %492 = vmatprep.subr.mxu0 %v90_v57  ;;  %v44_v55 = vld [vmem:[%s2302_s0 + $0xb8] sm:$0xff] }
  0x3f   :  { %v18_v59 = vld [vmem:[%s2303_s1 + $0x8] sm:$0x77]  ;;  %v217_v61 = vld [vmem:[%s2302_s0 + $0x620] sm:$0xff]  ;;  %563 = vmatprep.subr.mxu1 %v218_v58  ;;  %493 = vmatpush2.msra.mxu0 %v89_v60  ;;  %v43_v58 = vld [vmem:[%s2302_s0 + $0xb0] sm:$0xff] }
  0x40   :  { %v86_v62 = vld [vmem:[%s2302_s0 + $0x208] sm:$0xff]  ;;  %v85_v1 = vld [vmem:[%s2302_s0 + $0x200] sm:$0xff]  ;;  %v1458_v2 = vcombine.high %v18_v59, %v18_v59  ;;  %564 = vmatpush2.msra.mxu1 %v217_v61  ;;  %496 = vmatprep.mubr.f32.mxu0 %v1453_v0  ;;  %v40_v60 = vld [vmem:[%s2302_s0 + $0x98] sm:$0xff] }
  0x41   :  { %v214_v63 = vld [vmem:[%s2302_s0 + $0x608] sm:$0xff]  ;;  %v213_v3 = vld [vmem:[%s2302_s0 + $0x600] sm:$0xff]  ;;  %494 = vmatprep.subr.mxu0 %v86_v62  ;;  %v39_v62 = vld [vmem:[%s2302_s0 + $0x90] sm:$0xff] }
  0x42   :  { %565 = vmatprep.subr.mxu1 %v214_v63  ;;  %495 = vmatpush2.msra.mxu0 %v85_v1  ;;  %v338_v4 = vld [vmem:[%s2302_s0 + $0x9e8] sm:$0xff]  ;;  %v337_v6 = vld [vmem:[%s2302_s0 + $0x9e0] sm:$0xff]  ;;  %v36_v1 = vld [vmem:[%s2302_s0 + $0x78] sm:$0xff] }
  0x43   :  { %v410_v5 = vld [vmem:[%s2302_s0 + $0xc28] sm:$0xff]  ;;  %566 = vmatpush2.msra.mxu1 %v213_v3  ;;  %567 = vmatprep.mubr.f32.mxu1 %v1458_v2  ;;  %v409_v7 = vld [vmem:[%s2302_s0 + $0xc20] sm:$0xff] }
  0x44   :  { %497 = vmatmul.mubr.f32.vlgmr.msra.gmra.mxu0 %v1428_v56  ;;  %568 = vmatmul.mubr.f32.vlgmr.msra.gmra.mxu1 %v18_v59  ;;  %v334_v8 = vld [vmem:[%s2302_s0 + $0x9c8] sm:$0xff]  ;;  %v333_v10 = vld [vmem:[%s2302_s0 + $0x9c0] sm:$0xff] }
  0x45   :  { %v406_v9 = vld [vmem:[%s2302_s0 + $0xc08] sm:$0xff]  ;;  %574 = vmatprep.subr.mxu0 %v338_v4  ;;  %673 = vmatprep.subr.mxu1 %v410_v5  ;;  %v405_v11 = vld [vmem:[%s2302_s0 + $0xc00] sm:$0xff]  ;;  %v35_v4 = vld [vmem:[%s2302_s0 + $0x70] sm:$0xff] }
  0x46   :  { %575 = vmatpush1.msra.mxu0 %v337_v6  ;;  %674 = vmatpush1.msra.mxu1 %v409_v7  ;;  %v330_v12 = vld [vmem:[%s2302_s0 + $0x9a8] sm:$0xff]  ;;  %v329_v15 = vld [vmem:[%s2302_s0 + $0x9a0] sm:$0xff]  ;;  %v32_v6 = vld [vmem:[%s2302_s0 + $0x58] sm:$0xff] }
  0x47   :  { %576 = vmatprep.subr.mxu0 %v334_v8  ;;  %675 = vmatprep.subr.mxu1 %v406_v9  ;;  %v326_v18 = vld [vmem:[%s2302_s0 + $0x988] sm:$0xff]  ;;  %v325_v20 = vld [vmem:[%s2302_s0 + $0x980] sm:$0xff]  ;;  %v31_v8 = vld [vmem:[%s2302_s0 + $0x50] sm:$0xff] }
  0x48   :  { %577 = vmatpush1.msra.mxu0 %v333_v10  ;;  %676 = vmatpush1.msra.mxu1 %v405_v11  ;;  %v322_v22 = vld [vmem:[%s2302_s0 + $0x968] sm:$0xff]  ;;  %v321_v24 = vld [vmem:[%s2302_s0 + $0x960] sm:$0xff]  ;;  %v28_v10 = vld [vmem:[%s2302_s0 + $0x38] sm:$0xff] }
  0x49   :  { %709 = vmatprep.mubr.f32.mxu1 %v1038_v17  ;;  %578 = vmatprep.subr.mxu0 %v330_v12  ;;  %v318_v26 = vld [vmem:[%s2302_s0 + $0x948] sm:$0xff]  ;;  %v317_v28 = vld [vmem:[%s2302_s0 + $0x940] sm:$0xff]  ;;  %v27_v12 = vld [vmem:[%s2302_s0 + $0x30] sm:$0xff] }
  0x4a   :  { %1026 = vmatmul.mubr.msk.f32.vlgmr.msra.gmra.mxu1 %vm429_vm0, %v20_v13  ;;  %716 = vmatprep.subr.mxu1 %v84_v14  ;;  %v314_v30 = vld [vmem:[%s2302_s0 + $0x928] sm:$0xff]  ;;  %v313_v32 = vld [vmem:[%s2302_s0 + $0x920] sm:$0xff]  ;;  %v24_v14 = vld [vmem:[%s2302_s0 + $0x18] sm:$0xff] }
  0x4b   :  { %579 = vmatpush1.msra.mxu0 %v329_v15  ;;  %717 = vmatpush1.msra.mxu1 %v83_v16  ;;  %v310_v34 = vld [vmem:[%s2302_s0 + $0x908] sm:$0xff]  ;;  %v309_v36 = vld [vmem:[%s2302_s0 + $0x900] sm:$0xff]  ;;  %v23_v16 = vld [vmem:[%s2302_s0 + $0x10] sm:$0xff] }
  0x4c   :  { %580 = vmatprep.subr.mxu0 %v326_v18  ;;  %718 = vmatprep.subr.mxu1 %v80_v19  ;;  %v306_v38 = vld [vmem:[%s2302_s0 + $0x8e8] sm:$0xff]  ;;  %v305_v40 = vld [vmem:[%s2302_s0 + $0x8e0] sm:$0xff]  ;;  %v148_v19 = vld [vmem:[%s2302_s0 + $0x3f8] sm:$0xff] }
  0x4d   :  { %581 = vmatpush1.msra.mxu0 %v325_v20  ;;  %719 = vmatpush1.msra.mxu1 %v79_v21  ;;  %v302_v42 = vld [vmem:[%s2302_s0 + $0x8c8] sm:$0xff]  ;;  %v301_v44 = vld [vmem:[%s2302_s0 + $0x8c0] sm:$0xff]  ;;  %v147_v21 = vld [vmem:[%s2302_s0 + $0x3f0] sm:$0xff] }
  0x4e   :  { %582 = vmatprep.subr.mxu0 %v322_v22  ;;  %720 = vmatprep.subr.mxu1 %v76_v23  ;;  %v298_v46 = vld [vmem:[%s2302_s0 + $0x8a8] sm:$0xff]  ;;  %v297_v48 = vld [vmem:[%s2302_s0 + $0x8a0] sm:$0xff]  ;;  %v144_v23 = vld [vmem:[%s2302_s0 + $0x3d8] sm:$0xff] }
  0x4f   :  { %583 = vmatpush1.msra.mxu0 %v321_v24  ;;  %721 = vmatpush1.msra.mxu1 %v75_v25  ;;  %v294_v50 = vld [vmem:[%s2302_s0 + $0x888] sm:$0xff]  ;;  %v293_v52 = vld [vmem:[%s2302_s0 + $0x880] sm:$0xff]  ;;  %v143_v25 = vld [vmem:[%s2302_s0 + $0x3d0] sm:$0xff] }
  0x50   :  { %584 = vmatprep.subr.mxu0 %v318_v26  ;;  %722 = vmatprep.subr.mxu1 %v72_v27  ;;  %v290_v54 = vld [vmem:[%s2302_s0 + $0x868] sm:$0xff]  ;;  %v289_v57 = vld [vmem:[%s2302_s0 + $0x860] sm:$0xff]  ;;  %v140_v27 = vld [vmem:[%s2302_s0 + $0x3b8] sm:$0xff] }
  0x51   :  { %585 = vmatpush1.msra.mxu0 %v317_v28  ;;  %723 = vmatpush1.msra.mxu1 %v71_v29  ;;  %v286_v59 = vld [vmem:[%s2302_s0 + $0x848] sm:$0xff]  ;;  %v285_v61 = vld [vmem:[%s2302_s0 + $0x840] sm:$0xff]  ;;  %v139_v29 = vld [vmem:[%s2302_s0 + $0x3b0] sm:$0xff] }
  0x52   :  { %586 = vmatprep.subr.mxu0 %v314_v30  ;;  %724 = vmatprep.subr.mxu1 %v68_v31  ;;  %v282_v63 = vld [vmem:[%s2302_s0 + $0x828] sm:$0xff]  ;;  %v281_v3 = vld [vmem:[%s2302_s0 + $0x820] sm:$0xff]  ;;  %v136_v31 = vld [vmem:[%s2302_s0 + $0x398] sm:$0xff] }
  0x53   :  { %587 = vmatpush1.msra.mxu0 %v313_v32  ;;  %725 = vmatpush1.msra.mxu1 %v67_v33  ;;  %v278_v5 = vld [vmem:[%s2302_s0 + $0x808] sm:$0xff]  ;;  %v277_v7 = vld [vmem:[%s2302_s0 + $0x800] sm:$0xff]  ;;  %v135_v33 = vld [vmem:[%s2302_s0 + $0x390] sm:$0xff] }
  0x54   :  { %588 = vmatprep.subr.mxu0 %v310_v34  ;;  %726 = vmatprep.subr.mxu1 %v64_v35  ;;  %v402_v9 = vld [vmem:[%s2302_s0 + $0xbe8] sm:$0xff]  ;;  %v401_v11 = vld [vmem:[%s2302_s0 + $0xbe0] sm:$0xff]  ;;  %v132_v35 = vld [vmem:[%s2302_s0 + $0x378] sm:$0xff] }
  0x55   :  { %589 = vmatpush1.msra.mxu0 %v309_v36  ;;  %727 = vmatpush1.msra.mxu1 %v63_v37  ;;  %v398_v13 = vld [vmem:[%s2302_s0 + $0xbc8] sm:$0xff]  ;;  %v397_v15 = vld [vmem:[%s2302_s0 + $0xbc0] sm:$0xff]  ;;  %v131_v37 = vld [vmem:[%s2302_s0 + $0x370] sm:$0xff] }
  0x56   :  { %590 = vmatprep.subr.mxu0 %v306_v38  ;;  %728 = vmatprep.subr.mxu1 %v60_v39  ;;  %v394_v18 = vld [vmem:[%s2302_s0 + $0xba8] sm:$0xff]  ;;  %v393_v20 = vld [vmem:[%s2302_s0 + $0xba0] sm:$0xff]  ;;  %v128_v39 = vld [vmem:[%s2302_s0 + $0x358] sm:$0xff] }
  0x57   :  { %591 = vmatpush1.msra.mxu0 %v305_v40  ;;  %729 = vmatpush1.msra.mxu1 %v59_v41  ;;  %v390_v22 = vld [vmem:[%s2302_s0 + $0xb88] sm:$0xff]  ;;  %v389_v24 = vld [vmem:[%s2302_s0 + $0xb80] sm:$0xff]  ;;  %v127_v41 = vld [vmem:[%s2302_s0 + $0x350] sm:$0xff] }
  0x58   :  { %592 = vmatprep.subr.mxu0 %v302_v42  ;;  %730 = vmatprep.subr.mxu1 %v56_v43  ;;  %v386_v26 = vld [vmem:[%s2302_s0 + $0xb68] sm:$0xff]  ;;  %v385_v28 = vld [vmem:[%s2302_s0 + $0xb60] sm:$0xff]  ;;  %v124_v43 = vld [vmem:[%s2302_s0 + $0x338] sm:$0xff] }
  0x59   :  { %593 = vmatpush1.msra.mxu0 %v301_v44  ;;  %731 = vmatpush1.msra.mxu1 %v55_v45  ;;  %v382_v30 = vld [vmem:[%s2302_s0 + $0xb48] sm:$0xff]  ;;  %v381_v32 = vld [vmem:[%s2302_s0 + $0xb40] sm:$0xff]  ;;  %v123_v45 = vld [vmem:[%s2302_s0 + $0x330] sm:$0xff] }
  0x5a   :  { %594 = vmatprep.subr.mxu0 %v298_v46  ;;  %732 = vmatprep.subr.mxu1 %v52_v47  ;;  %v378_v34 = vld [vmem:[%s2302_s0 + $0xb28] sm:$0xff]  ;;  %v377_v36 = vld [vmem:[%s2302_s0 + $0xb20] sm:$0xff]  ;;  %v120_v47 = vld [vmem:[%s2302_s0 + $0x318] sm:$0xff] }
  0x5b   :  { %595 = vmatpush1.msra.mxu0 %v297_v48  ;;  %733 = vmatpush1.msra.mxu1 %v51_v49  ;;  %v374_v38 = vld [vmem:[%s2302_s0 + $0xb08] sm:$0xff]  ;;  %v373_v40 = vld [vmem:[%s2302_s0 + $0xb00] sm:$0xff]  ;;  %v119_v49 = vld [vmem:[%s2302_s0 + $0x310] sm:$0xff] }
  0x5c   :  { %596 = vmatprep.subr.mxu0 %v294_v50  ;;  %734 = vmatprep.subr.mxu1 %v48_v51  ;;  %v370_v42 = vld [vmem:[%s2302_s0 + $0xae8] sm:$0xff]  ;;  %v369_v44 = vld [vmem:[%s2302_s0 + $0xae0] sm:$0xff]  ;;  %v116_v51 = vld [vmem:[%s2302_s0 + $0x2f8] sm:$0xff] }
  0x5d   :  { %597 = vmatpush1.msra.mxu0 %v293_v52  ;;  %735 = vmatpush1.msra.mxu1 %v47_v53  ;;  %v366_v46 = vld [vmem:[%s2302_s0 + $0xac8] sm:$0xff]  ;;  %v365_v48 = vld [vmem:[%s2302_s0 + $0xac0] sm:$0xff]  ;;  %v115_v53 = vld [vmem:[%s2302_s0 + $0x2f0] sm:$0xff] }
  0x5e   :  { %598 = vmatprep.subr.mxu0 %v290_v54  ;;  %736 = vmatprep.subr.mxu1 %v44_v55  ;;  %v362_v50 = vld [vmem:[%s2302_s0 + $0xaa8] sm:$0xff]  ;;  %v361_v52 = vld [vmem:[%s2302_s0 + $0xaa0] sm:$0xff]  ;;  %v112_v55 = vld [vmem:[%s2302_s0 + $0x2d8] sm:$0xff] }
  0x5f   :  { %599 = vmatpush1.msra.mxu0 %v289_v57  ;;  %737 = vmatpush1.msra.mxu1 %v43_v58  ;;  %v358_v54 = vld [vmem:[%s2302_s0 + $0xa88] sm:$0xff]  ;;  %v357_v57 = vld [vmem:[%s2302_s0 + $0xa80] sm:$0xff]  ;;  %v111_v58 = vld [vmem:[%s2302_s0 + $0x2d0] sm:$0xff] }
  0x60   :  { %600 = vmatprep.subr.mxu0 %v286_v59  ;;  %738 = vmatprep.subr.mxu1 %v40_v60  ;;  %v354_v59 = vld [vmem:[%s2302_s0 + $0xa68] sm:$0xff]  ;;  %v108_v60 = vld [vmem:[%s2302_s0 + $0x2b8] sm:$0xff] }
  0x61   :  { %601 = vmatpush1.msra.mxu0 %v285_v61  ;;  %739 = vmatpush1.msra.mxu1 %v39_v62  ;;  %v353_v61 = vld [vmem:[%s2302_s0 + $0xa60] sm:$0xff]  ;;  %v107_v62 = vld [vmem:[%s2302_s0 + $0x2b0] sm:$0xff] }
  0x62   :  { %602 = vmatprep.subr.mxu0 %v282_v63  ;;  %740 = vmatprep.subr.mxu1 %v36_v1  ;;  %v350_v63 = vld [vmem:[%s2302_s0 + $0xa48] sm:$0xff]  ;;  %v104_v1 = vld [vmem:[%s2302_s0 + $0x298] sm:$0xff] }
  0x63   :  { %603 = vmatpush1.msra.mxu0 %v281_v3  ;;  %741 = vmatpush1.msra.mxu1 %v35_v4  ;;  %v349_v3 = vld [vmem:[%s2302_s0 + $0xa40] sm:$0xff]  ;;  %v103_v4 = vld [vmem:[%s2302_s0 + $0x290] sm:$0xff] }
  0x64   :  { %604 = vmatprep.subr.mxu0 %v278_v5  ;;  %742 = vmatprep.subr.mxu1 %v32_v6  ;;  %v1834_v5 = vld [vmem:[%s2303_s1 + $0x10] sm:$0x77]  ;;  %v346_v6 = vld [vmem:[%s2302_s0 + $0xa28] sm:$0xff] }
  0x65   :  { %605 = vmatpush1.msra.mxu0 %v277_v7  ;;  %743 = vmatpush1.msra.mxu1 %v31_v8  ;;  %v100_v7 = vld [vmem:[%s2302_s0 + $0x278] sm:$0xff]  ;;  %v345_v8 = vld [vmem:[%s2302_s0 + $0xa20] sm:$0xff] }
  0x66   :  { %606 = vmatprep.subr.mxu0 %v402_v9  ;;  %744 = vmatprep.subr.mxu1 %v28_v10  ;;  %v99_v9 = vld [vmem:[%s2302_s0 + $0x270] sm:$0xff]  ;;  %v342_v10 = vld [vmem:[%s2302_s0 + $0xa08] sm:$0xff] }
  0x67   :  { %607 = vmatpush2.msra.mxu0 %v401_v11  ;;  %745 = vmatpush1.msra.mxu1 %v27_v12  ;;  %v96_v11 = vld [vmem:[%s2302_s0 + $0x258] sm:$0xff]  ;;  %v1856_v12 = vcombine.high %v1834_v5, %v1834_v5 }
  0x68   :  { %608 = vmatprep.subr.mxu0 %v398_v13  ;;  %746 = vmatprep.subr.mxu1 %v24_v14  ;;  %v341_v13 = vld [vmem:[%s2302_s0 + $0xa00] sm:$0xff]  ;;  %v95_v14 = vld [vmem:[%s2302_s0 + $0x250] sm:$0xff] }
  0x69   :  { %609 = vmatpush2.msra.mxu0 %v397_v15  ;;  %747 = vmatpush1.msra.mxu1 %v23_v16  ;;  %v92_v15 = vld [vmem:[%s2302_s0 + $0x238] sm:$0xff] }
  0x6a   :  { %610 = vmatprep.subr.mxu0 %v394_v18  ;;  %748 = vmatprep.subr.mxu1 %v148_v19  ;;  %v212_v16 = vld [vmem:[%s2302_s0 + $0x5f8] sm:$0xff]  ;;  %v91_v18 = vld [vmem:[%s2302_s0 + $0x230] sm:$0xff] }
  0x6b   :  { %611 = vmatpush2.msra.mxu0 %v393_v20  ;;  %749 = vmatpush2.msra.mxu1 %v147_v21  ;;  %v211_v19 = vld [vmem:[%s2302_s0 + $0x5f0] sm:$0xff]  ;;  %v88_v20 = vld [vmem:[%s2302_s0 + $0x218] sm:$0xff] }
  0x6c   :  { %612 = vmatprep.subr.mxu0 %v390_v22  ;;  %750 = vmatprep.subr.mxu1 %v144_v23  ;;  %v208_v21 = vld [vmem:[%s2302_s0 + $0x5d8] sm:$0xff]  ;;  %v87_v22 = vld [vmem:[%s2302_s0 + $0x210] sm:$0xff] }
  0x6d   :  { %613 = vmatpush2.msra.mxu0 %v389_v24  ;;  %751 = vmatpush2.msra.mxu1 %v143_v25  ;;  %v207_v23 = vld [vmem:[%s2302_s0 + $0x5d0] sm:$0xff]  ;;  %v204_v24 = vld [vmem:[%s2302_s0 + $0x5b8] sm:$0xff] }
  0x6e   :  { %614 = vmatprep.subr.mxu0 %v386_v26  ;;  %752 = vmatprep.subr.mxu1 %v140_v27  ;;  %v340_v25 = vld [vmem:[%s2302_s0 + $0x9f8] sm:$0xff]  ;;  %v413_v26 = vld [vmem:[%s2304_s2] sm:$0x7]  ;;  %v1039_v27 = vmov 0  }
  0x6f   :  { %615 = vmatpush2.msra.mxu0 %v385_v28  ;;  %753 = vmatpush2.msra.mxu1 %v139_v29  ;;  %v203_v28 = vld [vmem:[%s2302_s0 + $0x5b0] sm:$0xff] }
  0x70   :  { %616 = vmatprep.subr.mxu0 %v382_v30  ;;  %754 = vmatprep.subr.mxu1 %v136_v31  ;;  %v339_v29 = vld [vmem:[%s2302_s0 + $0x9f0] sm:$0xff]  ;;  %v336_v30 = vld [vmem:[%s2302_s0 + $0x9d8] sm:$0xff] }
  0x71   :  { %617 = vmatpush2.msra.mxu0 %v381_v32  ;;  %755 = vmatpush2.msra.mxu1 %v135_v33  ;;  %v199_v31 = vld [vmem:[%s2302_s0 + $0x590] sm:$0xff]  ;;  %v332_v33 = vld [vmem:[%s2302_s0 + $0x9b8] sm:$0xff] }
  0x72   :  { %618 = vmatprep.subr.mxu0 %v378_v34  ;;  %756 = vmatprep.subr.mxu1 %v132_v35  ;;  %v335_v32 = vld [vmem:[%s2302_s0 + $0x9d0] sm:$0xff] }
  0x73   :  { %619 = vmatpush2.msra.mxu0 %v377_v36  ;;  %757 = vmatpush2.msra.mxu1 %v131_v37  ;;  %v195_v34 = vld [vmem:[%s2302_s0 + $0x570] sm:$0xff]  ;;  %v192_v36 = vld [vmem:[%s2302_s0 + $0x558] sm:$0xff] }
  0x74   :  { %620 = vmatprep.subr.mxu0 %v374_v38  ;;  %758 = vmatprep.subr.mxu1 %v128_v39  ;;  %v331_v35 = vld [vmem:[%s2302_s0 + $0x9b0] sm:$0xff]  ;;  %v328_v37 = vld [vmem:[%s2302_s0 + $0x998] sm:$0xff] }
  0x75   :  { %621 = vmatpush2.msra.mxu0 %v373_v40  ;;  %759 = vmatpush2.msra.mxu1 %v127_v41  ;;  %v191_v38 = vld [vmem:[%s2302_s0 + $0x550] sm:$0xff]  ;;  %v188_v40 = vld [vmem:[%s2302_s0 + $0x538] sm:$0xff] }
  0x76   :  { %622 = vmatprep.subr.mxu0 %v370_v42  ;;  %760 = vmatprep.subr.mxu1 %v124_v43  ;;  %v327_v39 = vld [vmem:[%s2302_s0 + $0x990] sm:$0xff]  ;;  %v324_v41 = vld [vmem:[%s2302_s0 + $0x978] sm:$0xff] }
  0x77   :  { %623 = vmatpush2.msra.mxu0 %v369_v44  ;;  %761 = vmatpush2.msra.mxu1 %v123_v45  ;;  %v187_v42 = vld [vmem:[%s2302_s0 + $0x530] sm:$0xff]  ;;  %v184_v44 = vld [vmem:[%s2302_s0 + $0x518] sm:$0xff] }
  0x78   :  { %624 = vmatprep.subr.mxu0 %v366_v46  ;;  %762 = vmatprep.subr.mxu1 %v120_v47  ;;  %v323_v43 = vld [vmem:[%s2302_s0 + $0x970] sm:$0xff]  ;;  %v320_v45 = vld [vmem:[%s2302_s0 + $0x958] sm:$0xff] }
  0x79   :  { %625 = vmatpush2.msra.mxu0 %v365_v48  ;;  %763 = vmatpush2.msra.mxu1 %v119_v49  ;;  %v183_v46 = vld [vmem:[%s2302_s0 + $0x510] sm:$0xff]  ;;  %v180_v48 = vld [vmem:[%s2302_s0 + $0x4f8] sm:$0xff] }
  0x7a   :  { %626 = vmatprep.subr.mxu0 %v362_v50  ;;  %764 = vmatprep.subr.mxu1 %v116_v51  ;;  %v319_v47 = vld [vmem:[%s2302_s0 + $0x950] sm:$0xff]  ;;  %v316_v49 = vld [vmem:[%s2302_s0 + $0x938] sm:$0xff] }
  0x7b   :  { %627 = vmatpush2.msra.mxu0 %v361_v52  ;;  %765 = vmatpush2.msra.mxu1 %v115_v53  ;;  %v179_v50 = vld [vmem:[%s2302_s0 + $0x4f0] sm:$0xff]  ;;  %v176_v52 = vld [vmem:[%s2302_s0 + $0x4d8] sm:$0xff] }
  0x7c   :  { %628 = vmatprep.subr.mxu0 %v358_v54  ;;  %766 = vmatprep.subr.mxu1 %v112_v55  ;;  %v315_v51 = vld [vmem:[%s2302_s0 + $0x930] sm:$0xff]  ;;  %v312_v53 = vld [vmem:[%s2302_s0 + $0x918] sm:$0xff] }
  0x7d   :  { %629 = vmatpush2.msra.mxu0 %v357_v57  ;;  %767 = vmatpush2.msra.mxu1 %v111_v58  ;;  %v175_v54 = vld [vmem:[%s2302_s0 + $0x4d0] sm:$0xff]  ;;  %v172_v57 = vld [vmem:[%s2302_s0 + $0x4b8] sm:$0xff] }
  0x7e   :  { %630 = vmatprep.subr.mxu0 %v354_v59  ;;  %768 = vmatprep.subr.mxu1 %v108_v60  ;;  %v311_v55 = vld [vmem:[%s2302_s0 + $0x910] sm:$0xff]  ;;  %v308_v58 = vld [vmem:[%s2302_s0 + $0x8f8] sm:$0xff] }
  0x7f   :  { %631 = vmatpush2.msra.mxu0 %v353_v61  ;;  %769 = vmatpush2.msra.mxu1 %v107_v62  ;;  %v171_v59 = vld [vmem:[%s2302_s0 + $0x4b0] sm:$0xff]  ;;  %v168_v61 = vld [vmem:[%s2302_s0 + $0x498] sm:$0xff] }
  0x80   :  { %632 = vmatprep.subr.mxu0 %v350_v63  ;;  %770 = vmatprep.subr.mxu1 %v104_v1  ;;  %v307_v60 = vld [vmem:[%s2302_s0 + $0x8f0] sm:$0xff]  ;;  %v304_v62 = vld [vmem:[%s2302_s0 + $0x8d8] sm:$0xff] }
  0x81   :  { %633 = vmatpush2.msra.mxu0 %v349_v3  ;;  %771 = vmatpush2.msra.mxu1 %v103_v4  ;;  %v167_v63 = vld [vmem:[%s2302_s0 + $0x490] sm:$0xff]  ;;  %v164_v3 = vld [vmem:[%s2302_s0 + $0x478] sm:$0xff] }
  0x82   :  { %634 = vmatprep.subr.mxu0 %v346_v6  ;;  %772 = vmatprep.subr.mxu1 %v100_v7  ;;  %v303_v1 = vld [vmem:[%s2302_s0 + $0x8d0] sm:$0xff]  ;;  %v300_v4 = vld [vmem:[%s2302_s0 + $0x8b8] sm:$0xff] }
  0x83   :  { %635 = vmatpush2.msra.mxu0 %v345_v8  ;;  %773 = vmatpush2.msra.mxu1 %v99_v9  ;;  %v163_v6 = vld [vmem:[%s2302_s0 + $0x470] sm:$0xff]  ;;  %v160_v8 = vld [vmem:[%s2302_s0 + $0x458] sm:$0xff] }
  0x84   :  { %636 = vmatprep.subr.mxu0 %v342_v10  ;;  %774 = vmatprep.subr.mxu1 %v96_v11  ;;  %v299_v7 = vld [vmem:[%s2302_s0 + $0x8b0] sm:$0xff]  ;;  %v296_v9 = vld [vmem:[%s2302_s0 + $0x898] sm:$0xff] }
  0x85   :  { %637 = vmatpush2.msra.mxu0 %v341_v13  ;;  %638 = vmatprep.mubr.f32.mxu0 %v1856_v12  ;;  %v159_v10 = vld [vmem:[%s2302_s0 + $0x450] sm:$0xff]  ;;  %v156_v13 = vld [vmem:[%s2302_s0 + $0x438] sm:$0xff] }
  0x86   :  { %775 = vmatpush2.msra.mxu1 %v95_v14  ;;  %639 = vmatmul.mubr.f32.vlgmr.msra.gmra.mxu0 %v1834_v5  ;;  %v295_v11 = vld [vmem:[%s2302_s0 + $0x890] sm:$0xff]  ;;  %v292_v14 = vld [vmem:[%s2302_s0 + $0x878] sm:$0xff] }
  0x87   :  { %776 = vmatprep.subr.mxu1 %v92_v15  ;;  %787 = vmatprep.subr.mxu0 %v212_v16  ;;  %v155_v15 = vld [vmem:[%s2302_s0 + $0x430] sm:$0xff] }
  0x88   :  { %777 = vmatpush2.msra.mxu1 %v91_v18  ;;  %788 = vmatpush1.msra.mxu0 %v211_v19  ;;  %v291_v16 = vld [vmem:[%s2302_s0 + $0x870] sm:$0xff]  ;;  %v152_v18 = vld [vmem:[%s2302_s0 + $0x418] sm:$0xff] }
  0x89   :  { %778 = vmatprep.subr.mxu1 %v88_v20  ;;  %789 = vmatprep.subr.mxu0 %v208_v21  ;;  %v288_v19 = vld [vmem:[%s2302_s0 + $0x858] sm:$0xff]  ;;  %v151_v20 = vld [vmem:[%s2302_s0 + $0x410] sm:$0xff] }
  0x8a   :  { %779 = vmatpush2.msra.mxu1 %v87_v22  ;;  %780 = vmatprep.mubr.f32.mxu1 %v1453_v0  ;;  %v200_v0 = vld [vmem:[%s2302_s0 + $0x598] sm:$0xff]  ;;  %v287_v21 = vld [vmem:[%s2302_s0 + $0x850] sm:$0xff] }
  0x8b   :  { %790 = vmatpush1.msra.mxu0 %v207_v23  ;;  %1030 = vset.pattern.permute.xlu0 %v1039_v27  ;;  %v276_v22 = vld [vmem:[%s2302_s0 + $0x7f8] sm:$0xff] }
  0x8c   :  { %781 = vmatmul.mubr.f32.vlgmr.msra.gmra.mxu1 %v1428_v56  ;;  %791 = vmatprep.subr.mxu0 %v204_v24  ;;  %v196_v56 = vld [vmem:[%s2302_s0 + $0x578] sm:$0xff]  ;;  %v275_v24 = vld [vmem:[%s2302_s0 + $0x7f0] sm:$0xff] }
  0x8d   :  { %858 = vmatprep.subr.mxu1 %v340_v25  ;;  %416 = vperm.xlu0 %1030, %v413_v26   ;;  %v284_v23 = vld [vmem:[%s2302_s0 + $0x838] sm:$0xff]  ;;  %v283_v25 = vld [vmem:[%s2302_s0 + $0x830] sm:$0xff] }
  0x8e   :  { %792 = vmatpush1.msra.mxu0 %v203_v28  ;;  %859 = vmatpush1.msra.mxu1 %v339_v29  ;;  %v272_v26 = vld [vmem:[%s2302_s0 + $0x7d8] sm:$0xff]  ;;  %v271_v28 = vld [vmem:[%s2302_s0 + $0x7d0] sm:$0xff] }
  0x8f   :  { %793 = vmatprep.subr.mxu0 %v200_v0  ;;  %860 = vmatprep.subr.mxu1 %v336_v30  ;;  %v280_v27 = vld [vmem:[%s2302_s0 + $0x818] sm:$0xff]  ;;  %v279_v29 = vld [vmem:[%s2302_s0 + $0x810] sm:$0xff] }
  0x90   :  { %794 = vmatpush1.msra.mxu0 %v199_v31  ;;  %861 = vmatpush1.msra.mxu1 %v335_v32  ;;  %v268_v0 = vld [vmem:[%s2302_s0 + $0x7b8] sm:$0xff]  ;;  %v267_v31 = vld [vmem:[%s2302_s0 + $0x7b0] sm:$0xff] }
  0x91   :  { %795 = vmatprep.subr.mxu0 %v196_v56  ;;  %862 = vmatprep.subr.mxu1 %v332_v33  ;;  %v404_v30 = vld [vmem:[%s2302_s0 + $0xbf8] sm:$0xff]  ;;  %v403_v32 = vld [vmem:[%s2302_s0 + $0xbf0] sm:$0xff] }
  0x92   :  { %796 = vmatpush1.msra.mxu0 %v195_v34  ;;  %863 = vmatpush1.msra.mxu1 %v331_v35  ;;  %v264_v56 = vld [vmem:[%s2302_s0 + $0x798] sm:$0xff]  ;;  %v263_v34 = vld [vmem:[%s2302_s0 + $0x790] sm:$0xff] }
  0x93   :  { %797 = vmatprep.subr.mxu0 %v192_v36  ;;  %864 = vmatprep.subr.mxu1 %v328_v37  ;;  %v400_v33 = vld [vmem:[%s2302_s0 + $0xbd8] sm:$0xff]  ;;  %v399_v35 = vld [vmem:[%s2302_s0 + $0xbd0] sm:$0xff] }
  0x94   :  { %798 = vmatpush1.msra.mxu0 %v191_v38  ;;  %865 = vmatpush1.msra.mxu1 %v327_v39  ;;  %v260_v36 = vld [vmem:[%s2302_s0 + $0x778] sm:$0xff]  ;;  %v259_v38 = vld [vmem:[%s2302_s0 + $0x770] sm:$0xff] }
  0x95   :  { %799 = vmatprep.subr.mxu0 %v188_v40  ;;  %866 = vmatprep.subr.mxu1 %v324_v41  ;;  %v396_v37 = vld [vmem:[%s2302_s0 + $0xbb8] sm:$0xff]  ;;  %v395_v39 = vld [vmem:[%s2302_s0 + $0xbb0] sm:$0xff] }
  0x96   :  { %800 = vmatpush1.msra.mxu0 %v187_v42  ;;  %867 = vmatpush1.msra.mxu1 %v323_v43  ;;  %v256_v40 = vld [vmem:[%s2302_s0 + $0x758] sm:$0xff]  ;;  %v255_v42 = vld [vmem:[%s2302_s0 + $0x750] sm:$0xff] }
  0x97   :  { %801 = vmatprep.subr.mxu0 %v184_v44  ;;  %868 = vmatprep.subr.mxu1 %v320_v45  ;;  %v392_v41 = vld [vmem:[%s2302_s0 + $0xb98] sm:$0xff]  ;;  %v391_v43 = vld [vmem:[%s2302_s0 + $0xb90] sm:$0xff] }
  0x98   :  { %802 = vmatpush1.msra.mxu0 %v183_v46  ;;  %869 = vmatpush1.msra.mxu1 %v319_v47  ;;  %v252_v44 = vld [vmem:[%s2302_s0 + $0x738] sm:$0xff]  ;;  %v251_v46 = vld [vmem:[%s2302_s0 + $0x730] sm:$0xff] }
  0x99   :  { %803 = vmatprep.subr.mxu0 %v180_v48  ;;  %870 = vmatprep.subr.mxu1 %v316_v49  ;;  %v388_v45 = vld [vmem:[%s2302_s0 + $0xb78] sm:$0xff]  ;;  %v387_v47 = vld [vmem:[%s2302_s0 + $0xb70] sm:$0xff] }
  0x9a   :  { %804 = vmatpush1.msra.mxu0 %v179_v50  ;;  %871 = vmatpush1.msra.mxu1 %v315_v51  ;;  %v248_v48 = vld [vmem:[%s2302_s0 + $0x718] sm:$0xff]  ;;  %v247_v50 = vld [vmem:[%s2302_s0 + $0x710] sm:$0xff] }
  0x9b   :  { %805 = vmatprep.subr.mxu0 %v176_v52  ;;  %872 = vmatprep.subr.mxu1 %v312_v53  ;;  %v384_v49 = vld [vmem:[%s2302_s0 + $0xb58] sm:$0xff]  ;;  %v383_v51 = vld [vmem:[%s2302_s0 + $0xb50] sm:$0xff] }
  0x9c   :  { %806 = vmatpush1.msra.mxu0 %v175_v54  ;;  %873 = vmatpush1.msra.mxu1 %v311_v55  ;;  %v244_v52 = vld [vmem:[%s2302_s0 + $0x6f8] sm:$0xff]  ;;  %v243_v54 = vld [vmem:[%s2302_s0 + $0x6f0] sm:$0xff] }
  0x9d   :  { %807 = vmatprep.subr.mxu0 %v172_v57  ;;  %874 = vmatprep.subr.mxu1 %v308_v58  ;;  %v380_v53 = vld [vmem:[%s2302_s0 + $0xb38] sm:$0xff]  ;;  %v379_v55 = vld [vmem:[%s2302_s0 + $0xb30] sm:$0xff] }
  0x9e   :  { %808 = vmatpush1.msra.mxu0 %v171_v59  ;;  %875 = vmatpush1.msra.mxu1 %v307_v60  ;;  %v240_v57 = vld [vmem:[%s2302_s0 + $0x6d8] sm:$0xff]  ;;  %v239_v59 = vld [vmem:[%s2302_s0 + $0x6d0] sm:$0xff] }
  0x9f   :  { %809 = vmatprep.subr.mxu0 %v168_v61  ;;  %876 = vmatprep.subr.mxu1 %v304_v62  ;;  %v376_v58 = vld [vmem:[%s2302_s0 + $0xb18] sm:$0xff]  ;;  %v375_v60 = vld [vmem:[%s2302_s0 + $0xb10] sm:$0xff] }
  0xa0   :  { %810 = vmatpush1.msra.mxu0 %v167_v63  ;;  %877 = vmatpush1.msra.mxu1 %v303_v1  ;;  %v236_v61 = vld [vmem:[%s2302_s0 + $0x6b8] sm:$0xff]  ;;  %v235_v63 = vld [vmem:[%s2302_s0 + $0x6b0] sm:$0xff] }
  0xa1   :  { %811 = vmatprep.subr.mxu0 %v164_v3  ;;  %878 = vmatprep.subr.mxu1 %v300_v4  ;;  %v372_v62 = vld [vmem:[%s2302_s0 + $0xaf8] sm:$0xff]  ;;  %v371_v1 = vld [vmem:[%s2302_s0 + $0xaf0] sm:$0xff] }
  0xa2   :  { %812 = vmatpush1.msra.mxu0 %v163_v6  ;;  %879 = vmatpush1.msra.mxu1 %v299_v7  ;;  %v232_v3 = vld [vmem:[%s2302_s0 + $0x698] sm:$0xff]  ;;  %v231_v6 = vld [vmem:[%s2302_s0 + $0x690] sm:$0xff] }
  0xa3   :  { %813 = vmatprep.subr.mxu0 %v160_v8  ;;  %880 = vmatprep.subr.mxu1 %v296_v9  ;;  %v368_v4 = vld [vmem:[%s2302_s0 + $0xad8] sm:$0xff]  ;;  %v367_v7 = vld [vmem:[%s2302_s0 + $0xad0] sm:$0xff] }
  0xa4   :  { %814 = vmatpush1.msra.mxu0 %v159_v10  ;;  %881 = vmatpush1.msra.mxu1 %v295_v11  ;;  %v228_v8 = vld [vmem:[%s2302_s0 + $0x678] sm:$0xff]  ;;  %v227_v10 = vld [vmem:[%s2302_s0 + $0x670] sm:$0xff] }
  0xa5   :  { %815 = vmatprep.subr.mxu0 %v156_v13  ;;  %882 = vmatprep.subr.mxu1 %v292_v14  ;;  %v364_v9 = vld [vmem:[%s2302_s0 + $0xab8] sm:$0xff]  ;;  %v363_v11 = vld [vmem:[%s2302_s0 + $0xab0] sm:$0xff] }
  0xa6   :  { %816 = vmatpush1.msra.mxu0 %v155_v15  ;;  %883 = vmatpush1.msra.mxu1 %v291_v16  ;;  %v224_v13 = vld [vmem:[%s2302_s0 + $0x658] sm:$0xff]  ;;  %v223_v15 = vld [vmem:[%s2302_s0 + $0x650] sm:$0xff] }
  0xa7   :  { %817 = vmatprep.subr.mxu0 %v152_v18  ;;  %884 = vmatprep.subr.mxu1 %v288_v19  ;;  %v360_v14 = vld [vmem:[%s2302_s0 + $0xa98] sm:$0xff]  ;;  %v359_v16 = vld [vmem:[%s2302_s0 + $0xa90] sm:$0xff] }
  0xa8   :  { %818 = vmatpush1.msra.mxu0 %v151_v20  ;;  %885 = vmatpush1.msra.mxu1 %v287_v21  ;;  %v220_v18 = vld [vmem:[%s2302_s0 + $0x638] sm:$0xff]  ;;  %v219_v20 = vld [vmem:[%s2302_s0 + $0x630] sm:$0xff] }
  0xa9   :  { %819 = vmatprep.subr.mxu0 %v276_v22  ;;  %886 = vmatprep.subr.mxu1 %v284_v23  ;;  %v356_v19 = vld [vmem:[%s2302_s0 + $0xa78] sm:$0xff]  ;;  %v355_v21 = vld [vmem:[%s2302_s0 + $0xa70] sm:$0xff] }
  0xaa   :  { %820 = vmatpush2.msra.mxu0 %v275_v24  ;;  %887 = vmatpush1.msra.mxu1 %v283_v25  ;;  %v216_v22 = vld [vmem:[%s2302_s0 + $0x618] sm:$0xff]  ;;  %v215_v24 = vld [vmem:[%s2302_s0 + $0x610] sm:$0xff] }
  0xab   :  { %821 = vmatprep.subr.mxu0 %v272_v26  ;;  %888 = vmatprep.subr.mxu1 %v280_v27  ;;  %v352_v23 = vld [vmem:[%s2302_s0 + $0xa58] sm:$0xff]  ;;  %v351_v25 = vld [vmem:[%s2302_s0 + $0xa50] sm:$0xff] }
  0xac   :  { %822 = vmatpush2.msra.mxu0 %v271_v28  ;;  %889 = vmatpush1.msra.mxu1 %v279_v29  ;;  %v348_v26 = vld [vmem:[%s2302_s0 + $0xa38] sm:$0xff]  ;;  %v347_v28 = vld [vmem:[%s2302_s0 + $0xa30] sm:$0xff] }
  0xad   :  { %823 = vmatprep.subr.mxu0 %v268_v0  ;;  %890 = vmatprep.subr.mxu1 %v404_v30  ;;  %v412_v27 = vld [vmem:[%s2302_s0 + $0xc38] sm:$0xff]  ;;  %v411_v29 = vld [vmem:[%s2302_s0 + $0xc30] sm:$0xff]  ;;  %v1036_v0 = vld [vmem:[%s2303_s1 + $0x8] sm:$0x77] }
  0xae   :  { %824 = vmatpush2.msra.mxu0 %v267_v31  ;;  %891 = vmatpush2.msra.mxu1 %v403_v32  ;;  %v344_v30 = vld [vmem:[%s2302_s0 + $0xa18] sm:$0xff]  ;;  %v343_v31 = vld [vmem:[%s2302_s0 + $0xa10] sm:$0xff] }
  0xaf   :  { %825 = vmatprep.subr.mxu0 %v264_v56  ;;  %892 = vmatprep.subr.mxu1 %v400_v33  ;;  %v407_v32 = vld [vmem:[%s2302_s0 + $0xc10] sm:$0xff]  ;;  %v1037_v56 = vld [vmem:[%s2303_s1 + $0x18] sm:$0x7] }
  0xb0   :  { %826 = vmatpush2.msra.mxu0 %v263_v34  ;;  %893 = vmatpush2.msra.mxu1 %v399_v35 }
  0xb1   :  { %827 = vmatprep.subr.mxu0 %v260_v36  ;;  %894 = vmatprep.subr.mxu1 %v396_v37 }
  0xb2   :  { %828 = vmatpush2.msra.mxu0 %v259_v38  ;;  %895 = vmatpush2.msra.mxu1 %v395_v39 }
  0xb3   :  { %829 = vmatprep.subr.mxu0 %v256_v40  ;;  %896 = vmatprep.subr.mxu1 %v392_v41 }
  0xb4   :  { %830 = vmatpush2.msra.mxu0 %v255_v42  ;;  %897 = vmatpush2.msra.mxu1 %v391_v43 }
  0xb5   :  { %831 = vmatprep.subr.mxu0 %v252_v44  ;;  %898 = vmatprep.subr.mxu1 %v388_v45 }
  0xb6   :  { %832 = vmatpush2.msra.mxu0 %v251_v46  ;;  %899 = vmatpush2.msra.mxu1 %v387_v47 }
  0xb7   :  { %833 = vmatprep.subr.mxu0 %v248_v48  ;;  %900 = vmatprep.subr.mxu1 %v384_v49 }
  0xb8   :  { %834 = vmatpush2.msra.mxu0 %v247_v50  ;;  %901 = vmatpush2.msra.mxu1 %v383_v51 }
  0xb9   :  { %835 = vmatprep.subr.mxu0 %v244_v52  ;;  %902 = vmatprep.subr.mxu1 %v380_v53 }
  0xba   :  { %836 = vmatpush2.msra.mxu0 %v243_v54  ;;  %903 = vmatpush2.msra.mxu1 %v379_v55 }
  0xbb   :  { %837 = vmatprep.subr.mxu0 %v240_v57  ;;  %904 = vmatprep.subr.mxu1 %v376_v58 }
  0xbc   :  { %838 = vmatpush2.msra.mxu0 %v239_v59  ;;  %905 = vmatpush2.msra.mxu1 %v375_v60 }
  0xbd   :  { %839 = vmatprep.subr.mxu0 %v236_v61  ;;  %906 = vmatprep.subr.mxu1 %v372_v62  ;;  %v1001_v62 = vld [vmem:[%s2305_s3 + $0x8] sm:$0x77] }
  0xbe   :  { %840 = vmatpush2.msra.mxu0 %v235_v63  ;;  %907 = vmatpush2.msra.mxu1 %v371_v1 }
  0xbf   :  { %841 = vmatprep.subr.mxu0 %v232_v3  ;;  %908 = vmatprep.subr.mxu1 %v368_v4 }
  0xc0   :  { %842 = vmatpush2.msra.mxu0 %v231_v6  ;;  %909 = vmatpush2.msra.mxu1 %v367_v7  ;;  %v1005_v7 = vcombine.high %v1001_v62, %v1001_v62 }
  0xc1   :  { %843 = vmatprep.subr.mxu0 %v228_v8  ;;  %910 = vmatprep.subr.mxu1 %v364_v9 }
  0xc2   :  { %844 = vmatpush2.msra.mxu0 %v227_v10  ;;  %911 = vmatpush2.msra.mxu1 %v363_v11 }
  0xc3   :  { %845 = vmatprep.subr.mxu0 %v224_v13  ;;  %912 = vmatprep.subr.mxu1 %v360_v14 }
  0xc4   :  { %846 = vmatpush2.msra.mxu0 %v223_v15  ;;  %913 = vmatpush2.msra.mxu1 %v359_v16 }
  0xc5   :  { %847 = vmatprep.subr.mxu0 %v220_v18  ;;  %914 = vmatprep.subr.mxu1 %v356_v19 }
  0xc6   :  { %848 = vmatpush2.msra.mxu0 %v219_v20  ;;  %915 = vmatpush2.msra.mxu1 %v355_v21 }
  0xc7   :  { %849 = vmatprep.subr.mxu0 %v216_v22  ;;  %916 = vmatprep.subr.mxu1 %v352_v23 }
  0xc8   :  { %850 = vmatpush2.msra.mxu0 %v215_v24  ;;  %851 = vmatprep.mubr.f32.mxu0 %v1458_v2  ;;  %v408_v2 = vld [vmem:[%s2302_s0 + $0xc18] sm:$0xff] }
  0xc9   :  { %917 = vmatpush2.msra.mxu1 %v351_v25  ;;  %852 = vmatmul.mubr.f32.vlgmr.msra.gmra.mxu0 %v1036_v0 }
  0xca   :  { %918 = vmatprep.subr.mxu1 %v348_v26  ;;  %957 = vmatprep.subr.mxu0 %v412_v27 }
  0xcb   :  { %919 = vmatpush2.msra.mxu1 %v347_v28  ;;  %958 = vmatpush1.msra.mxu0 %v411_v29 }
  0xcc   :  { %920 = vmatprep.subr.mxu1 %v344_v30  ;;  %959 = vmatprep.subr.mxu0 %v408_v2 }
  0xcd   :  { %921 = vmatpush2.msra.mxu1 %v343_v31  ;;  %922 = vmatprep.mubr.f32.mxu1 %v1856_v12 }
  0xce   :  { %960 = vmatpush1.msra.mxu0 %v407_v32  ;;  %993 = vmatprep.mubr.f32.mxu0 %v1038_v17  ;;  %v1000_v17 = vld [vmem:[%s2305_s3] sm:$0x77] }
  0xcf   :  { %923 = vmatmul.mubr.f32.vlgmr.msra.gmra.mxu1 %v1834_v5  ;;  %1027 = vmatmul.mubr.msk.f32.vlgmr.msra.gmra.mxu0 %vm429_vm0, %v1037_v56  ;;  %v1004_v46 = vcombine.high %v1000_v17, %v1000_v17 }
 0x104   :  { %v498_v33 = vpop.f32.mrf.mxu0  ;;  %v569_v35 = vpop.f32.mrf.mxu1 }
 0x106   :  { %v500_v36 = vpop.f32.mrf.mxu0  ;;  %v571_v38 = vpop.f32.mrf.mxu1 }
 0x108   :  { %v417_v34 = vpop.permute.xlu0 %416 }
 0x109   :  { %v499_v37 = vadd.f32 %v498_v33, %v417_v34  ;;  %v501_v39 = vadd.f32 %v500_v36, %v417_v34 }
 0x10a   :  { %v711_v12 = vpop.f32.mrf.mxu1 }
 0x10b   :  { %v570_v40 = vadd.f32 %v569_v35, %v499_v37  ;;  %v572_v5 = vadd.f32 %v571_v38, %v501_v39 }
 0x10c   :  { %v713_v47 = vpop.f32.mrf.mxu1 }
 0x146   :  { %v640_v41 = vpop.f32.mrf.mxu0 }
 0x147   :  { %v641_v42 = vadd.f32 %v640_v41, %v570_v40 }
 0x148   :  { %v642_v43 = vpop.f32.mrf.mxu0 }
 0x149   :  { %v712_v44 = vadd.f32 %v711_v12, %v641_v42  ;;  %v643_v45 = vadd.f32 %v642_v43, %v572_v5 }
 0x14b   :  { %v714_v48 = vadd.f32 %v713_v47, %v643_v45  ;;  %v1008_v49 = vadd.f32 %v1000_v17, %v712_v44 }
 0x14c   :  { %v782_v52 = vpop.f32.mrf.mxu1 }
 0x14d   :  { %v1009_v50 = vadd.f32 %v1004_v46, %v714_v48  ;;  %v783_v57 = vadd.f32 %v782_v52, %v417_v34 }
 0x14e   :  { %v784_v54 = vpop.f32.mrf.mxu1 }
 0x14f   :  { %v1016_v51 = vcombine.low %v1008_v49, %v1009_v50  ;;  %v785_v58 = vadd.f32 %v784_v54, %v417_v34 }
 0x151   :  { %1020 = vst [vmem:[%s2306_s4] sm:$0x77] %v1016_v51 }
 0x189   :  { %v853_v53 = vpop.f32.mrf.mxu0 }
 0x18a   :  { %v854_v59 = vadd.f32 %v853_v53, %v783_v57 }
 0x18b   :  { %v855_v55 = vpop.f32.mrf.mxu0 }
 0x18c   :  { %v856_v63 = vadd.f32 %v855_v55, %v785_v58 }
 0x18f   :  { %v924_v60 = vpop.f32.mrf.mxu1  ;;  %v995_v61 = vpop.f32.mrf.mxu0 }
 0x190   :  { %v925_v1 = vadd.f32 %v924_v60, %v854_v59 }
 0x191   :  { %v926_v3 = vpop.f32.mrf.mxu1  ;;  %v997_v8 = vpop.f32.mrf.mxu0 }
 0x192   :  { %v996_v4 = vadd.f32 %v995_v61, %v925_v1  ;;  %v927_v6 = vadd.f32 %v926_v3, %v856_v63 }
 0x194   :  { %v998_v9 = vadd.f32 %v997_v8, %v927_v6  ;;  %v1010_v10 = vadd.f32 %v1001_v62, %v996_v4 }
 0x196   :  { %v1011_v11 = vadd.f32 %v1005_v7, %v998_v9 }
 0x198   :  { %v1017_v13 = vcombine.low %v1010_v10, %v1011_v11 }
 0x19a   :  { %1021 = vst [vmem:[%s2306_s4 + $0x8] sm:$0x77] %v1017_v13 }

</bundles_post_ra>
